<compile_context>
chip_gen: v6e
topology: v6e:2x2x1
jax: 0.10.0
libtpu: 0.0.40
codegen_flags: <defaults>
</compile_context>

<pallas_src>
import jax
import jax.numpy as jnp
from jax.experimental import pallas as pl
from jax.experimental.pallas import tpu as pltpu

LATENT_DIM = 100
HIDDEN = [256, 512, 1024]
OUT_DIM = 28 * 28  # 784


def _cdiv(a, b):
    return -(-a // b)


def _round_up(x, m):
    return _cdiv(x, m) * m


def _generator_kernel(x_ref,
                      w1_ref, b1_ref,
                      w2_ref, b2_ref,
                      w3_ref, b3_ref,
                      w4_ref, b4_ref,
                      out_ref):
    # Fused 4-layer MLP for one batch tile. Weights are bf16 (DMA-bound regime;
    # MXU takes bf16 natively), accumulation/bias adds are f32, ReLU on VPU,
    # tanh on EUP, final store in bf16 (tanh output is in [-1, 1]).
    h = x_ref[...]                                                    # (TB, 100) f32
    h = jnp.dot(h.astype(jnp.bfloat16), w1_ref[...],
                preferred_element_type=jnp.float32) + b1_ref[...]
    h = jnp.maximum(h, 0.0)                                           # ReLU
    h = jnp.dot(h.astype(jnp.bfloat16), w2_ref[...],
                preferred_element_type=jnp.float32) + b2_ref[...]
    h = jnp.maximum(h, 0.0)
    h = jnp.dot(h.astype(jnp.bfloat16), w3_ref[...],
                preferred_element_type=jnp.float32) + b3_ref[...]
    h = jnp.maximum(h, 0.0)
    h = jnp.dot(h.astype(jnp.bfloat16), w4_ref[...],
                preferred_element_type=jnp.float32) + b4_ref[...]
    out_ref[...] = jnp.tanh(h).astype(out_ref.dtype)                  # Tanh -> bf16


def prepare_params(params):
    """One-time host-side prep: cast weights to bf16, biases to (1, out) f32.

    params: list of 4 (W:(in,out) f32, b:(out,) f32) in x@W+b layout
            (equivalent to PyTorch's x @ W.T with W stored as (out,in)).
    No shape padding needed: every block dim is either a multiple of 128 or
    equals the full array dim (100 / 784), which BlockSpec allows.
    """
    dims_in = [LATENT_DIM] + HIDDEN
    dims_out = HIDDEN + [OUT_DIM]
    prepped = []
    for (w, b), di, do in zip(params, dims_in, dims_out):
        assert w.shape == (di, do) and b.shape == (do,)
        prepped.append((w.astype(jnp.bfloat16),
                        b.reshape(1, do).astype(jnp.float32)))
    return prepped


def _vmem_limit_bytes(tb):
    # Single-buffered bf16 weights + double-buffered in/out tiles + per-layer
    # f32/bf16 intermediates, with a 2x safety margin; clamped to [24, 48] MiB
    # (keeps headroom on v7x's 64 MiB physical VMEM, raises v5e's 16 MiB default).
    w_bytes = 2 * (LATENT_DIM * 256 + 256 * 512 + 512 * 1024 + 1024 * OUT_DIM)
    b_bytes = 4 * (256 + 512 + 1024 + OUT_DIM)
    io_bytes = 2 * tb * LATENT_DIM * 4 + 2 * tb * OUT_DIM * 2
    act_bytes = tb * (256 + 512 + 1024 + OUT_DIM) * (4 + 2)
    est = w_bytes + b_bytes + io_bytes + act_bytes
    return int(min(max(2 * est + (4 << 20), 24 << 20), 48 << 20))


def generator_forward(x, prepped_params, *, tile_b=512, vmem_limit_bytes=None):
    """x: (B, LATENT_DIM) f32.  prepped_params: output of prepare_params().
    Returns (B, 1, 28, 28) f32, matching the PyTorch module's output."""
    B = x.shape[0]
    assert x.shape[1] == LATENT_DIM
    assert tile_b % 8 == 0
    x = x.astype(jnp.float32)

    # Tile selection:
    #  * at least 2 grid steps once B >= 16 so ("parallel",) shards across the
    #    two v7x TensorCores (each re-DMAs the ~3 MiB resident weights once),
    #  * tb derived from cdiv(B, n_tiles) so e.g. B=257 pads to 272 rows, not 512.
    n_tiles = max(_cdiv(B, tile_b), 2 if B >= 16 else 1)
    tb = _round_up(_cdiv(B, n_tiles), 8)
    b_pad = n_tiles * tb
    if b_pad != B:
        x = jnp.pad(x, ((0, b_pad - B), (0, 0)))

    flat_args = [x]
    in_specs = [pl.BlockSpec((tb, LATENT_DIM), lambda i: (i, 0))]
    for (w, b) in prepped_params:
        flat_args += [w, b]
        # Constant index_map => blocks are DMA'd once and stay VMEM-resident
        # across all batch tiles; Buffered(1) drops the useless second buffer.
        in_specs.append(pl.BlockSpec(w.shape, lambda i: (0, 0),
                                     pipeline_mode=pl.Buffered(1)))
        in_specs.append(pl.BlockSpec(b.shape, lambda i: (0, 0),
                                     pipeline_mode=pl.Buffered(1)))

    if vmem_limit_bytes is None:
        vmem_limit_bytes = _vmem_limit_bytes(tb)

    y = pl.pallas_call(
        _generator_kernel,
        out_shape=jax.ShapeDtypeStruct((b_pad, OUT_DIM), jnp.bfloat16),
        grid=(n_tiles,),
        in_specs=in_specs,
        out_specs=pl.BlockSpec((tb, OUT_DIM), lambda i: (i, 0)),
        compiler_params=pltpu.CompilerParams(
            dimension_semantics=("parallel",),
            vmem_limit_bytes=vmem_limit_bytes),
    )(*flat_args)

    # Strip batch padding, upcast, then same as PyTorch `.view(-1, 1, 28, 28)` (NCHW).
    return y[:B].astype(jnp.float32).reshape(B, 1, 28, 28)


def init_params(key):
    """Deterministic init mirroring nn.Linear's default U(-1/sqrt(fan_in), +...)."""
    dims = [LATENT_DIM] + HIDDEN + [OUT_DIM]
    params = []
    for fan_in, fan_out in zip(dims[:-1], dims[1:]):
        kw, kb, key = jax.random.split(key, 3)
        bound = 1.0 / jnp.sqrt(jnp.float32(fan_in))
        w = jax.random.uniform(kw, (fan_in, fan_out), jnp.float32, -bound, bound)
        b = jax.random.uniform(kb, (fan_out,), jnp.float32, -bound, bound)
        params.append((w, b))
    return params


if __name__ == "__main__":
    key = jax.random.PRNGKey(0)
    k_x1, k_x2, k_p = jax.random.split(key, 3)

    params = init_params(k_p)
    prepped = prepare_params(params)

    # Reference: plain-JAX forward with the same bf16-quantized weights (the kernel
    # also rounds activations to bf16 at the MXU inputs and stores the tanh output
    # in bf16, hence the 5e-2 tolerance vs. this f32-activation reference).
    def ref_forward(xr):
        h = xr
        for i, (w, b) in enumerate(params):
            w_q = w.astype(jnp.bfloat16).astype(jnp.float32)
            h = h @ w_q + b
            h = jnp.maximum(h, 0.0) if i < len(params) - 1 else jnp.tanh(h)
        return h.reshape(-1, 1, 28, 28)

    # Small batch: single-tile path.
    B = 8
    x = jax.random.normal(k_x1, (B, LATENT_DIM), dtype=jnp.float32)
    out = jax.block_until_ready(generator_forward(x, prepped))
    assert out.shape == (B, 1, 28, 28), out.shape
    assert out.dtype == jnp.float32
    max_err = float(jnp.max(jnp.abs(out - ref_forward(x))))
    assert max_err < 5e-2, f"max abs diff vs reference: {max_err}"

    # Larger batch: exercises the >=2-grid-step (v7x 2-TC) + batch-padding path.
    B2 = 40
    x2 = jax.random.normal(k_x2, (B2, LATENT_DIM), dtype=jnp.float32)
    out2 = jax.block_until_ready(generator_forward(x2, prepped))
    assert out2.shape == (B2, 1, 28, 28), out2.shape
    max_err2 = float(jnp.max(jnp.abs(out2 - ref_forward(x2))))
    assert max_err2 < 5e-2, f"max abs diff vs reference (multi-tile): {max_err2}"

    print("KERNEL_OK")
</pallas_src>

<mosaic_0001>
module attributes {stable_mosaic.version = 11 : i64} {
  func.func @_generator_kernel(%arg0: i32, %arg1: memref<8x100xf32, #tpu.memory_space<vmem>>, %arg2: memref<100x256xbf16, #tpu.memory_space<vmem>>, %arg3: memref<1x256xf32, #tpu.memory_space<vmem>>, %arg4: memref<256x512xbf16, #tpu.memory_space<vmem>>, %arg5: memref<1x512xf32, #tpu.memory_space<vmem>>, %arg6: memref<512x1024xbf16, #tpu.memory_space<vmem>>, %arg7: memref<1x1024xf32, #tpu.memory_space<vmem>>, %arg8: memref<1024x784xbf16, #tpu.memory_space<vmem>>, %arg9: memref<1x784xf32, #tpu.memory_space<vmem>>, %arg10: memref<8x784xbf16, #tpu.memory_space<vmem>>) attributes {dimension_semantics = [#tpu.dimension_semantics<parallel>], iteration_bounds = array<i64: 1>, scalar_prefetch = 0 : i64, scratch_operands = 0 : i64, tpu.core_type = #tpu.core_type<tc>, window_params = [{transform_indices = @transform_0, window_bounds = array<i64: 8, 100>}, {pipeline_mode = #tpu.pipeline_mode<synchronous>, transform_indices = @transform_1, window_bounds = array<i64: 100, 256>}, {pipeline_mode = #tpu.pipeline_mode<synchronous>, transform_indices = @transform_2, window_bounds = array<i64: 1, 256>}, {pipeline_mode = #tpu.pipeline_mode<synchronous>, transform_indices = @transform_3, window_bounds = array<i64: 256, 512>}, {pipeline_mode = #tpu.pipeline_mode<synchronous>, transform_indices = @transform_4, window_bounds = array<i64: 1, 512>}, {pipeline_mode = #tpu.pipeline_mode<synchronous>, transform_indices = @transform_5, window_bounds = array<i64: 512, 1024>}, {pipeline_mode = #tpu.pipeline_mode<synchronous>, transform_indices = @transform_6, window_bounds = array<i64: 1, 1024>}, {pipeline_mode = #tpu.pipeline_mode<synchronous>, transform_indices = @transform_7, window_bounds = array<i64: 1024, 784>}, {pipeline_mode = #tpu.pipeline_mode<synchronous>, transform_indices = @transform_8, window_bounds = array<i64: 1, 784>}, {transform_indices = @transform_9, window_bounds = array<i64: 8, 784>}]} {
    %c0 = arith.constant 0 : index
    %c0_0 = arith.constant 0 : index
    %0 = vector.load %arg1[%c0, %c0_0] : memref<8x100xf32, #tpu.memory_space<vmem>>, vector<8x100xf32>
    %1 = arith.truncf %0 : vector<8x100xf32> to vector<8x100xbf16>
    %c0_1 = arith.constant 0 : index
    %c0_2 = arith.constant 0 : index
    %2 = vector.load %arg2[%c0_1, %c0_2] : memref<100x256xbf16, #tpu.memory_space<vmem>>, vector<100x256xbf16>
    %cst = arith.constant dense<0.000000e+00> : vector<8x256xf32>
    %3 = tpu.matmul %1, %2, %cst {dimension_numbers = #tpu.dot_dimension_numbers<[1], [0], [0], [1], [0, 0, 1, 1], [], []>} : vector<8x100xbf16>, vector<100x256xbf16>, vector<8x256xf32> -> vector<8x256xf32>
    %c0_3 = arith.constant 0 : index
    %c0_4 = arith.constant 0 : index
    %4 = vector.load %arg3[%c0_3, %c0_4] : memref<1x256xf32, #tpu.memory_space<vmem>>, vector<1x256xf32>
    %5 = vector.broadcast %4 : vector<1x256xf32> to vector<8x256xf32>
    %6 = arith.addf %3, %5 : vector<8x256xf32>
    %cst_5 = arith.constant 0.000000e+00 : f32
    %7 = vector.broadcast %cst_5 : f32 to vector<8x256xf32>
    %8 = arith.maximumf %6, %7 : vector<8x256xf32>
    %9 = arith.truncf %8 : vector<8x256xf32> to vector<8x256xbf16>
    %c0_6 = arith.constant 0 : index
    %c0_7 = arith.constant 0 : index
    %10 = vector.load %arg4[%c0_6, %c0_7] : memref<256x512xbf16, #tpu.memory_space<vmem>>, vector<256x512xbf16>
    %cst_8 = arith.constant dense<0.000000e+00> : vector<8x512xf32>
    %11 = tpu.matmul %9, %10, %cst_8 {dimension_numbers = #tpu.dot_dimension_numbers<[1], [0], [0], [1], [0, 0, 1, 1], [], []>} : vector<8x256xbf16>, vector<256x512xbf16>, vector<8x512xf32> -> vector<8x512xf32>
    %c0_9 = arith.constant 0 : index
    %c0_10 = arith.constant 0 : index
    %12 = vector.load %arg5[%c0_9, %c0_10] : memref<1x512xf32, #tpu.memory_space<vmem>>, vector<1x512xf32>
    %13 = vector.broadcast %12 : vector<1x512xf32> to vector<8x512xf32>
    %14 = arith.addf %11, %13 : vector<8x512xf32>
    %cst_11 = arith.constant 0.000000e+00 : f32
    %15 = vector.broadcast %cst_11 : f32 to vector<8x512xf32>
    %16 = arith.maximumf %14, %15 : vector<8x512xf32>
    %17 = arith.truncf %16 : vector<8x512xf32> to vector<8x512xbf16>
    %c0_12 = arith.constant 0 : index
    %c0_13 = arith.constant 0 : index
    %18 = vector.load %arg6[%c0_12, %c0_13] : memref<512x1024xbf16, #tpu.memory_space<vmem>>, vector<512x1024xbf16>
    %cst_14 = arith.constant dense<0.000000e+00> : vector<8x1024xf32>
    %19 = tpu.matmul %17, %18, %cst_14 {dimension_numbers = #tpu.dot_dimension_numbers<[1], [0], [0], [1], [0, 0, 1, 1], [], []>} : vector<8x512xbf16>, vector<512x1024xbf16>, vector<8x1024xf32> -> vector<8x1024xf32>
    %c0_15 = arith.constant 0 : index
    %c0_16 = arith.constant 0 : index
    %20 = vector.load %arg7[%c0_15, %c0_16] : memref<1x1024xf32, #tpu.memory_space<vmem>>, vector<1x1024xf32>
    %21 = vector.broadcast %20 : vector<1x1024xf32> to vector<8x1024xf32>
    %22 = arith.addf %19, %21 : vector<8x1024xf32>
    %cst_17 = arith.constant 0.000000e+00 : f32
    %23 = vector.broadcast %cst_17 : f32 to vector<8x1024xf32>
    %24 = arith.maximumf %22, %23 : vector<8x1024xf32>
    %25 = arith.truncf %24 : vector<8x1024xf32> to vector<8x1024xbf16>
    %c0_18 = arith.constant 0 : index
    %c0_19 = arith.constant 0 : index
    %26 = vector.load %arg8[%c0_18, %c0_19] : memref<1024x784xbf16, #tpu.memory_space<vmem>>, vector<1024x784xbf16>
    %cst_20 = arith.constant dense<0.000000e+00> : vector<8x784xf32>
    %27 = tpu.matmul %25, %26, %cst_20 {dimension_numbers = #tpu.dot_dimension_numbers<[1], [0], [0], [1], [0, 0, 1, 1], [], []>} : vector<8x1024xbf16>, vector<1024x784xbf16>, vector<8x784xf32> -> vector<8x784xf32>
    %c0_21 = arith.constant 0 : index
    %c0_22 = arith.constant 0 : index
    %28 = vector.load %arg9[%c0_21, %c0_22] : memref<1x784xf32, #tpu.memory_space<vmem>>, vector<1x784xf32>
    %29 = vector.broadcast %28 : vector<1x784xf32> to vector<8x784xf32>
    %30 = arith.addf %27, %29 : vector<8x784xf32>
    %31 = math.tanh %30 : vector<8x784xf32>
    %32 = arith.truncf %31 : vector<8x784xf32> to vector<8x784xbf16>
    %c0_23 = arith.constant 0 : index
    %c0_24 = arith.constant 0 : index
    %33 = vector.load %arg10[%c0_23, %c0_24] : memref<8x784xbf16, #tpu.memory_space<vmem>>, vector<8x784xbf16>
    tpu.vector_store %arg10[%c0_23, %c0_24], %32 {strides = array<i32>} : memref<8x784xbf16, #tpu.memory_space<vmem>>, vector<8x784xbf16>,
    return
  }
  func.func @transform_0(%arg0: i32) -> (i32, i32) {
    %c0_i32 = arith.constant 0 : i32
    %c0_i32_0 = arith.constant 0 : i32
    return %arg0, %c0_i32 : i32, i32
  }
  func.func @transform_1(%arg0: i32) -> (i32, i32) {
    %c0_i32 = arith.constant 0 : i32
    %c0_i32_0 = arith.constant 0 : i32
    %c0_i32_1 = arith.constant 0 : i32
    return %c0_i32, %c0_i32_0 : i32, i32
  }
  func.func @transform_2(%arg0: i32) -> (i32, i32) {
    %c0_i32 = arith.constant 0 : i32
    %c0_i32_0 = arith.constant 0 : i32
    %c0_i32_1 = arith.constant 0 : i32
    return %c0_i32, %c0_i32_0 : i32, i32
  }
  func.func @transform_3(%arg0: i32) -> (i32, i32) {
    %c0_i32 = arith.constant 0 : i32
    %c0_i32_0 = arith.constant 0 : i32
    %c0_i32_1 = arith.constant 0 : i32
    return %c0_i32, %c0_i32_0 : i32, i32
  }
  func.func @transform_4(%arg0: i32) -> (i32, i32) {
    %c0_i32 = arith.constant 0 : i32
    %c0_i32_0 = arith.constant 0 : i32
    %c0_i32_1 = arith.constant 0 : i32
    return %c0_i32, %c0_i32_0 : i32, i32
  }
  func.func @transform_5(%arg0: i32) -> (i32, i32) {
    %c0_i32 = arith.constant 0 : i32
    %c0_i32_0 = arith.constant 0 : i32
    %c0_i32_1 = arith.constant 0 : i32
    return %c0_i32, %c0_i32_0 : i32, i32
  }
  func.func @transform_6(%arg0: i32) -> (i32, i32) {
    %c0_i32 = arith.constant 0 : i32
    %c0_i32_0 = arith.constant 0 : i32
    %c0_i32_1 = arith.constant 0 : i32
    return %c0_i32, %c0_i32_0 : i32, i32
  }
  func.func @transform_7(%arg0: i32) -> (i32, i32) {
    %c0_i32 = arith.constant 0 : i32
    %c0_i32_0 = arith.constant 0 : i32
    %c0_i32_1 = arith.constant 0 : i32
    return %c0_i32, %c0_i32_0 : i32, i32
  }
  func.func @transform_8(%arg0: i32) -> (i32, i32) {
    %c0_i32 = arith.constant 0 : i32
    %c0_i32_0 = arith.constant 0 : i32
    %c0_i32_1 = arith.constant 0 : i32
    return %c0_i32, %c0_i32_0 : i32, i32
  }
  func.func @transform_9(%arg0: i32) -> (i32, i32) {
    %c0_i32 = arith.constant 0 : i32
    %c0_i32_0 = arith.constant 0 : i32
    return %arg0, %c0_i32 : i32, i32
  }
}

</mosaic_0001>

<bundles_post_ra>
// kernel: tpu_custom_call.1
= control target key start
LH: loop header
LB: loop body
LE: loop exit
PB: predicated region body
PF: predicated region fallthrough
CT: control target
= control target key end

     0   :  { %vm130_vm0 = vcmask 1041408   ;;  %v7835_v4 = vmov 0   ;;  %vm126_vm1 = vcmask 818176   ;;  %s10421_s0 = inlined_call_operand.vmem [shape: f32[8,100], index: 0, kind: input, shape index: {}]   ;;  %s10422_s1 = inlined_call_operand.vmem [shape: bf16[100,256], index: 1, kind: input, shape index: {}]   ;;  %s10423_s2 = inlined_call_operand.vmem [shape: f32[1,256], index: 2, kind: input, shape index: {}]   ;;  %s10424_s3 = inlined_call_operand.vmem [shape: bf16[256,512], index: 3, kind: input, shape index: {}]   ;;  %s10425_s4 = inlined_call_operand.vmem [shape: f32[1,512], index: 4, kind: input, shape index: {}]   ;;  %s10426_s5 = inlined_call_operand.vmem [shape: bf16[512,1024], index: 5, kind: input, shape index: {}]   ;;  %s10427_s6 = inlined_call_operand.vmem [shape: f32[1,1024], index: 6, kind: input, shape index: {}]   ;;  %s10428_s7 = inlined_call_operand.vmem [shape: bf16[1024,784], index: 7, kind: input, shape index: {}]   ;;  %s10429_s8 = inlined_call_operand.vmem [shape: f32[1,784], index: 8, kind: input, shape index: {}]   ;;  %s10430_s9 = inlined_call_operand.hbm [shape: bf16[8,784], index: 9, kind: output, shape index: {}]  }
   0x1   :  { %v48_v0 = vld [vmem:[%s10422_s1 + $0x60] sm:$0x33]  ;;  %v7044_v3 = vld [vmem:[%s10422_s1 + $0x54] ss:$8 sps:$4 sm:$0xff]   ;;  %169 = vmatprep.mubr.bf16.mxu0 %v7835_v4  ;;  %v7046_v6 = vld [vmem:[%s10422_s1 + $0x50] ss:$8 sps:$4 sm:$0xff]  }
   0x2   :  { %v6173_v1 = vcombine.high %v48_v0, %v48_v0  ;;  %v6172_v2 = vcombine.low %v48_v0, %v48_v0  ;;  %v7047_v7 = vld [vmem:[%s10422_s1 + $0x44] ss:$8 sps:$4 sm:$0xff]   ;;  %v7049_v8 = vld [vmem:[%s10422_s1 + $0x40] ss:$8 sps:$4 sm:$0xff]   ;;  %v7050_v9 = vld [vmem:[%s10422_s1 + $0x34] ss:$8 sps:$4 sm:$0xff]  }
   0x3   :  { %v7062_v10 = vld [vmem:[%s10424_s3 + $0xe4] ss:$16 sps:$4 sm:$0xff]   ;;  %v7052_v11 = vld [vmem:[%s10422_s1 + $0x30] ss:$8 sps:$4 sm:$0xff]   ;;  %v7055_v17 = vld [vmem:[%s10422_s1 + $0x20] ss:$8 sps:$4 sm:$0xff]  }
   0x4   :  { %6174 = vmatprep.subr.msk.bf16.mxu0 %vm130_vm0, %v6173_v1  ;;  %v132_v5 = vsel %vm130_vm0, %v6172_v2, 0  ;;  %588 = vmatprep.subr.bf16.mxu1 %v7062_v10  ;;  %v7067_v12 = vld [vmem:[%s10424_s3 + $0xe0] ss:$16 sps:$4 sm:$0xff]   ;;  %v7068_v13 = vld [vmem:[%s10424_s3 + $0xc4] ss:$16 sps:$4 sm:$0xff]  }
   0x5   :  { %140 = vmatpush1.bf16.msra.mxu0 %v132_v5  ;;  %v7053_v14 = vld [vmem:[%s10422_s1 + $0x24] ss:$8 sps:$4 sm:$0xff]   ;;  %589 = vmatpush1.bf16.msra.mxu1 %v7067_v12  ;;  %v7073_v15 = vld [vmem:[%s10424_s3 + $0xc0] ss:$16 sps:$4 sm:$0xff]   ;;  %v7056_v18 = vld [vmem:[%s10422_s1 + $0x14] ss:$8 sps:$4 sm:$0xff]  }
   0x6   :  { %141 = vmatprep.subr.bf16.mxu0 %v7044_v3  ;;  %590 = vmatprep.subr.bf16.mxu1 %v7068_v13  ;;  %v7074_v16 = vld [vmem:[%s10424_s3 + $0xa4] ss:$16 sps:$4 sm:$0xff]   ;;  %v7079_v19 = vld [vmem:[%s10424_s3 + $0xa0] ss:$16 sps:$4 sm:$0xff]   ;;  %v7066_v27 = vld [vmem:[%s10424_s3 + $0xec] ss:$16 sps:$4 sm:$0xff]  }
   0x7   :  { %v7080_v20 = vld [vmem:[%s10424_s3 + $0x84] ss:$16 sps:$4 sm:$0xff]   ;;  %v7058_v21 = vld [vmem:[%s10422_s1 + $0x10] ss:$8 sps:$4 sm:$0xff]   ;;  %v7061_v25 = vld [vmem:[%s10422_s1] ss:$8 sps:$4 sm:$0xff]  }
   0x8   :  { %v7059_v22 = vld [vmem:[%s10422_s1 + $0x4] ss:$8 sps:$4 sm:$0xff]   ;;  %v7085_v23 = vld [vmem:[%s10424_s3 + $0x80] ss:$16 sps:$4 sm:$0xff]   ;;  %v7064_v31 = vld [vmem:[%s10424_s3 + $0xe8] ss:$16 sps:$4 sm:$0xff]  }
   0x9   :  { %142 = vmatpush1.bf16.msra.mxu0 %v7046_v6  ;;  %591 = vmatpush1.bf16.msra.mxu1 %v7073_v15  ;;  %v7086_v24 = vld [vmem:[%s10424_s3 + $0x64] ss:$16 sps:$4 sm:$0xff]   ;;  %v7091_v28 = vld [vmem:[%s10424_s3 + $0x60] ss:$16 sps:$4 sm:$0xff]   ;;  %v7072_v32 = vld [vmem:[%s10424_s3 + $0xcc] ss:$16 sps:$4 sm:$0xff]  }
   0xa   :  { %143 = vmatprep.subr.bf16.mxu0 %v7047_v7  ;;  %592 = vmatprep.subr.bf16.mxu1 %v7074_v16  ;;  %v34_v26 = vld [vmem:[%s10421_s0] sm:$0xff]  ;;  %v7070_v35 = vld [vmem:[%s10424_s3 + $0xc8] ss:$16 sps:$4 sm:$0xff]   ;;  %v7078_v36 = vld [vmem:[%s10424_s3 + $0xac] ss:$16 sps:$4 sm:$0xff]  }
   0xb   :  { %v7092_v29 = vld [vmem:[%s10424_s3 + $0x44] ss:$16 sps:$4 sm:$0xff]   ;;  %v35_v30 = vpack.c.bf16 %v34_v26, %v34_v26  ;;  %v7097_v33 = vld [vmem:[%s10424_s3 + $0x40] ss:$16 sps:$4 sm:$0xff]   ;;  %v7076_v39 = vld [vmem:[%s10424_s3 + $0xa8] ss:$16 sps:$4 sm:$0xff]  }
   0xc   :  { %v7098_v34 = vld [vmem:[%s10424_s3 + $0x24] ss:$16 sps:$4 sm:$0xff]   ;;  %v7103_v37 = vld [vmem:[%s10424_s3 + $0x20] ss:$16 sps:$4 sm:$0xff]   ;;  %v7084_v40 = vld [vmem:[%s10424_s3 + $0x8c] ss:$16 sps:$4 sm:$0xff]  }
   0xd   :  { %144 = vmatpush1.bf16.msra.mxu0 %v7049_v8  ;;  %593 = vmatpush1.bf16.msra.mxu1 %v7079_v19  ;;  %v7104_v38 = vld [vmem:[%s10424_s3 + $0x4] ss:$16 sps:$4 sm:$0xff]   ;;  %v7109_v41 = vld [vmem:[%s10424_s3] ss:$16 sps:$4 sm:$0xff]   ;;  %v7082_v43 = vld [vmem:[%s10424_s3 + $0x88] ss:$16 sps:$4 sm:$0xff]  }
   0xe   :  { %145 = vmatprep.subr.bf16.mxu0 %v7050_v9  ;;  %594 = vmatprep.subr.bf16.mxu1 %v7080_v20  ;;  %v7110_v42 = vld [vmem:[%s10424_s3 + $0x1e4] ss:$16 sps:$4 sm:$0xff]   ;;  %v7090_v44 = vld [vmem:[%s10424_s3 + $0x6c] ss:$16 sps:$4 sm:$0xff]   ;;  %v7115_v45 = vld [vmem:[%s10424_s3 + $0x1e0] ss:$16 sps:$4 sm:$0xff]  }
   0xf   :  { %v7116_v46 = vld [vmem:[%s10424_s3 + $0x1c4] ss:$16 sps:$4 sm:$0xff]   ;;  %v7088_v47 = vld [vmem:[%s10424_s3 + $0x68] ss:$16 sps:$4 sm:$0xff]   ;;  %v7096_v48 = vld [vmem:[%s10424_s3 + $0x4c] ss:$16 sps:$4 sm:$0xff]  }
  0x10   :  { %v7121_v49 = vld [vmem:[%s10424_s3 + $0x1c0] ss:$16 sps:$4 sm:$0xff]   ;;  %v7094_v50 = vld [vmem:[%s10424_s3 + $0x48] ss:$16 sps:$4 sm:$0xff]   ;;  %v7122_v51 = vld [vmem:[%s10424_s3 + $0x1a4] ss:$16 sps:$4 sm:$0xff]  }
  0x11   :  { %146 = vmatpush1.bf16.msra.mxu0 %v7052_v11  ;;  %595 = vmatpush1.bf16.msra.mxu1 %v7085_v23  ;;  %v7102_v52 = vld [vmem:[%s10424_s3 + $0x2c] ss:$16 sps:$4 sm:$0xff]   ;;  %v7127_v53 = vld [vmem:[%s10424_s3 + $0x1a0] ss:$16 sps:$4 sm:$0xff]   ;;  %v7128_v54 = vld [vmem:[%s10424_s3 + $0x184] ss:$16 sps:$4 sm:$0xff]  }
  0x12   :  { %147 = vmatprep.subr.bf16.mxu0 %v7053_v14  ;;  %596 = vmatprep.subr.bf16.mxu1 %v7086_v24  ;;  %v7100_v55 = vld [vmem:[%s10424_s3 + $0x28] ss:$16 sps:$4 sm:$0xff]   ;;  %v7108_v56 = vld [vmem:[%s10424_s3 + $0xc] ss:$16 sps:$4 sm:$0xff]   ;;  %v7133_v57 = vld [vmem:[%s10424_s3 + $0x180] ss:$16 sps:$4 sm:$0xff]  }
  0x13   :  { %v7134_v58 = vld [vmem:[%s10424_s3 + $0x164] ss:$16 sps:$4 sm:$0xff]   ;;  %v7106_v59 = vld [vmem:[%s10424_s3 + $0x8] ss:$16 sps:$4 sm:$0xff]   ;;  %v7114_v60 = vld [vmem:[%s10424_s3 + $0x1ec] ss:$16 sps:$4 sm:$0xff]  }
  0x14   :  { %v7139_v61 = vld [vmem:[%s10424_s3 + $0x160] ss:$16 sps:$4 sm:$0xff]   ;;  %v7140_v62 = vld [vmem:[%s10424_s3 + $0x144] ss:$16 sps:$4 sm:$0xff]   ;;  %v7112_v63 = vld [vmem:[%s10424_s3 + $0x1e8] ss:$16 sps:$4 sm:$0xff]  }
  0x15   :  { %148 = vmatpush1.bf16.msra.mxu0 %v7055_v17  ;;  %597 = vmatpush1.bf16.msra.mxu1 %v7091_v28  ;;  %v7120_v0 = vld [vmem:[%s10424_s3 + $0x1cc] ss:$16 sps:$4 sm:$0xff]   ;;  %v7145_v1 = vld [vmem:[%s10424_s3 + $0x140] ss:$16 sps:$4 sm:$0xff]   ;;  %v7118_v2 = vld [vmem:[%s10424_s3 + $0x1c8] ss:$16 sps:$4 sm:$0xff]  }
  0x16   :  { %149 = vmatprep.subr.bf16.mxu0 %v7056_v18  ;;  %598 = vmatprep.subr.bf16.mxu1 %v7092_v29  ;;  %v7126_v3 = vld [vmem:[%s10424_s3 + $0x1ac] ss:$16 sps:$4 sm:$0xff]   ;;  %v7124_v4 = vld [vmem:[%s10424_s3 + $0x1a8] ss:$16 sps:$4 sm:$0xff]   ;;  %v7146_v11 = vld [vmem:[%s10424_s3 + $0x124] ss:$16 sps:$4 sm:$0xff]  }
  0x17   :  { %v7132_v5 = vld [vmem:[%s10424_s3 + $0x18c] ss:$16 sps:$4 sm:$0xff]   ;;  %v7130_v6 = vld [vmem:[%s10424_s3 + $0x188] ss:$16 sps:$4 sm:$0xff]   ;;  %v7151_v14 = vld [vmem:[%s10424_s3 + $0x120] ss:$16 sps:$4 sm:$0xff]  }
  0x18   :  { %v7138_v7 = vld [vmem:[%s10424_s3 + $0x16c] ss:$16 sps:$4 sm:$0xff]   ;;  %v7136_v8 = vld [vmem:[%s10424_s3 + $0x168] ss:$16 sps:$4 sm:$0xff]   ;;  %v7152_v15 = vld [vmem:[%s10424_s3 + $0x104] ss:$16 sps:$4 sm:$0xff]  }
  0x19   :  { %150 = vmatpush1.bf16.msra.mxu0 %v7058_v21  ;;  %599 = vmatpush1.bf16.msra.mxu1 %v7097_v33  ;;  %v7144_v9 = vld [vmem:[%s10424_s3 + $0x14c] ss:$16 sps:$4 sm:$0xff]   ;;  %v7142_v10 = vld [vmem:[%s10424_s3 + $0x148] ss:$16 sps:$4 sm:$0xff]   ;;  %v7157_v18 = vld [vmem:[%s10424_s3 + $0x100] ss:$16 sps:$4 sm:$0xff]  }
  0x1a   :  { %151 = vmatprep.subr.bf16.mxu0 %v7059_v22  ;;  %600 = vmatprep.subr.bf16.mxu1 %v7098_v34  ;;  %v7150_v12 = vld [vmem:[%s10424_s3 + $0x12c] ss:$16 sps:$4 sm:$0xff]   ;;  %v7148_v13 = vld [vmem:[%s10424_s3 + $0x128] ss:$16 sps:$4 sm:$0xff]   ;;  %v734_v19 = vld [vmem:[%s10426_s5 + $0x1c0] sm:$0xff] }
  0x1b   :  { %v7156_v16 = vld [vmem:[%s10424_s3 + $0x10c] ss:$16 sps:$4 sm:$0xff]   ;;  %v7154_v17 = vld [vmem:[%s10424_s3 + $0x108] ss:$16 sps:$4 sm:$0xff]   ;;  %v738_v20 = vld [vmem:[%s10426_s5 + $0x1e0] sm:$0xff] }
  0x1c   :  { %v862_v21 = vld [vmem:[%s10426_s5 + $0x5c0] sm:$0xff]  ;;  %v6296_v22 = vcombine.low %v734_v19, %v738_v20  ;;  %v6297_v23 = vcombine.high %v734_v19, %v738_v20 }
  0x1d   :  { %152 = vmatpush1.bf16.msra.mxu0 %v7061_v25  ;;  %601 = vmatpush1.bf16.msra.mxu1 %v7103_v37  ;;  %v866_v24 = vld [vmem:[%s10426_s5 + $0x5e0] sm:$0xff] }
  0x1e   :  { %629 = vmatprep.subr.bf16.mxu0 %v7066_v27  ;;  %602 = vmatprep.subr.bf16.mxu1 %v7104_v38  ;;  %v6424_v25 = vcombine.low %v862_v21, %v866_v24  ;;  %v6425_v26 = vcombine.high %v862_v21, %v866_v24  ;;  %v51_v27 = vlaneseq  ;;  %v49_v29 = vld [vmem:[%s10423_s2] sm:$0x3] }
  0x20   :  { %6175 = vmatmul.mubr.msk.bf16.vlgmr.msra.gmra.mxu0 %vm126_vm1, %v35_v30  ;;  %v8133_v28 = vshrl.u32 %v51_v27, 7 }
  0x21   :  { %630 = vmatpush1.bf16.msra.mxu0 %v7064_v31  ;;  %603 = vmatpush1.bf16.msra.mxu1 %v7109_v41  ;;  %v854_v41 = vld [vmem:[%s10426_s5 + $0x580] sm:$0xff] }
  0x22   :  { %631 = vmatprep.subr.bf16.mxu0 %v7072_v32  ;;  %604 = vmatprep.subr.bf16.mxu1 %v7110_v42  ;;  %v8139_v30 = vsub.s32 0, %v8133_v28  ;;  %v8142_v31 = vsub.s32 1, %v8133_v28 }
  0x24   :  { %v54_v32 = vrot.slane %v49_v29, %v8139_v30  ;;  %v58_v33 = vrot.slane %v49_v29, %v8142_v31 }
  0x25   :  { %632 = vmatpush1.bf16.msra.mxu0 %v7070_v35  ;;  %605 = vmatpush2.bf16.msra.mxu1 %v7115_v45 }
  0x26   :  { %633 = vmatprep.subr.bf16.mxu0 %v7078_v36  ;;  %606 = vmatprep.subr.bf16.mxu1 %v7116_v46 }
  0x29   :  { %634 = vmatpush1.bf16.msra.mxu0 %v7076_v39  ;;  %607 = vmatpush2.bf16.msra.mxu1 %v7121_v49  ;;  %v726_v39 = vld [vmem:[%s10426_s5 + $0x180] sm:$0xff] }
  0x2a   :  { %635 = vmatprep.subr.bf16.mxu0 %v7084_v40  ;;  %608 = vmatprep.subr.bf16.mxu1 %v7122_v51  ;;  %v730_v40 = vld [vmem:[%s10426_s5 + $0x1a0] sm:$0xff] }
  0x2b   :  { %v846_v49 = vld [vmem:[%s10426_s5 + $0x540] sm:$0xff] }
  0x2d   :  { %636 = vmatpush1.bf16.msra.mxu0 %v7082_v43  ;;  %609 = vmatpush2.bf16.msra.mxu1 %v7127_v53 }
  0x2e   :  { %637 = vmatprep.subr.bf16.mxu0 %v7090_v44  ;;  %610 = vmatprep.subr.bf16.mxu1 %v7128_v54  ;;  %v858_v44 = vld [vmem:[%s10426_s5 + $0x5a0] sm:$0xff]  ;;  %v6288_v54 = vcombine.low %v726_v39, %v730_v40 }
  0x2f   :  { %v6417_v53 = vcombine.high %v854_v41, %v858_v44 }
  0x31   :  { %638 = vmatpush1.bf16.msra.mxu0 %v7088_v47  ;;  %611 = vmatpush2.bf16.msra.mxu1 %v7133_v57  ;;  %v718_v47 = vld [vmem:[%s10426_s5 + $0x140] sm:$0xff] }
  0x32   :  { %639 = vmatprep.subr.bf16.mxu0 %v7096_v48  ;;  %612 = vmatprep.subr.bf16.mxu1 %v7134_v58  ;;  %v722_v48 = vld [vmem:[%s10426_s5 + $0x160] sm:$0xff] }
  0x33   :  { %v714_v57 = vld [vmem:[%s10426_s5 + $0x120] sm:$0xff] }
  0x34   :  { %v838_v58 = vld [vmem:[%s10426_s5 + $0x500] sm:$0xff] }
  0x35   :  { %640 = vmatpush1.bf16.msra.mxu0 %v7094_v50  ;;  %613 = vmatpush2.bf16.msra.mxu1 %v7139_v61  ;;  %v850_v50 = vld [vmem:[%s10426_s5 + $0x560] sm:$0xff] }
  0x36   :  { %641 = vmatprep.subr.bf16.mxu0 %v7102_v52  ;;  %614 = vmatprep.subr.bf16.mxu1 %v7140_v62  ;;  %v6289_v52 = vcombine.high %v726_v39, %v730_v40  ;;  %v6409_v61 = vcombine.high %v846_v49, %v850_v50  ;;  %v6280_v62 = vcombine.low %v718_v47, %v722_v48 }
  0x39   :  { %642 = vmatpush1.bf16.msra.mxu0 %v7100_v55  ;;  %615 = vmatpush2.bf16.msra.mxu1 %v7145_v1  ;;  %v6416_v55 = vcombine.low %v854_v41, %v858_v44  ;;  %v706_v1 = vld [vmem:[%s10426_s5 + $0xe0] sm:$0xff] }
  0x3a   :  { %643 = vmatprep.subr.bf16.mxu0 %v7108_v56  ;;  %616 = vmatprep.subr.bf16.mxu1 %v7146_v11  ;;  %v710_v56 = vld [vmem:[%s10426_s5 + $0x100] sm:$0xff] }
  0x3d   :  { %644 = vmatpush1.bf16.msra.mxu0 %v7106_v59  ;;  %617 = vmatpush2.bf16.msra.mxu1 %v7151_v14  ;;  %v842_v59 = vld [vmem:[%s10426_s5 + $0x520] sm:$0xff] }
  0x3e   :  { %645 = vmatprep.subr.bf16.mxu0 %v7114_v60  ;;  %618 = vmatprep.subr.bf16.mxu1 %v7152_v15  ;;  %v6281_v60 = vcombine.high %v718_v47, %v722_v48 }
  0x41   :  { %646 = vmatpush2.bf16.msra.mxu0 %v7112_v63  ;;  %619 = vmatpush2.bf16.msra.mxu1 %v7157_v18  ;;  %v6408_v63 = vcombine.low %v846_v49, %v850_v50 }
  0x42   :  { %647 = vmatprep.subr.bf16.mxu0 %v7120_v0  ;;  %2256 = vmatprep.subr.bf16.mxu1 %v6297_v23  ;;  %v702_v0 = vld [vmem:[%s10426_s5 + $0xc0] sm:$0xff] }
  0x45   :  { %648 = vmatpush2.bf16.msra.mxu0 %v7118_v2  ;;  %v830_v2 = vld [vmem:[%s10426_s5 + $0x4c0] sm:$0xff] }
  0x46   :  { %649 = vmatprep.subr.bf16.mxu0 %v7126_v3  ;;  %v834_v3 = vld [vmem:[%s10426_s5 + $0x4e0] sm:$0xff] }
  0x49   :  { %650 = vmatpush2.bf16.msra.mxu0 %v7124_v4  ;;  %v6273_v4 = vcombine.high %v710_v56, %v714_v57 }
  0x4a   :  { %651 = vmatprep.subr.bf16.mxu0 %v7132_v5  ;;  %v6401_v5 = vcombine.high %v838_v58, %v842_v59 }
  0x4d   :  { %652 = vmatpush2.bf16.msra.mxu0 %v7130_v6  ;;  %v6272_v6 = vcombine.low %v710_v56, %v714_v57 }
  0x4e   :  { %653 = vmatprep.subr.bf16.mxu0 %v7138_v7  ;;  %v6400_v7 = vcombine.low %v838_v58, %v842_v59 }
  0x51   :  { %654 = vmatpush2.bf16.msra.mxu0 %v7136_v8 }
  0x52   :  { %655 = vmatprep.subr.bf16.mxu0 %v7144_v9 }
  0x55   :  { %656 = vmatpush2.bf16.msra.mxu0 %v7142_v10 }
  0x56   :  { %657 = vmatprep.subr.bf16.mxu0 %v7150_v12 }
  0x59   :  { %658 = vmatpush2.bf16.msra.mxu0 %v7148_v13 }
  0x5a   :  { %659 = vmatprep.subr.bf16.mxu0 %v7156_v16 }
  0x5d   :  { %660 = vmatpush2.bf16.msra.mxu0 %v7154_v17 }
  0x5e   :  { %2297 = vmatprep.subr.bf16.mxu0 %v6425_v26 }
  0xe0   :  { %v171_v34 = vpop.f32.mrf.mxu0 }
  0xe1   :  { %v172_v35 = vadd.f32 %v171_v34, %v54_v32 }
  0xe2   :  { %v173_v36 = vpop.f32.mrf.mxu0 }
  0xe3   :  { %v178_v37 = vmax.f32 %v172_v35, 0.0  ;;  %v174_v38 = vadd.f32 %v173_v36, %v58_v33 }
  0xe4   :  { %v175_v42 = vpop.f32.mrf.mxu0 }
  0xe5   :  { %v179_v43 = vmax.f32 %v174_v38, 0.0  ;;  %v180_v51 = vpack.c.bf16 %v178_v37, %v178_v37 }
  0xe6   :  { %v176_v45 = vpop.f32.mrf.mxu0 }
  0xe7   :  { %v181_v46 = vpack.c.bf16 %v179_v43, %v179_v43 }
  0xe9   :  { %620 = vmatprep.mubr.bf16.mxu1 %v181_v46  ;;  %661 = vmatprep.mubr.bf16.mxu0 %v181_v46 }
  0xea   :  { %621 = vmatmul.mubr.bf16.vlgmr.msra.gmra.mxu1 %v180_v51  ;;  %662 = vmatmul.mubr.bf16.vlgmr.msra.gmra.mxu0 %v180_v51 }
  0xeb   :  { %2257 = vmatpush1.bf16.msra.mxu1 %v6296_v22  ;;  %2298 = vmatpush1.bf16.msra.mxu0 %v6424_v25 }
  0xec   :  { %2258 = vmatprep.subr.bf16.mxu1 %v6289_v52  ;;  %2299 = vmatprep.subr.bf16.mxu0 %v6417_v53 }
  0xef   :  { %2259 = vmatpush1.bf16.msra.mxu1 %v6288_v54  ;;  %2300 = vmatpush1.bf16.msra.mxu0 %v6416_v55 }
  0xf0   :  { %2260 = vmatprep.subr.bf16.mxu1 %v6281_v60  ;;  %2301 = vmatprep.subr.bf16.mxu0 %v6409_v61 }
  0xf3   :  { %2261 = vmatpush1.bf16.msra.mxu1 %v6280_v62  ;;  %2302 = vmatpush1.bf16.msra.mxu0 %v6408_v63 }
  0xf4   :  { %14 = vsyncpa [#allocation3], 0  ;;  %2262 = vmatprep.subr.bf16.mxu1 %v6273_v4  ;;  %2303 = vmatprep.subr.bf16.mxu0 %v6401_v5  ;;  %v6265_v8 = vcombine.high %v702_v0, %v706_v1  ;;  %v6393_v9 = vcombine.high %v830_v2, %v834_v3  ;;  %v694_v10 = vld [vmem:[%s10426_s5 + $0x80] sm:$0xff]  ;;  %v6264_v14 = vcombine.low %v702_v0, %v706_v1  ;;  %vm6144_vm2 = vcmask 125952  }
  0xf5   :  { %v698_v11 = vld [vmem:[%s10426_s5 + $0xa0] sm:$0xff]  ;;  %v6392_v15 = vcombine.low %v830_v2, %v834_v3 }
  0xf6   :  { %v822_v12 = vld [vmem:[%s10426_s5 + $0x480] sm:$0xff]  ;;  %v6257_v16 = vcombine.high %v694_v10, %v698_v11  ;;  %v6256_v22 = vcombine.low %v694_v10, %v698_v11 }
  0xf7   :  { %v826_v13 = vld [vmem:[%s10426_s5 + $0x4a0] sm:$0xff]  ;;  %2263 = vmatpush1.bf16.msra.mxu1 %v6272_v6  ;;  %2304 = vmatpush1.bf16.msra.mxu0 %v6400_v7 }
  0xf8   :  { %2264 = vmatprep.subr.bf16.mxu1 %v6265_v8  ;;  %2305 = vmatprep.subr.bf16.mxu0 %v6393_v9  ;;  %v6385_v17 = vcombine.high %v822_v12, %v826_v13  ;;  %v686_v18 = vld [vmem:[%s10426_s5 + $0x40] sm:$0xff]  ;;  %v6384_v23 = vcombine.low %v822_v12, %v826_v13 }
  0xf9   :  { %v690_v19 = vld [vmem:[%s10426_s5 + $0x60] sm:$0xff] }
  0xfa   :  { %v814_v20 = vld [vmem:[%s10426_s5 + $0x440] sm:$0xff]  ;;  %v6249_v24 = vcombine.high %v686_v18, %v690_v19  ;;  %v6248_v33 = vcombine.low %v686_v18, %v690_v19 }
  0xfb   :  { %v818_v21 = vld [vmem:[%s10426_s5 + $0x460] sm:$0xff]  ;;  %2265 = vmatpush1.bf16.msra.mxu1 %v6264_v14  ;;  %2306 = vmatpush1.bf16.msra.mxu0 %v6392_v15 }
  0xfc   :  { %2266 = vmatprep.subr.bf16.mxu1 %v6257_v16  ;;  %2307 = vmatprep.subr.bf16.mxu0 %v6385_v17  ;;  %v6377_v25 = vcombine.high %v814_v20, %v818_v21  ;;  %v678_v26 = vld [vmem:[%s10426_s5] sm:$0xff]  ;;  %v6376_v34 = vcombine.low %v814_v20, %v818_v21 }
  0xfd   :  { %v682_v27 = vld [vmem:[%s10426_s5 + $0x20] sm:$0xff] }
  0xfe   :  { %v806_v29 = vld [vmem:[%s10426_s5 + $0x400] sm:$0xff]  ;;  %v6241_v35 = vcombine.high %v678_v26, %v682_v27  ;;  %v6240_v41 = vcombine.low %v678_v26, %v682_v27 }
  0xff   :  { %v810_v32 = vld [vmem:[%s10426_s5 + $0x420] sm:$0xff]  ;;  %2267 = vmatpush1.bf16.msra.mxu1 %v6256_v22  ;;  %2308 = vmatpush1.bf16.msra.mxu0 %v6384_v23 }
 0x100   :  { %2268 = vmatprep.subr.bf16.mxu1 %v6249_v24  ;;  %2309 = vmatprep.subr.bf16.mxu0 %v6377_v25  ;;  %v6369_v36 = vcombine.high %v806_v29, %v810_v32  ;;  %v798_v37 = vld [vmem:[%s10426_s5 + $0x3c0] sm:$0xff]  ;;  %v6368_v42 = vcombine.low %v806_v29, %v810_v32 }
 0x101   :  { %v802_v38 = vld [vmem:[%s10426_s5 + $0x3e0] sm:$0xff] }
 0x102   :  { %v926_v39 = vld [vmem:[%s10426_s5 + $0x7c0] sm:$0xff]  ;;  %v6361_v43 = vcombine.high %v798_v37, %v802_v38  ;;  %v6360_v49 = vcombine.low %v798_v37, %v802_v38 }
 0x103   :  { %v930_v40 = vld [vmem:[%s10426_s5 + $0x7e0] sm:$0xff]  ;;  %2269 = vmatpush1.bf16.msra.mxu1 %v6248_v33  ;;  %2310 = vmatpush1.bf16.msra.mxu0 %v6376_v34 }
 0x104   :  { %2270 = vmatprep.subr.bf16.mxu1 %v6241_v35  ;;  %2311 = vmatprep.subr.bf16.mxu0 %v6369_v36  ;;  %v6489_v44 = vcombine.high %v926_v39, %v930_v40  ;;  %v790_v45 = vld [vmem:[%s10426_s5 + $0x380] sm:$0xff]  ;;  %v6488_v50 = vcombine.low %v926_v39, %v930_v40 }
 0x105   :  { %v794_v46 = vld [vmem:[%s10426_s5 + $0x3a0] sm:$0xff] }
 0x106   :  { %v918_v47 = vld [vmem:[%s10426_s5 + $0x780] sm:$0xff]  ;;  %v6353_v51 = vcombine.high %v790_v45, %v794_v46  ;;  %v6352_v57 = vcombine.low %v790_v45, %v794_v46  ;;  %v867_v46 = vld [vmem:[%s10426_s5 + $0x5e8] sm:$0xff] }
 0x107   :  { %v922_v48 = vld [vmem:[%s10426_s5 + $0x7a0] sm:$0xff]  ;;  %2271 = vmatpush1.bf16.msra.mxu1 %v6240_v41  ;;  %2312 = vmatpush1.bf16.msra.mxu0 %v6368_v42  ;;  %v735_v42 = vld [vmem:[%s10426_s5 + $0x1c8] sm:$0xff] }
 0x108   :  { %2272 = vmatprep.subr.bf16.mxu1 %v6361_v43  ;;  %2313 = vmatprep.subr.bf16.mxu0 %v6489_v44  ;;  %v6481_v52 = vcombine.high %v918_v47, %v922_v48  ;;  %v782_v53 = vld [vmem:[%s10426_s5 + $0x340] sm:$0xff]  ;;  %v6480_v58 = vcombine.low %v918_v47, %v922_v48  ;;  %v739_v43 = vld [vmem:[%s10426_s5 + $0x1e8] sm:$0xff] }
 0x109   :  { %v786_v54 = vld [vmem:[%s10426_s5 + $0x360] sm:$0xff]  ;;  %v863_v44 = vld [vmem:[%s10426_s5 + $0x5c8] sm:$0xff]  ;;  %v6299_v45 = vcombine.high %v735_v42, %v739_v43  ;;  %v6298_v47 = vcombine.low %v735_v42, %v739_v43 }
 0x10a   :  { %v910_v55 = vld [vmem:[%s10426_s5 + $0x740] sm:$0xff]  ;;  %v6345_v59 = vcombine.high %v782_v53, %v786_v54  ;;  %v6344_v1 = vcombine.low %v782_v53, %v786_v54  ;;  %v6426_v48 = vcombine.low %v863_v44, %v867_v46 }
 0x10b   :  { %v914_v56 = vld [vmem:[%s10426_s5 + $0x760] sm:$0xff]  ;;  %2273 = vmatpush2.bf16.msra.mxu1 %v6360_v49  ;;  %2314 = vmatpush2.bf16.msra.mxu0 %v6488_v50  ;;  %v6427_v49 = vcombine.high %v863_v44, %v867_v46  ;;  %v8339_v50 = vsub.s32 2, %v8133_v28  ;;  %v695_v46 = vld [vmem:[%s10426_s5 + $0x88] sm:$0xff] }
 0x10c   :  { %2274 = vmatprep.subr.bf16.mxu1 %v6353_v51  ;;  %2315 = vmatprep.subr.bf16.mxu0 %v6481_v52  ;;  %v6473_v60 = vcombine.high %v910_v55, %v914_v56  ;;  %v774_v61 = vld [vmem:[%s10426_s5 + $0x300] sm:$0xff]  ;;  %v6472_v2 = vcombine.low %v910_v55, %v914_v56  ;;  %v8345_v52 = vsub.s32 3, %v8133_v28 }
 0x10d   :  { %v778_v62 = vld [vmem:[%s10426_s5 + $0x320] sm:$0xff] }
 0x10e   :  { %v902_v63 = vld [vmem:[%s10426_s5 + $0x700] sm:$0xff]  ;;  %v6337_v3 = vcombine.high %v774_v61, %v778_v62  ;;  %v6336_v9 = vcombine.low %v774_v61, %v778_v62 }
 0x10f   :  { %v906_v0 = vld [vmem:[%s10426_s5 + $0x720] sm:$0xff]  ;;  %2275 = vmatpush2.bf16.msra.mxu1 %v6352_v57  ;;  %2316 = vmatpush2.bf16.msra.mxu0 %v6480_v58 }
 0x110   :  { %2276 = vmatprep.subr.bf16.mxu1 %v6345_v59  ;;  %2317 = vmatprep.subr.bf16.mxu0 %v6473_v60  ;;  %v6465_v4 = vcombine.high %v902_v63, %v906_v0  ;;  %v766_v5 = vld [vmem:[%s10426_s5 + $0x2c0] sm:$0xff]  ;;  %v6464_v10 = vcombine.low %v902_v63, %v906_v0 }
 0x111   :  { %v770_v6 = vld [vmem:[%s10426_s5 + $0x2e0] sm:$0xff] }
 0x112   :  { %v894_v7 = vld [vmem:[%s10426_s5 + $0x6c0] sm:$0xff]  ;;  %v6329_v11 = vcombine.high %v766_v5, %v770_v6  ;;  %v6328_v17 = vcombine.low %v766_v5, %v770_v6 }
 0x113   :  { %v898_v8 = vld [vmem:[%s10426_s5 + $0x6e0] sm:$0xff]  ;;  %2277 = vmatpush2.bf16.msra.mxu1 %v6344_v1  ;;  %2318 = vmatpush2.bf16.msra.mxu0 %v6472_v2 }
 0x114   :  { %2278 = vmatprep.subr.bf16.mxu1 %v6337_v3  ;;  %2319 = vmatprep.subr.bf16.mxu0 %v6465_v4  ;;  %v6457_v12 = vcombine.high %v894_v7, %v898_v8  ;;  %v758_v13 = vld [vmem:[%s10426_s5 + $0x280] sm:$0xff]  ;;  %v6456_v18 = vcombine.low %v894_v7, %v898_v8  ;;  %v727_v7 = vld [vmem:[%s10426_s5 + $0x188] sm:$0xff] }
 0x115   :  { %v762_v14 = vld [vmem:[%s10426_s5 + $0x2a0] sm:$0xff] }
 0x116   :  { %v886_v15 = vld [vmem:[%s10426_s5 + $0x680] sm:$0xff]  ;;  %v6321_v19 = vcombine.high %v758_v13, %v762_v14  ;;  %v6320_v21 = vcombine.low %v758_v13, %v762_v14 }
 0x117   :  { %v890_v16 = vld [vmem:[%s10426_s5 + $0x6a0] sm:$0xff]  ;;  %2279 = vmatpush2.bf16.msra.mxu1 %v6336_v9  ;;  %2320 = vmatpush2.bf16.msra.mxu0 %v6464_v10  ;;  %v731_v10 = vld [vmem:[%s10426_s5 + $0x1a8] sm:$0xff] }
 0x118   :  { %2280 = vmatprep.subr.bf16.mxu1 %v6329_v11  ;;  %2321 = vmatprep.subr.bf16.mxu0 %v6457_v12  ;;  %v6449_v20 = vcombine.high %v886_v15, %v890_v16  ;;  %v6448_v22 = vcombine.low %v886_v15, %v890_v16  ;;  %v750_v23 = vld [vmem:[%s10426_s5 + $0x240] sm:$0xff]  ;;  %v855_v11 = vld [vmem:[%s10426_s5 + $0x588] sm:$0xff] }
 0x119   :  { %v754_v24 = vld [vmem:[%s10426_s5 + $0x260] sm:$0xff]  ;;  %v859_v12 = vld [vmem:[%s10426_s5 + $0x5a8] sm:$0xff] }
 0x11a   :  { %v878_v25 = vld [vmem:[%s10426_s5 + $0x640] sm:$0xff]  ;;  %v6313_v26 = vcombine.high %v750_v23, %v754_v24  ;;  %v6312_v29 = vcombine.low %v750_v23, %v754_v24  ;;  %v6290_v23 = vcombine.low %v727_v7, %v731_v10  ;;  %v6418_v24 = vcombine.low %v855_v11, %v859_v12 }
 0x11b   :  { %2281 = vmatpush2.bf16.msra.mxu1 %v6328_v17  ;;  %2322 = vmatpush2.bf16.msra.mxu0 %v6456_v18  ;;  %v882_v27 = vld [vmem:[%s10426_s5 + $0x660] sm:$0xff]  ;;  %v719_v17 = vld [vmem:[%s10426_s5 + $0x148] sm:$0xff]  ;;  %v6291_v18 = vcombine.high %v727_v7, %v731_v10 }
 0x11c   :  { %2282 = vmatprep.subr.bf16.mxu1 %v6321_v19  ;;  %2323 = vmatprep.subr.bf16.mxu0 %v6449_v20  ;;  %v6440_v32 = vcombine.low %v878_v25, %v882_v27  ;;  %v6441_v33 = vcombine.high %v878_v25, %v882_v27  ;;  %v742_v34 = vld [vmem:[%s10426_s5 + $0x200] sm:$0xff]  ;;  %v6419_v19 = vcombine.high %v855_v11, %v859_v12  ;;  %v723_v20 = vld [vmem:[%s10426_s5 + $0x168] sm:$0xff] }
 0x11d   :  { %v746_v35 = vld [vmem:[%s10426_s5 + $0x220] sm:$0xff]  ;;  %v6283_v25 = vcombine.high %v719_v17, %v723_v20  ;;  %v711_v27 = vld [vmem:[%s10426_s5 + $0x108] sm:$0xff] }
 0x11e   :  { %v870_v36 = vld [vmem:[%s10426_s5 + $0x600] sm:$0xff]  ;;  %v6305_v37 = vcombine.high %v742_v34, %v746_v35  ;;  %v6304_v39 = vcombine.low %v742_v34, %v746_v35  ;;  %v6282_v34 = vcombine.low %v719_v17, %v723_v20  ;;  %v927_v10 = vld [vmem:[%s10426_s5 + $0x7c8] sm:$0xff] }
 0x11f   :  { %2283 = vmatpush2.bf16.msra.mxu1 %v6320_v21  ;;  %2324 = vmatpush2.bf16.msra.mxu0 %v6448_v22  ;;  %v874_v38 = vld [vmem:[%s10426_s5 + $0x620] sm:$0xff]  ;;  %v847_v21 = vld [vmem:[%s10426_s5 + $0x548] sm:$0xff] }
 0x120   :  { %2284 = vmatprep.subr.bf16.mxu1 %v6313_v26  ;;  %2325 = vmatprep.subr.bf16.mxu0 %v6441_v33  ;;  %v6432_v40 = vcombine.low %v870_v36, %v874_v38  ;;  %v6433_v41 = vcombine.high %v870_v36, %v874_v38  ;;  %v246_v51 = vld [vmem:[%s10425_s4] sm:$0xf]  ;;  %v851_v22 = vld [vmem:[%s10426_s5 + $0x568] sm:$0xff] }
 0x121   :  { %v251_v53 = vrot.slane %v246_v51, %v8139_v30  ;;  %v259_v54 = vrot.slane %v246_v51, %v8339_v50  ;;  %v255_v55 = vrot.slane %v246_v51, %v8142_v31  ;;  %v263_v56 = vrot.slane %v246_v51, %v8345_v52  ;;  %v843_v33 = vld [vmem:[%s10426_s5 + $0x528] sm:$0xff] }
 0x122   :  { %v6411_v26 = vcombine.high %v847_v21, %v851_v22  ;;  %v6410_v35 = vcombine.low %v847_v21, %v851_v22  ;;  %v703_v38 = vld [vmem:[%s10426_s5 + $0xc8] sm:$0xff] }
 0x123   :  { %2285 = vmatpush2.bf16.msra.mxu1 %v6312_v29  ;;  %2326 = vmatpush2.bf16.msra.mxu0 %v6440_v32  ;;  %v715_v29 = vld [vmem:[%s10426_s5 + $0x128] sm:$0xff] }
 0x124   :  { %2286 = vmatprep.subr.bf16.mxu1 %v6305_v37  ;;  %2327 = vmatprep.subr.bf16.mxu0 %v6433_v41  ;;  %v839_v32 = vld [vmem:[%s10426_s5 + $0x508] sm:$0xff]  ;;  %v6275_v36 = vcombine.high %v711_v27, %v715_v29  ;;  %v6274_v42 = vcombine.low %v711_v27, %v715_v29 }
 0x125   :  { %v6403_v37 = vcombine.high %v839_v32, %v843_v33  ;;  %v835_v41 = vld [vmem:[%s10426_s5 + $0x4e8] sm:$0xff]  ;;  %v6402_v43 = vcombine.low %v839_v32, %v843_v33 }
 0x126   :  { %v931_v11 = vld [vmem:[%s10426_s5 + $0x7e8] sm:$0xff] }
 0x127   :  { %2287 = vmatpush2.bf16.msra.mxu1 %v6304_v39  ;;  %2328 = vmatpush2.bf16.msra.mxu0 %v6432_v40  ;;  %v707_v39 = vld [vmem:[%s10426_s5 + $0xe8] sm:$0xff] }
 0x128   :  { %2338 = vmatprep.subr.bf16.mxu1 %v6299_v45  ;;  %2379 = vmatprep.subr.bf16.mxu0 %v6427_v49  ;;  %v831_v40 = vld [vmem:[%s10426_s5 + $0x4c8] sm:$0xff]  ;;  %v6267_v44 = vcombine.high %v703_v38, %v707_v39  ;;  %v6266_v51 = vcombine.low %v703_v38, %v707_v39 }
 0x129   :  { %v6395_v45 = vcombine.high %v831_v40, %v835_v41  ;;  %v827_v49 = vld [vmem:[%s10426_s5 + $0x4a8] sm:$0xff] }
 0x12a   :  { %v791_v20 = vld [vmem:[%s10426_s5 + $0x388] sm:$0xff] }
 0x12b   :  { %v795_v21 = vld [vmem:[%s10426_s5 + $0x3a8] sm:$0xff] }
 0x12c   :  { %v919_v22 = vld [vmem:[%s10426_s5 + $0x788] sm:$0xff] }
 0x12d   :  { %v783_v29 = vld [vmem:[%s10426_s5 + $0x348] sm:$0xff] }
 0x12e   :  { %v787_v32 = vld [vmem:[%s10426_s5 + $0x368] sm:$0xff] }
 0x12f   :  { %v911_v33 = vld [vmem:[%s10426_s5 + $0x748] sm:$0xff] }
 0x130   :  { %v775_v39 = vld [vmem:[%s10426_s5 + $0x308] sm:$0xff] }
 0x1aa   :  { %v622_v57 = vpop.f32.mrf.mxu1  ;;  %v663_v58 = vpop.f32.mrf.mxu0 }
 0x1ab   :  { %v623_v59 = vadd.f32 %v622_v57, %v251_v53  ;;  %v664_v60 = vadd.f32 %v663_v58, %v259_v54  ;;  %v6394_v53 = vcombine.low %v831_v40, %v835_v41  ;;  %v691_v57 = vld [vmem:[%s10426_s5 + $0x68] sm:$0xff] }
 0x1ac   :  { %v624_v61 = vpop.f32.mrf.mxu1  ;;  %v665_v62 = vpop.f32.mrf.mxu0  ;;  %v815_v58 = vld [vmem:[%s10426_s5 + $0x448] sm:$0xff] }
 0x1ad   :  { %v625_v63 = vadd.f32 %v624_v61, %v255_v55  ;;  %v666_v0 = vadd.f32 %v665_v62, %v263_v56  ;;  %v670_v1 = vmax.f32 %v623_v59, 0.0  ;;  %v672_v2 = vmax.f32 %v664_v60, 0.0  ;;  %v687_v56 = vld [vmem:[%s10426_s5 + $0x48] sm:$0xff] }
 0x1ae   :  { %v626_v3 = vpop.f32.mrf.mxu1  ;;  %v667_v4 = vpop.f32.mrf.mxu0  ;;  %v819_v59 = vld [vmem:[%s10426_s5 + $0x468] sm:$0xff]  ;;  %v6251_v62 = vcombine.high %v687_v56, %v691_v57 }
 0x1af   :  { %v671_v5 = vmax.f32 %v625_v63, 0.0  ;;  %v673_v6 = vmax.f32 %v666_v0, 0.0  ;;  %v8367_v15 = vpack.c.bf16 %v670_v1, %v670_v1  ;;  %v8369_v16 = vpack.c.bf16 %v672_v2, %v672_v2  ;;  %v679_v0 = vld [vmem:[%s10426_s5 + $0x8] sm:$0xff] }
 0x1b0   :  { %v627_v8 = vpop.f32.mrf.mxu1  ;;  %v668_v9 = vpop.f32.mrf.mxu0  ;;  %v6379_v63 = vcombine.high %v815_v58, %v819_v59  ;;  %v683_v1 = vld [vmem:[%s10426_s5 + $0x28] sm:$0xff]  ;;  %v6250_v4 = vcombine.low %v687_v56, %v691_v57 }
 0x1b1   :  { %v8363_v13 = vpack.c.bf16 %v671_v5, %v671_v5  ;;  %v8365_v14 = vpack.c.bf16 %v673_v6, %v673_v6  ;;  %v807_v2 = vld [vmem:[%s10426_s5 + $0x408] sm:$0xff]  ;;  %v6378_v5 = vcombine.low %v815_v58, %v819_v59  ;;  %v6243_v6 = vcombine.high %v679_v0, %v683_v1 }
 0x1b2   :  { %v811_v3 = vld [vmem:[%s10426_s5 + $0x428] sm:$0xff]  ;;  %v6242_v12 = vcombine.low %v679_v0, %v683_v1 }
 0x1b3   :  { %2288 = vmatprep.mubr.bf16.mxu1 %v8363_v13  ;;  %2329 = vmatprep.mubr.bf16.mxu0 %v8365_v14  ;;  %v6371_v7 = vcombine.high %v807_v2, %v811_v3  ;;  %v799_v8 = vld [vmem:[%s10426_s5 + $0x3c8] sm:$0xff]  ;;  %v6370_v17 = vcombine.low %v807_v2, %v811_v3 }
 0x1b4   :  { %2289 = vmatmul.mubr.bf16.vlgmr.msra.gmra.mxu1 %v8367_v15  ;;  %2330 = vmatmul.mubr.bf16.vlgmr.msra.gmra.mxu0 %v8369_v16  ;;  %v803_v9 = vld [vmem:[%s10426_s5 + $0x3e8] sm:$0xff] }
 0x1b5   :  { %2339 = vmatpush1.bf16.msra.mxu1 %v6298_v47  ;;  %2380 = vmatpush1.bf16.msra.mxu0 %v6426_v48  ;;  %v699_v47 = vld [vmem:[%s10426_s5 + $0xa8] sm:$0xff] }
 0x1b6   :  { %2370 = vmatprep.mubr.bf16.mxu1 %v8363_v13  ;;  %2411 = vmatprep.mubr.bf16.mxu0 %v8365_v14  ;;  %v823_v48 = vld [vmem:[%s10426_s5 + $0x488] sm:$0xff]  ;;  %v6259_v54 = vcombine.high %v695_v46, %v699_v47  ;;  %v6258_v60 = vcombine.low %v695_v46, %v699_v47 }
 0x1b7   :  { %2340 = vmatprep.subr.bf16.mxu1 %v6291_v18  ;;  %2381 = vmatprep.subr.bf16.mxu0 %v6419_v19  ;;  %v6387_v55 = vcombine.high %v823_v48, %v827_v49  ;;  %v6386_v61 = vcombine.low %v823_v48, %v827_v49  ;;  %v6363_v18 = vcombine.high %v799_v8, %v803_v9  ;;  %v779_v40 = vld [vmem:[%s10426_s5 + $0x328] sm:$0xff] }
 0x1b8   :  { %v6491_v19 = vcombine.high %v927_v10, %v931_v11  ;;  %v903_v41 = vld [vmem:[%s10426_s5 + $0x708] sm:$0xff] }
 0x1b9   :  { %2341 = vmatpush1.bf16.msra.mxu1 %v6290_v23  ;;  %2382 = vmatpush1.bf16.msra.mxu0 %v6418_v24  ;;  %v923_v23 = vld [vmem:[%s10426_s5 + $0x7a8] sm:$0xff]  ;;  %v6362_v24 = vcombine.low %v799_v8, %v803_v9 }
 0x1ba   :  { %2342 = vmatprep.subr.bf16.mxu1 %v6283_v25  ;;  %2383 = vmatprep.subr.bf16.mxu0 %v6411_v26  ;;  %v6490_v25 = vcombine.low %v927_v10, %v931_v11  ;;  %v6355_v26 = vcombine.high %v791_v20, %v795_v21  ;;  %v6483_v27 = vcombine.high %v919_v22, %v923_v23  ;;  %v767_v47 = vld [vmem:[%s10426_s5 + $0x2c8] sm:$0xff] }
 0x1bb   :  { %v771_v48 = vld [vmem:[%s10426_s5 + $0x2e8] sm:$0xff] }
 0x1bc   :  { %v895_v49 = vld [vmem:[%s10426_s5 + $0x6c8] sm:$0xff] }
 0x1bd   :  { %2343 = vmatpush1.bf16.msra.mxu1 %v6282_v34  ;;  %2384 = vmatpush1.bf16.msra.mxu0 %v6410_v35  ;;  %v915_v34 = vld [vmem:[%s10426_s5 + $0x768] sm:$0xff]  ;;  %v6354_v35 = vcombine.low %v791_v20, %v795_v21  ;;  %v736_v21 = vld [vmem:[%s10426_s5 + $0x1d0] sm:$0xff] }
 0x1be   :  { %2344 = vmatprep.subr.bf16.mxu1 %v6275_v36  ;;  %2385 = vmatprep.subr.bf16.mxu0 %v6403_v37  ;;  %v6482_v36 = vcombine.low %v919_v22, %v923_v23  ;;  %v6347_v37 = vcombine.high %v783_v29, %v787_v32  ;;  %v6475_v38 = vcombine.high %v911_v33, %v915_v34  ;;  %v759_v57 = vld [vmem:[%s10426_s5 + $0x288] sm:$0xff]  ;;  %v740_v22 = vld [vmem:[%s10426_s5 + $0x1f0] sm:$0xff] }
 0x1bf   :  { %v763_v58 = vld [vmem:[%s10426_s5 + $0x2a8] sm:$0xff]  ;;  %v864_v23 = vld [vmem:[%s10426_s5 + $0x5d0] sm:$0xff] }
 0x1c0   :  { %v887_v59 = vld [vmem:[%s10426_s5 + $0x688] sm:$0xff] }
 0x1c1   :  { %2345 = vmatpush1.bf16.msra.mxu1 %v6274_v42  ;;  %2386 = vmatpush1.bf16.msra.mxu0 %v6402_v43  ;;  %v907_v42 = vld [vmem:[%s10426_s5 + $0x728] sm:$0xff]  ;;  %v6346_v43 = vcombine.low %v783_v29, %v787_v32  ;;  %v728_v32 = vld [vmem:[%s10426_s5 + $0x190] sm:$0xff] }
 0x1c2   :  { %2346 = vmatprep.subr.bf16.mxu1 %v6267_v44  ;;  %2387 = vmatprep.subr.bf16.mxu0 %v6395_v45  ;;  %v6474_v44 = vcombine.low %v911_v33, %v915_v34  ;;  %v6339_v45 = vcombine.high %v775_v39, %v779_v40  ;;  %v6467_v46 = vcombine.high %v903_v41, %v907_v42  ;;  %v751_v1 = vld [vmem:[%s10426_s5 + $0x248] sm:$0xff]  ;;  %v732_v33 = vld [vmem:[%s10426_s5 + $0x1b0] sm:$0xff] }
 0x1c3   :  { %v755_v2 = vld [vmem:[%s10426_s5 + $0x268] sm:$0xff]  ;;  %v856_v34 = vld [vmem:[%s10426_s5 + $0x590] sm:$0xff] }
 0x1c4   :  { %v879_v3 = vld [vmem:[%s10426_s5 + $0x648] sm:$0xff] }
 0x1c5   :  { %2347 = vmatpush1.bf16.msra.mxu1 %v6266_v51  ;;  %2388 = vmatpush1.bf16.msra.mxu0 %v6394_v53  ;;  %v899_v51 = vld [vmem:[%s10426_s5 + $0x6e8] sm:$0xff]  ;;  %v6338_v53 = vcombine.low %v775_v39, %v779_v40  ;;  %v720_v40 = vld [vmem:[%s10426_s5 + $0x150] sm:$0xff] }
 0x1c6   :  { %2348 = vmatprep.subr.bf16.mxu1 %v6259_v54  ;;  %2389 = vmatprep.subr.bf16.mxu0 %v6387_v55  ;;  %v6466_v54 = vcombine.low %v903_v41, %v907_v42  ;;  %v6331_v55 = vcombine.high %v767_v47, %v771_v48  ;;  %v6459_v56 = vcombine.high %v895_v49, %v899_v51  ;;  %v743_v9 = vld [vmem:[%s10426_s5 + $0x208] sm:$0xff]  ;;  %v724_v41 = vld [vmem:[%s10426_s5 + $0x170] sm:$0xff] }
 0x1c7   :  { %v747_v10 = vld [vmem:[%s10426_s5 + $0x228] sm:$0xff]  ;;  %v848_v42 = vld [vmem:[%s10426_s5 + $0x550] sm:$0xff] }
 0x1c8   :  { %v871_v11 = vld [vmem:[%s10426_s5 + $0x608] sm:$0xff] }
 0x1c9   :  { %2349 = vmatpush1.bf16.msra.mxu1 %v6258_v60  ;;  %2390 = vmatpush1.bf16.msra.mxu0 %v6386_v61  ;;  %v891_v60 = vld [vmem:[%s10426_s5 + $0x6a8] sm:$0xff]  ;;  %v6330_v61 = vcombine.low %v767_v47, %v771_v48  ;;  %v712_v48 = vld [vmem:[%s10426_s5 + $0x110] sm:$0xff] }
 0x1ca   :  { %2350 = vmatprep.subr.bf16.mxu1 %v6251_v62  ;;  %2391 = vmatprep.subr.bf16.mxu0 %v6379_v63  ;;  %v6458_v62 = vcombine.low %v895_v49, %v899_v51  ;;  %v6323_v63 = vcombine.high %v759_v57, %v763_v58  ;;  %v6451_v0 = vcombine.high %v887_v59, %v891_v60  ;;  %v716_v49 = vld [vmem:[%s10426_s5 + $0x130] sm:$0xff] }
 0x1cb   :  { %v840_v51 = vld [vmem:[%s10426_s5 + $0x510] sm:$0xff] }
 0x1cd   :  { %2351 = vmatpush1.bf16.msra.mxu1 %v6250_v4  ;;  %2392 = vmatpush1.bf16.msra.mxu0 %v6378_v5  ;;  %v883_v4 = vld [vmem:[%s10426_s5 + $0x668] sm:$0xff]  ;;  %v6322_v5 = vcombine.low %v759_v57, %v763_v58  ;;  %v704_v58 = vld [vmem:[%s10426_s5 + $0xd0] sm:$0xff] }
 0x1ce   :  { %2352 = vmatprep.subr.bf16.mxu1 %v6243_v6  ;;  %2393 = vmatprep.subr.bf16.mxu0 %v6371_v7  ;;  %v6450_v6 = vcombine.low %v887_v59, %v891_v60  ;;  %v6315_v7 = vcombine.high %v751_v1, %v755_v2  ;;  %v6443_v8 = vcombine.high %v879_v3, %v883_v4  ;;  %v708_v59 = vld [vmem:[%s10426_s5 + $0xf0] sm:$0xff] }
 0x1cf   :  { %v832_v60 = vld [vmem:[%s10426_s5 + $0x4d0] sm:$0xff] }
 0x1d1   :  { %2353 = vmatpush1.bf16.msra.mxu1 %v6242_v12  ;;  %2394 = vmatpush1.bf16.msra.mxu0 %v6370_v17  ;;  %v875_v12 = vld [vmem:[%s10426_s5 + $0x628] sm:$0xff]  ;;  %v6314_v17 = vcombine.low %v751_v1, %v755_v2  ;;  %v696_v2 = vld [vmem:[%s10426_s5 + $0x90] sm:$0xff] }
 0x1d2   :  { %2354 = vmatprep.subr.bf16.mxu1 %v6363_v18  ;;  %2395 = vmatprep.subr.bf16.mxu0 %v6491_v19  ;;  %v6442_v18 = vcombine.low %v879_v3, %v883_v4  ;;  %v6307_v19 = vcombine.high %v743_v9, %v747_v10  ;;  %v6435_v20 = vcombine.high %v871_v11, %v875_v12  ;;  %v700_v3 = vld [vmem:[%s10426_s5 + $0xb0] sm:$0xff] }
 0x1d3   :  { %v824_v4 = vld [vmem:[%s10426_s5 + $0x490] sm:$0xff] }
 0x1d5   :  { %2355 = vmatpush2.bf16.msra.mxu1 %v6362_v24  ;;  %2396 = vmatpush2.bf16.msra.mxu0 %v6490_v25  ;;  %v868_v24 = vld [vmem:[%s10426_s5 + $0x5f0] sm:$0xff]  ;;  %v6306_v25 = vcombine.low %v743_v9, %v747_v10 }
 0x1d6   :  { %2356 = vmatprep.subr.bf16.mxu1 %v6355_v26  ;;  %2397 = vmatprep.subr.bf16.mxu0 %v6483_v27  ;;  %v6434_v26 = vcombine.low %v871_v11, %v875_v12  ;;  %v6301_v27 = vcombine.high %v736_v21, %v740_v22  ;;  %v6429_v29 = vcombine.high %v864_v23, %v868_v24  ;;  %v688_v10 = vld [vmem:[%s10426_s5 + $0x50] sm:$0xff] }
 0x1d7   :  { %v692_v11 = vld [vmem:[%s10426_s5 + $0x70] sm:$0xff] }
 0x1d8   :  { %v816_v12 = vld [vmem:[%s10426_s5 + $0x450] sm:$0xff] }
 0x1d9   :  { %2357 = vmatpush2.bf16.msra.mxu1 %v6354_v35  ;;  %2398 = vmatpush2.bf16.msra.mxu0 %v6482_v36  ;;  %v860_v35 = vld [vmem:[%s10426_s5 + $0x5b0] sm:$0xff]  ;;  %v6300_v36 = vcombine.low %v736_v21, %v740_v22 }
 0x1da   :  { %2358 = vmatprep.subr.bf16.mxu1 %v6347_v37  ;;  %2399 = vmatprep.subr.bf16.mxu0 %v6475_v38  ;;  %v6428_v37 = vcombine.low %v864_v23, %v868_v24  ;;  %v6293_v38 = vcombine.high %v728_v32, %v732_v33  ;;  %v6421_v39 = vcombine.high %v856_v34, %v860_v35  ;;  %v680_v22 = vld [vmem:[%s10426_s5 + $0x10] sm:$0xff] }
 0x1db   :  { %v684_v23 = vld [vmem:[%s10426_s5 + $0x30] sm:$0xff] }
 0x1dc   :  { %v808_v24 = vld [vmem:[%s10426_s5 + $0x410] sm:$0xff] }
 0x1dd   :  { %2359 = vmatpush2.bf16.msra.mxu1 %v6346_v43  ;;  %2400 = vmatpush2.bf16.msra.mxu0 %v6474_v44  ;;  %v852_v43 = vld [vmem:[%s10426_s5 + $0x570] sm:$0xff]  ;;  %v6292_v44 = vcombine.low %v728_v32, %v732_v33 }
 0x1de   :  { %2360 = vmatprep.subr.bf16.mxu1 %v6339_v45  ;;  %2401 = vmatprep.subr.bf16.mxu0 %v6467_v46  ;;  %v6420_v45 = vcombine.low %v856_v34, %v860_v35  ;;  %v6285_v46 = vcombine.high %v720_v40, %v724_v41  ;;  %v6413_v47 = vcombine.high %v848_v42, %v852_v43  ;;  %v800_v33 = vld [vmem:[%s10426_s5 + $0x3d0] sm:$0xff] }
 0x1df   :  { %v804_v34 = vld [vmem:[%s10426_s5 + $0x3f0] sm:$0xff] }
 0x1e0   :  { %v928_v35 = vld [vmem:[%s10426_s5 + $0x7d0] sm:$0xff] }
 0x1e1   :  { %2361 = vmatpush2.bf16.msra.mxu1 %v6338_v53  ;;  %2402 = vmatpush2.bf16.msra.mxu0 %v6466_v54  ;;  %v844_v53 = vld [vmem:[%s10426_s5 + $0x530] sm:$0xff]  ;;  %v6284_v54 = vcombine.low %v720_v40, %v724_v41 }
 0x1e2   :  { %2362 = vmatprep.subr.bf16.mxu1 %v6331_v55  ;;  %2403 = vmatprep.subr.bf16.mxu0 %v6459_v56  ;;  %v6412_v55 = vcombine.low %v848_v42, %v852_v43  ;;  %v6277_v56 = vcombine.high %v712_v48, %v716_v49  ;;  %v6405_v57 = vcombine.high %v840_v51, %v844_v53  ;;  %v792_v41 = vld [vmem:[%s10426_s5 + $0x390] sm:$0xff] }
 0x1e3   :  { %v796_v42 = vld [vmem:[%s10426_s5 + $0x3b0] sm:$0xff] }
 0x1e4   :  { %v920_v43 = vld [vmem:[%s10426_s5 + $0x790] sm:$0xff] }
 0x1e5   :  { %2363 = vmatpush2.bf16.msra.mxu1 %v6330_v61  ;;  %2404 = vmatpush2.bf16.msra.mxu0 %v6458_v62  ;;  %v836_v61 = vld [vmem:[%s10426_s5 + $0x4f0] sm:$0xff]  ;;  %v6276_v62 = vcombine.low %v712_v48, %v716_v49 }
 0x1e6   :  { %2364 = vmatprep.subr.bf16.mxu1 %v6323_v63  ;;  %2405 = vmatprep.subr.bf16.mxu0 %v6451_v0  ;;  %v6404_v63 = vcombine.low %v840_v51, %v844_v53  ;;  %v6269_v0 = vcombine.high %v704_v58, %v708_v59  ;;  %v6397_v1 = vcombine.high %v832_v60, %v836_v61  ;;  %v784_v49 = vld [vmem:[%s10426_s5 + $0x350] sm:$0xff] }
 0x1e7   :  { %v788_v51 = vld [vmem:[%s10426_s5 + $0x370] sm:$0xff] }
 0x1e8   :  { %v912_v53 = vld [vmem:[%s10426_s5 + $0x750] sm:$0xff] }
 0x1e9   :  { %2365 = vmatpush2.bf16.msra.mxu1 %v6322_v5  ;;  %2406 = vmatpush2.bf16.msra.mxu0 %v6450_v6  ;;  %v828_v5 = vld [vmem:[%s10426_s5 + $0x4b0] sm:$0xff]  ;;  %v6268_v6 = vcombine.low %v704_v58, %v708_v59 }
 0x1ea   :  { %2366 = vmatprep.subr.bf16.mxu1 %v6315_v7  ;;  %2407 = vmatprep.subr.bf16.mxu0 %v6443_v8  ;;  %v6396_v7 = vcombine.low %v832_v60, %v836_v61  ;;  %v6261_v8 = vcombine.high %v696_v2, %v700_v3  ;;  %v6389_v9 = vcombine.high %v824_v4, %v828_v5  ;;  %v776_v59 = vld [vmem:[%s10426_s5 + $0x310] sm:$0xff] }
 0x1eb   :  { %v780_v60 = vld [vmem:[%s10426_s5 + $0x330] sm:$0xff] }
 0x1ec   :  { %v904_v61 = vld [vmem:[%s10426_s5 + $0x710] sm:$0xff] }
 0x1ed   :  { %2367 = vmatpush2.bf16.msra.mxu1 %v6314_v17  ;;  %2408 = vmatpush2.bf16.msra.mxu0 %v6442_v18  ;;  %v820_v17 = vld [vmem:[%s10426_s5 + $0x470] sm:$0xff]  ;;  %v6260_v18 = vcombine.low %v696_v2, %v700_v3 }
 0x1ee   :  { %2368 = vmatprep.subr.bf16.mxu1 %v6307_v19  ;;  %2409 = vmatprep.subr.bf16.mxu0 %v6435_v20  ;;  %v6388_v19 = vcombine.low %v824_v4, %v828_v5  ;;  %v6253_v20 = vcombine.high %v688_v10, %v692_v11  ;;  %v6381_v21 = vcombine.high %v816_v12, %v820_v17  ;;  %v768_v3 = vld [vmem:[%s10426_s5 + $0x2d0] sm:$0xff] }
 0x1ef   :  { %v772_v4 = vld [vmem:[%s10426_s5 + $0x2f0] sm:$0xff] }
 0x1f0   :  { %v896_v5 = vld [vmem:[%s10426_s5 + $0x6d0] sm:$0xff] }
 0x1f1   :  { %2369 = vmatpush2.bf16.msra.mxu1 %v6306_v25  ;;  %2410 = vmatpush2.bf16.msra.mxu0 %v6434_v26  ;;  %v812_v25 = vld [vmem:[%s10426_s5 + $0x430] sm:$0xff]  ;;  %v6252_v26 = vcombine.low %v688_v10, %v692_v11 }
 0x1f2   :  { %2420 = vmatprep.subr.bf16.mxu1 %v6301_v27  ;;  %2461 = vmatprep.subr.bf16.mxu0 %v6429_v29  ;;  %v6380_v27 = vcombine.low %v816_v12, %v820_v17  ;;  %v6245_v29 = vcombine.high %v680_v22, %v684_v23  ;;  %v6373_v32 = vcombine.high %v808_v24, %v812_v25  ;;  %v760_v11 = vld [vmem:[%s10426_s5 + $0x290] sm:$0xff] }
 0x1f3   :  { %v764_v12 = vld [vmem:[%s10426_s5 + $0x2b0] sm:$0xff] }
 0x1f4   :  { %2371 = vmatmul.mubr.bf16.vlgmr.msra.gmra.mxu1 %v8367_v15  ;;  %2412 = vmatmul.mubr.bf16.vlgmr.msra.gmra.mxu0 %v8369_v16  ;;  %v888_v17 = vld [vmem:[%s10426_s5 + $0x690] sm:$0xff] }
 0x1f5   :  { %2421 = vmatpush1.bf16.msra.mxu1 %v6300_v36  ;;  %2452 = vmatprep.mubr.bf16.mxu1 %v8363_v13  ;;  %v932_v36 = vld [vmem:[%s10426_s5 + $0x7f0] sm:$0xff] }
 0x1f6   :  { %2462 = vmatpush1.bf16.msra.mxu0 %v6428_v37  ;;  %2493 = vmatprep.mubr.bf16.mxu0 %v8365_v14  ;;  %v6244_v37 = vcombine.low %v680_v22, %v684_v23  ;;  %v6493_v40 = vcombine.high %v928_v35, %v932_v36  ;;  %v752_v23 = vld [vmem:[%s10426_s5 + $0x250] sm:$0xff] }
 0x1f7   :  { %2422 = vmatprep.subr.bf16.mxu1 %v6293_v38  ;;  %2463 = vmatprep.subr.bf16.mxu0 %v6421_v39  ;;  %v6372_v38 = vcombine.low %v808_v24, %v812_v25  ;;  %v6365_v39 = vcombine.high %v800_v33, %v804_v34  ;;  %v756_v24 = vld [vmem:[%s10426_s5 + $0x270] sm:$0xff] }
 0x1f8   :  { %v880_v25 = vld [vmem:[%s10426_s5 + $0x650] sm:$0xff] }
 0x1f9   :  { %2423 = vmatpush1.bf16.msra.mxu1 %v6292_v44  ;;  %v924_v44 = vld [vmem:[%s10426_s5 + $0x7b0] sm:$0xff] }
 0x1fa   :  { %2464 = vmatpush1.bf16.msra.mxu0 %v6420_v45  ;;  %2424 = vmatprep.subr.bf16.mxu1 %v6285_v46  ;;  %v6364_v45 = vcombine.low %v800_v33, %v804_v34  ;;  %v6492_v46 = vcombine.low %v928_v35, %v932_v36  ;;  %v6485_v48 = vcombine.high %v920_v43, %v924_v44  ;;  %v744_v34 = vld [vmem:[%s10426_s5 + $0x210] sm:$0xff] }
 0x1fb   :  { %2465 = vmatprep.subr.bf16.mxu0 %v6413_v47  ;;  %v6357_v47 = vcombine.high %v792_v41, %v796_v42  ;;  %v748_v35 = vld [vmem:[%s10426_s5 + $0x230] sm:$0xff] }
 0x1fc   :  { %v872_v36 = vld [vmem:[%s10426_s5 + $0x610] sm:$0xff] }
 0x1fd   :  { %2425 = vmatpush1.bf16.msra.mxu1 %v6284_v54  ;;  %v916_v54 = vld [vmem:[%s10426_s5 + $0x770] sm:$0xff] }
 0x1fe   :  { %2466 = vmatpush1.bf16.msra.mxu0 %v6412_v55  ;;  %2426 = vmatprep.subr.bf16.mxu1 %v6277_v56  ;;  %v6356_v55 = vcombine.low %v792_v41, %v796_v42  ;;  %v6484_v56 = vcombine.low %v920_v43, %v924_v44  ;;  %v6477_v58 = vcombine.high %v912_v53, %v916_v54  ;;  %v737_v42 = vld [vmem:[%s10426_s5 + $0x1d8] sm:$0xff] }
 0x1ff   :  { %2467 = vmatprep.subr.bf16.mxu0 %v6405_v57  ;;  %v6349_v57 = vcombine.high %v784_v49, %v788_v51  ;;  %v741_v43 = vld [vmem:[%s10426_s5 + $0x1f8] sm:$0xff] }
 0x200   :  { %v865_v44 = vld [vmem:[%s10426_s5 + $0x5d8] sm:$0xff] }
 0x201   :  { %2427 = vmatpush1.bf16.msra.mxu1 %v6276_v62  ;;  %v908_v62 = vld [vmem:[%s10426_s5 + $0x730] sm:$0xff] }
 0x202   :  { %2468 = vmatpush1.bf16.msra.mxu0 %v6404_v63  ;;  %2428 = vmatprep.subr.bf16.mxu1 %v6269_v0  ;;  %v6348_v63 = vcombine.low %v784_v49, %v788_v51  ;;  %v6476_v0 = vcombine.low %v912_v53, %v916_v54  ;;  %v6469_v2 = vcombine.high %v904_v61, %v908_v62  ;;  %v729_v51 = vld [vmem:[%s10426_s5 + $0x198] sm:$0xff] }
 0x203   :  { %2469 = vmatprep.subr.bf16.mxu0 %v6397_v1  ;;  %v6341_v1 = vcombine.high %v776_v59, %v780_v60  ;;  %v733_v53 = vld [vmem:[%s10426_s5 + $0x1b8] sm:$0xff]  ;;  %v6302_v54 = vcombine.low %v737_v42, %v741_v43 }
 0x205   :  { %2429 = vmatpush1.bf16.msra.mxu1 %v6268_v6  ;;  %v900_v6 = vld [vmem:[%s10426_s5 + $0x6f0] sm:$0xff] }
 0x206   :  { %2470 = vmatpush1.bf16.msra.mxu0 %v6396_v7  ;;  %2430 = vmatprep.subr.bf16.mxu1 %v6261_v8  ;;  %v6340_v7 = vcombine.low %v776_v59, %v780_v60  ;;  %v6468_v8 = vcombine.low %v904_v61, %v908_v62  ;;  %v6461_v10 = vcombine.high %v896_v5, %v900_v6  ;;  %v721_v59 = vld [vmem:[%s10426_s5 + $0x158] sm:$0xff] }
 0x207   :  { %2471 = vmatprep.subr.bf16.mxu0 %v6389_v9  ;;  %v6333_v9 = vcombine.high %v768_v3, %v772_v4  ;;  %v725_v60 = vld [vmem:[%s10426_s5 + $0x178] sm:$0xff] }
 0x208   :  { %v849_v62 = vld [vmem:[%s10426_s5 + $0x558] sm:$0xff] }
 0x209   :  { %2431 = vmatpush1.bf16.msra.mxu1 %v6260_v18  ;;  %v892_v18 = vld [vmem:[%s10426_s5 + $0x6b0] sm:$0xff] }
 0x20a   :  { %2472 = vmatpush1.bf16.msra.mxu0 %v6388_v19  ;;  %2432 = vmatprep.subr.bf16.mxu1 %v6253_v20  ;;  %v6332_v19 = vcombine.low %v768_v3, %v772_v4  ;;  %v6460_v20 = vcombine.low %v896_v5, %v900_v6  ;;  %v6453_v22 = vcombine.high %v888_v17, %v892_v18  ;;  %v713_v4 = vld [vmem:[%s10426_s5 + $0x118] sm:$0xff] }
 0x20b   :  { %2473 = vmatprep.subr.bf16.mxu0 %v6381_v21  ;;  %v6325_v21 = vcombine.high %v760_v11, %v764_v12  ;;  %v717_v5 = vld [vmem:[%s10426_s5 + $0x138] sm:$0xff] }
 0x20c   :  { %v845_v6 = vld [vmem:[%s10426_s5 + $0x538] sm:$0xff] }
 0x20d   :  { %2433 = vmatpush1.bf16.msra.mxu1 %v6252_v26  ;;  %v884_v26 = vld [vmem:[%s10426_s5 + $0x670] sm:$0xff] }
 0x20e   :  { %2474 = vmatpush1.bf16.msra.mxu0 %v6380_v27  ;;  %2434 = vmatprep.subr.bf16.mxu1 %v6245_v29  ;;  %v6324_v27 = vcombine.low %v760_v11, %v764_v12  ;;  %v6452_v29 = vcombine.low %v888_v17, %v892_v18  ;;  %v6445_v33 = vcombine.high %v880_v25, %v884_v26  ;;  %v709_v11 = vld [vmem:[%s10426_s5 + $0xf8] sm:$0xff] }
 0x20f   :  { %2475 = vmatprep.subr.bf16.mxu0 %v6373_v32  ;;  %v6317_v32 = vcombine.high %v752_v23, %v756_v24  ;;  %v833_v12 = vld [vmem:[%s10426_s5 + $0x4d8] sm:$0xff]  ;;  %v6278_v18 = vcombine.low %v713_v4, %v717_v5 }
 0x210   :  { %v837_v17 = vld [vmem:[%s10426_s5 + $0x4f8] sm:$0xff] }
 0x211   :  { %2435 = vmatpush1.bf16.msra.mxu1 %v6244_v37  ;;  %v876_v37 = vld [vmem:[%s10426_s5 + $0x630] sm:$0xff] }
 0x212   :  { %2476 = vmatpush1.bf16.msra.mxu0 %v6372_v38  ;;  %2436 = vmatprep.subr.bf16.mxu1 %v6365_v39  ;;  %v6316_v38 = vcombine.low %v752_v23, %v756_v24  ;;  %v6444_v39 = vcombine.low %v880_v25, %v884_v26  ;;  %v6437_v41 = vcombine.high %v872_v36, %v876_v37  ;;  %v701_v23 = vld [vmem:[%s10426_s5 + $0xb8] sm:$0xff] }
 0x213   :  { %2477 = vmatprep.subr.bf16.mxu0 %v6493_v40  ;;  %v6309_v40 = vcombine.high %v744_v34, %v748_v35  ;;  %v825_v24 = vld [vmem:[%s10426_s5 + $0x498] sm:$0xff] }
 0x214   :  { %v829_v25 = vld [vmem:[%s10426_s5 + $0x4b8] sm:$0xff] }
 0x215   :  { %2437 = vmatpush2.bf16.msra.mxu1 %v6364_v45  ;;  %v869_v45 = vld [vmem:[%s10426_s5 + $0x5f8] sm:$0xff] }
 0x216   :  { %2478 = vmatpush2.bf16.msra.mxu0 %v6492_v46  ;;  %2438 = vmatprep.subr.bf16.mxu1 %v6357_v47  ;;  %v6308_v46 = vcombine.low %v744_v34, %v748_v35  ;;  %v6436_v47 = vcombine.low %v872_v36, %v876_v37  ;;  %v6431_v49 = vcombine.high %v865_v44, %v869_v45  ;;  %v693_v34 = vld [vmem:[%s10426_s5 + $0x78] sm:$0xff] }
 0x217   :  { %2479 = vmatprep.subr.bf16.mxu0 %v6485_v48  ;;  %v6303_v48 = vcombine.high %v737_v42, %v741_v43  ;;  %v817_v35 = vld [vmem:[%s10426_s5 + $0x458] sm:$0xff] }
 0x218   :  { %v821_v36 = vld [vmem:[%s10426_s5 + $0x478] sm:$0xff] }
 0x219   :  { %2439 = vmatpush2.bf16.msra.mxu1 %v6356_v55  ;;  %v857_v55 = vld [vmem:[%s10426_s5 + $0x598] sm:$0xff] }
 0x21a   :  { %2480 = vmatpush2.bf16.msra.mxu0 %v6484_v56  ;;  %2440 = vmatprep.subr.bf16.mxu1 %v6349_v57  ;;  %v861_v56 = vld [vmem:[%s10426_s5 + $0x5b8] sm:$0xff]  ;;  %v6430_v57 = vcombine.low %v865_v44, %v869_v45 }
 0x21b   :  { %2481 = vmatprep.subr.bf16.mxu0 %v6477_v58  ;;  %v6295_v58 = vcombine.high %v729_v51, %v733_v53  ;;  %v6423_v61 = vcombine.high %v857_v55, %v861_v56  ;;  %v685_v42 = vld [vmem:[%s10426_s5 + $0x38] sm:$0xff] }
 0x21c   :  { %v809_v43 = vld [vmem:[%s10426_s5 + $0x418] sm:$0xff] }
 0x21d   :  { %2441 = vmatpush2.bf16.msra.mxu1 %v6348_v63  ;;  %v853_v63 = vld [vmem:[%s10426_s5 + $0x578] sm:$0xff] }
 0x21e   :  { %2482 = vmatpush2.bf16.msra.mxu0 %v6476_v0  ;;  %2442 = vmatprep.subr.bf16.mxu1 %v6341_v1  ;;  %v6294_v0 = vcombine.low %v729_v51, %v733_v53  ;;  %v6422_v1 = vcombine.low %v857_v55, %v861_v56  ;;  %v6415_v3 = vcombine.high %v849_v62, %v853_v63  ;;  %v813_v44 = vld [vmem:[%s10426_s5 + $0x438] sm:$0xff] }
 0x21f   :  { %2483 = vmatprep.subr.bf16.mxu0 %v6469_v2  ;;  %v6287_v2 = vcombine.high %v721_v59, %v725_v60  ;;  %v805_v51 = vld [vmem:[%s10426_s5 + $0x3f8] sm:$0xff]  ;;  %v6374_v56 = vcombine.low %v809_v43, %v813_v44 }
 0x220   :  { %v929_v53 = vld [vmem:[%s10426_s5 + $0x7d8] sm:$0xff] }
 0x221   :  { %2443 = vmatpush2.bf16.msra.mxu1 %v6340_v7  ;;  %v6414_v7 = vcombine.low %v849_v62, %v853_v63  ;;  %v925_v62 = vld [vmem:[%s10426_s5 + $0x7b8] sm:$0xff] }
 0x222   :  { %2484 = vmatpush2.bf16.msra.mxu0 %v6468_v8  ;;  %2444 = vmatprep.subr.bf16.mxu1 %v6333_v9  ;;  %v6279_v8 = vcombine.high %v713_v4, %v717_v5  ;;  %v789_v4 = vld [vmem:[%s10426_s5 + $0x378] sm:$0xff] }
 0x223   :  { %2485 = vmatprep.subr.bf16.mxu0 %v6461_v10  ;;  %v705_v10 = vld [vmem:[%s10426_s5 + $0xd8] sm:$0xff] }
 0x224   :  { %v6270_v26 = vcombine.low %v705_v10, %v709_v11  ;;  %v913_v5 = vld [vmem:[%s10426_s5 + $0x758] sm:$0xff] }
 0x225   :  { %2445 = vmatpush2.bf16.msra.mxu1 %v6332_v19 }
 0x226   :  { %2486 = vmatpush2.bf16.msra.mxu0 %v6460_v20  ;;  %2446 = vmatprep.subr.bf16.mxu1 %v6325_v21  ;;  %v6271_v20 = vcombine.high %v705_v10, %v709_v11  ;;  %v6399_v21 = vcombine.high %v833_v12, %v837_v17  ;;  %v781_v10 = vld [vmem:[%s10426_s5 + $0x338] sm:$0xff] }
 0x227   :  { %2487 = vmatprep.subr.bf16.mxu0 %v6453_v22  ;;  %v697_v22 = vld [vmem:[%s10426_s5 + $0x98] sm:$0xff] }
 0x228   :  { %v6262_v37 = vcombine.low %v697_v22, %v701_v23  ;;  %v905_v11 = vld [vmem:[%s10426_s5 + $0x718] sm:$0xff] }
 0x229   :  { %2447 = vmatpush2.bf16.msra.mxu1 %v6324_v27  ;;  %v6398_v27 = vcombine.low %v833_v12, %v837_v17  ;;  %v909_v12 = vld [vmem:[%s10426_s5 + $0x738] sm:$0xff] }
 0x22a   :  { %2488 = vmatpush2.bf16.msra.mxu0 %v6452_v29  ;;  %2448 = vmatprep.subr.bf16.mxu1 %v6317_v32  ;;  %v6263_v29 = vcombine.high %v697_v22, %v701_v23  ;;  %v6391_v32 = vcombine.high %v825_v24, %v829_v25  ;;  %v773_v22 = vld [vmem:[%s10426_s5 + $0x2f8] sm:$0xff] }
 0x22b   :  { %2489 = vmatprep.subr.bf16.mxu0 %v6445_v33  ;;  %v689_v33 = vld [vmem:[%s10426_s5 + $0x58] sm:$0xff] }
 0x22c   :  { %v6254_v45 = vcombine.low %v689_v33, %v693_v34  ;;  %v897_v23 = vld [vmem:[%s10426_s5 + $0x6d8] sm:$0xff] }
 0x22d   :  { %2449 = vmatpush2.bf16.msra.mxu1 %v6316_v38  ;;  %v6390_v38 = vcombine.low %v825_v24, %v829_v25  ;;  %v901_v24 = vld [vmem:[%s10426_s5 + $0x6f8] sm:$0xff] }
 0x22e   :  { %2490 = vmatpush2.bf16.msra.mxu0 %v6444_v39  ;;  %2450 = vmatprep.subr.bf16.mxu1 %v6309_v40  ;;  %v6255_v39 = vcombine.high %v689_v33, %v693_v34  ;;  %v6383_v40 = vcombine.high %v817_v35, %v821_v36  ;;  %v765_v33 = vld [vmem:[%s10426_s5 + $0x2b8] sm:$0xff] }
 0x22f   :  { %2491 = vmatprep.subr.bf16.mxu0 %v6437_v41  ;;  %v681_v41 = vld [vmem:[%s10426_s5 + $0x18] sm:$0xff] }
 0x230   :  { %v6246_v55 = vcombine.low %v681_v41, %v685_v42  ;;  %v889_v34 = vld [vmem:[%s10426_s5 + $0x698] sm:$0xff] }
 0x231   :  { %2451 = vmatpush2.bf16.msra.mxu1 %v6308_v46  ;;  %v6382_v46 = vcombine.low %v817_v35, %v821_v36  ;;  %v893_v35 = vld [vmem:[%s10426_s5 + $0x6b8] sm:$0xff] }
 0x232   :  { %2492 = vmatpush2.bf16.msra.mxu0 %v6436_v47  ;;  %2502 = vmatprep.subr.bf16.mxu1 %v6303_v48  ;;  %v6247_v47 = vcombine.high %v681_v41, %v685_v42  ;;  %v6375_v48 = vcombine.high %v809_v43, %v813_v44  ;;  %v757_v41 = vld [vmem:[%s10426_s5 + $0x278] sm:$0xff] }
 0x233   :  { %2543 = vmatprep.subr.bf16.mxu0 %v6431_v49  ;;  %v801_v49 = vld [vmem:[%s10426_s5 + $0x3d8] sm:$0xff] }
 0x234   :  { %2453 = vmatmul.mubr.bf16.vlgmr.msra.gmra.mxu1 %v8367_v15  ;;  %v6366_v63 = vcombine.low %v801_v49, %v805_v51  ;;  %v881_v42 = vld [vmem:[%s10426_s5 + $0x658] sm:$0xff] }
 0x235   :  { %2494 = vmatmul.mubr.bf16.vlgmr.msra.gmra.mxu0 %v8369_v16  ;;  %2503 = vmatpush1.bf16.msra.mxu1 %v6302_v54  ;;  %v933_v54 = vld [vmem:[%s10426_s5 + $0x7f8] sm:$0xff] }
 0x236   :  { %2534 = vmatprep.mubr.bf16.mxu1 %v8363_v13  ;;  %2544 = vmatpush1.bf16.msra.mxu0 %v6430_v57  ;;  %v841_v13 = vld [vmem:[%s10426_s5 + $0x518] sm:$0xff]  ;;  %v6367_v57 = vcombine.high %v801_v49, %v805_v51 }
 0x237   :  { %2575 = vmatprep.mubr.bf16.mxu0 %v8365_v14  ;;  %2504 = vmatprep.subr.bf16.mxu1 %v6295_v58  ;;  %v6286_v14 = vcombine.low %v721_v59, %v725_v60  ;;  %v6407_v9 = vcombine.high %v841_v13, %v845_v6  ;;  %v6406_v19 = vcombine.low %v841_v13, %v845_v6  ;;  %v793_v59 = vld [vmem:[%s10426_s5 + $0x398] sm:$0xff] }
 0x238   :  { %2545 = vmatprep.subr.bf16.mxu0 %v6423_v61  ;;  %v6495_v58 = vcombine.high %v929_v53, %v933_v54  ;;  %v797_v60 = vld [vmem:[%s10426_s5 + $0x3b8] sm:$0xff] }
 0x239   :  { %2505 = vmatpush1.bf16.msra.mxu1 %v6294_v0  ;;  %v921_v61 = vld [vmem:[%s10426_s5 + $0x798] sm:$0xff]  ;;  %v6494_v0 = vcombine.low %v929_v53, %v933_v54  ;;  %v6358_v6 = vcombine.low %v793_v59, %v797_v60 }
 0x23a   :  { %2546 = vmatpush1.bf16.msra.mxu0 %v6422_v1  ;;  %2506 = vmatprep.subr.bf16.mxu1 %v6287_v2  ;;  %v6359_v1 = vcombine.high %v793_v59, %v797_v60  ;;  %v6487_v2 = vcombine.high %v921_v61, %v925_v62  ;;  %v917_v13 = vld [vmem:[%s10426_s5 + $0x778] sm:$0xff]  ;;  %v7160_v60 = vld [vmem:[%s10428_s7 + $0x18c] ss:$28 sps:$4 sm:$0xff]  }
 0x23b   :  { %2547 = vmatprep.subr.bf16.mxu0 %v6415_v3  ;;  %v785_v3 = vld [vmem:[%s10426_s5 + $0x358] sm:$0xff] }
 0x23c   :  { %v6350_v17 = vcombine.low %v785_v3, %v789_v4  ;;  %v885_v43 = vld [vmem:[%s10426_s5 + $0x678] sm:$0xff] }
 0x23d   :  { %2507 = vmatpush1.bf16.msra.mxu1 %v6286_v14  ;;  %v6486_v14 = vcombine.low %v921_v61, %v925_v62  ;;  %v749_v49 = vld [vmem:[%s10426_s5 + $0x238] sm:$0xff]  ;;  %v7172_v61 = vld [vmem:[%s10428_s7 + $0x50c] ss:$28 sps:$4 sm:$0xff]  }
 0x23e   :  { %2548 = vmatpush1.bf16.msra.mxu0 %v6414_v7  ;;  %2508 = vmatprep.subr.bf16.mxu1 %v6279_v8  ;;  %v6351_v7 = vcombine.high %v785_v3, %v789_v4  ;;  %v6479_v8 = vcombine.high %v913_v5, %v917_v13  ;;  %v873_v51 = vld [vmem:[%s10426_s5 + $0x618] sm:$0xff]  ;;  %v7158_v62 = vld [vmem:[%s10428_s7 + $0x188] ss:$28 sps:$4 sm:$0xff]   ;;  %v7178_v3 = vld [vmem:[%s10428_s7 + $0x4d4] ss:$28 sps:$4 sm:$0xff]  }
 0x23f   :  { %2549 = vmatprep.subr.bf16.mxu0 %v6407_v9  ;;  %v777_v9 = vld [vmem:[%s10426_s5 + $0x318] sm:$0xff] }
 0x240   :  { %v6342_v25 = vcombine.low %v777_v9, %v781_v10  ;;  %v877_v53 = vld [vmem:[%s10426_s5 + $0x638] sm:$0xff] }
 0x241   :  { %2509 = vmatpush1.bf16.msra.mxu1 %v6278_v18  ;;  %v6478_v18 = vcombine.low %v913_v5, %v917_v13  ;;  %v6438_v59 = vcombine.low %v873_v51, %v877_v53  ;;  %v7161_v13 = vld [vmem:[%s10428_s7 + $0x150] ss:$28 sps:$4 sm:$0xff]  }
 0x242   :  { %2550 = vmatpush1.bf16.msra.mxu0 %v6406_v19  ;;  %2510 = vmatprep.subr.bf16.mxu1 %v6271_v20  ;;  %v6343_v19 = vcombine.high %v777_v9, %v781_v10  ;;  %v6471_v20 = vcombine.high %v905_v11, %v909_v12 }
 0x243   :  { %2551 = vmatprep.subr.bf16.mxu0 %v6399_v21  ;;  %v769_v21 = vld [vmem:[%s10426_s5 + $0x2d8] sm:$0xff] }
 0x244   :  { %v6334_v36 = vcombine.low %v769_v21, %v773_v22 }
 0x245   :  { %2511 = vmatpush1.bf16.msra.mxu1 %v6270_v26  ;;  %v6470_v26 = vcombine.low %v905_v11, %v909_v12  ;;  %v7164_v12 = vld [vmem:[%s10428_s7 + $0x118] ss:$28 sps:$4 sm:$0xff]  }
 0x246   :  { %2552 = vmatpush1.bf16.msra.mxu0 %v6398_v27  ;;  %2512 = vmatprep.subr.bf16.mxu1 %v6263_v29  ;;  %v6335_v27 = vcombine.high %v769_v21, %v773_v22  ;;  %v6463_v29 = vcombine.high %v897_v23, %v901_v24  ;;  %v7190_v22 = vld [vmem:[%s10428_s7 + $0x464] ss:$28 sps:$4 sm:$0xff]  }
 0x247   :  { %2553 = vmatprep.subr.bf16.mxu0 %v6391_v32  ;;  %v761_v32 = vld [vmem:[%s10426_s5 + $0x298] sm:$0xff] }
 0x248   :  { %v6326_v44 = vcombine.low %v761_v32, %v765_v33 }
 0x249   :  { %2513 = vmatpush1.bf16.msra.mxu1 %v6262_v37  ;;  %v6462_v37 = vcombine.low %v897_v23, %v901_v24  ;;  %v7167_v24 = vld [vmem:[%s10428_s7 + $0xe0] ss:$28 sps:$4 sm:$0xff]  }
 0x24a   :  { %2554 = vmatpush1.bf16.msra.mxu0 %v6390_v38  ;;  %2514 = vmatprep.subr.bf16.mxu1 %v6255_v39  ;;  %v6327_v38 = vcombine.high %v761_v32, %v765_v33  ;;  %v6455_v39 = vcombine.high %v889_v34, %v893_v35  ;;  %v7181_v32 = vld [vmem:[%s10428_s7 + $0x74] ss:$28 sps:$4 sm:$0xff]   ;;  %v7194_v33 = vld [vmem:[%s10428_s7 + $0x428] ss:$28 sps:$4 sm:$0xff]  }
 0x24b   :  { %2555 = vmatprep.subr.bf16.mxu0 %v6383_v40  ;;  %v753_v40 = vld [vmem:[%s10426_s5 + $0x258] sm:$0xff] }
 0x24c   :  { %v6318_v54 = vcombine.low %v753_v40, %v757_v41 }
 0x24d   :  { %2515 = vmatpush1.bf16.msra.mxu1 %v6254_v45  ;;  %v6454_v45 = vcombine.low %v889_v34, %v893_v35  ;;  %v7202_v34 = vld [vmem:[%s10428_s7 + $0x3f4] ss:$28 sps:$4 sm:$0xff]  }
 0x24e   :  { %2556 = vmatpush1.bf16.msra.mxu0 %v6382_v46  ;;  %2516 = vmatprep.subr.bf16.mxu1 %v6247_v47  ;;  %v6319_v46 = vcombine.high %v753_v40, %v757_v41  ;;  %v6447_v47 = vcombine.high %v881_v42, %v885_v43  ;;  %v7179_v35 = vld [vmem:[%s10428_s7 + $0x70] ss:$28 sps:$4 sm:$0xff]   ;;  %v7193_v40 = vld [vmem:[%s10428_s7 + $0x4] ss:$28 sps:$4 sm:$0xff]   ;;  %v7206_v41 = vld [vmem:[%s10428_s7 + $0x3b8] ss:$28 sps:$4 sm:$0xff]  }
 0x24f   :  { %2557 = vmatprep.subr.bf16.mxu0 %v6375_v48  ;;  %v745_v48 = vld [vmem:[%s10426_s5 + $0x218] sm:$0xff] }
 0x251   :  { %2517 = vmatpush1.bf16.msra.mxu1 %v6246_v55  ;;  %v6446_v55 = vcombine.low %v881_v42, %v885_v43  ;;  %v7214_v42 = vld [vmem:[%s10428_s7 + $0x384] ss:$28 sps:$4 sm:$0xff]  }
 0x252   :  { %2558 = vmatpush1.bf16.msra.mxu0 %v6374_v56  ;;  %2518 = vmatprep.subr.bf16.mxu1 %v6367_v57  ;;  %v6311_v56 = vcombine.high %v745_v48, %v749_v49  ;;  %v6439_v57 = vcombine.high %v873_v51, %v877_v53  ;;  %v7191_v43 = vld [vmem:[%s10428_s7] ss:$28 sps:$4 sm:$0xff]   ;;  %v7226_v51 = vld [vmem:[%s10428_s7 + $0x694] ss:$28 sps:$4 sm:$0xff]  }
 0x253   :  { %2559 = vmatprep.subr.bf16.mxu0 %v6495_v58  ;;  %v6310_v58 = vcombine.low %v745_v48, %v749_v49  ;;  %v7205_v48 = vld [vmem:[%s10428_s7 + $0x314] ss:$28 sps:$4 sm:$0xff]   ;;  %v7218_v49 = vld [vmem:[%s10428_s7 + $0x6c8] ss:$28 sps:$4 sm:$0xff]  }
 0x254   :  { %v7203_v53 = vld [vmem:[%s10428_s7 + $0x310] ss:$28 sps:$4 sm:$0xff]  }
 0x255   :  { %2519 = vmatpush2.bf16.msra.mxu1 %v6366_v63  ;;  %v8949_v63 = vld [vmem:[%s10427_s6] sm:$0xff] }
 0x256   :  { %2560 = vmatpush2.bf16.msra.mxu0 %v6494_v0  ;;  %2520 = vmatprep.subr.bf16.mxu1 %v6359_v1  ;;  %v7163_v0 = vld [vmem:[%s10428_s7 + $0x154] ss:$28 sps:$4 sm:$0xff]   ;;  %v7170_v1 = vld [vmem:[%s10428_s7 + $0x508] ss:$28 sps:$4 sm:$0xff]  }
 0x257   :  { %2561 = vmatprep.subr.bf16.mxu0 %v6487_v2  ;;  %v943_v2 = vrot.slane %v8949_v63, %v8142_v31 }
 0x259   :  { %2521 = vmatpush2.bf16.msra.mxu1 %v6358_v6 }
 0x25a   :  { %2562 = vmatpush2.bf16.msra.mxu0 %v6486_v14  ;;  %2522 = vmatprep.subr.bf16.mxu1 %v6351_v7  ;;  %v7166_v7 = vld [vmem:[%s10428_s7 + $0x11c] ss:$28 sps:$4 sm:$0xff]  }
 0x25b   :  { %2563 = vmatprep.subr.bf16.mxu0 %v6479_v8 }
 0x25d   :  { %2523 = vmatpush2.bf16.msra.mxu1 %v6350_v17 }
 0x25e   :  { %2564 = vmatpush2.bf16.msra.mxu0 %v6478_v18  ;;  %2524 = vmatprep.subr.bf16.mxu1 %v6343_v19  ;;  %v7169_v19 = vld [vmem:[%s10428_s7 + $0xe4] ss:$28 sps:$4 sm:$0xff]  }
 0x25f   :  { %2565 = vmatprep.subr.bf16.mxu0 %v6471_v20  ;;  %v7182_v20 = vld [vmem:[%s10428_s7 + $0x498] ss:$28 sps:$4 sm:$0xff]  }
 0x261   :  { %2525 = vmatpush2.bf16.msra.mxu1 %v6342_v25  ;;  %v7175_v25 = vld [vmem:[%s10428_s7 + $0xac] ss:$28 sps:$4 sm:$0xff]  }
 0x262   :  { %2566 = vmatpush2.bf16.msra.mxu0 %v6470_v26  ;;  %2526 = vmatprep.subr.bf16.mxu1 %v6335_v27  ;;  %v7188_v26 = vld [vmem:[%s10428_s7 + $0x460] ss:$28 sps:$4 sm:$0xff]   ;;  %v7196_v27 = vld [vmem:[%s10428_s7 + $0x42c] ss:$28 sps:$4 sm:$0xff]  }
 0x263   :  { %2567 = vmatprep.subr.bf16.mxu0 %v6463_v29  ;;  %v7173_v29 = vld [vmem:[%s10428_s7 + $0xa8] ss:$28 sps:$4 sm:$0xff]  }
 0x265   :  { %2527 = vmatpush2.bf16.msra.mxu1 %v6334_v36  ;;  %v7187_v36 = vld [vmem:[%s10428_s7 + $0x3c] ss:$28 sps:$4 sm:$0xff]  }
 0x266   :  { %2568 = vmatpush2.bf16.msra.mxu0 %v6462_v37  ;;  %2528 = vmatprep.subr.bf16.mxu1 %v6327_v38  ;;  %v7200_v37 = vld [vmem:[%s10428_s7 + $0x3f0] ss:$28 sps:$4 sm:$0xff]   ;;  %v7208_v38 = vld [vmem:[%s10428_s7 + $0x3bc] ss:$28 sps:$4 sm:$0xff]  }
 0x267   :  { %2569 = vmatprep.subr.bf16.mxu0 %v6455_v39  ;;  %v7185_v39 = vld [vmem:[%s10428_s7 + $0x38] ss:$28 sps:$4 sm:$0xff]  }
 0x269   :  { %2529 = vmatpush2.bf16.msra.mxu1 %v6326_v44  ;;  %v7199_v44 = vld [vmem:[%s10428_s7 + $0x34c] ss:$28 sps:$4 sm:$0xff]  }
 0x26a   :  { %2570 = vmatpush2.bf16.msra.mxu0 %v6454_v45  ;;  %2530 = vmatprep.subr.bf16.mxu1 %v6319_v46  ;;  %v7212_v45 = vld [vmem:[%s10428_s7 + $0x380] ss:$28 sps:$4 sm:$0xff]   ;;  %v7220_v46 = vld [vmem:[%s10428_s7 + $0x6cc] ss:$28 sps:$4 sm:$0xff]  }
 0x26b   :  { %2571 = vmatprep.subr.bf16.mxu0 %v6447_v47  ;;  %v7197_v47 = vld [vmem:[%s10428_s7 + $0x348] ss:$28 sps:$4 sm:$0xff]  }
 0x26d   :  { %2531 = vmatpush2.bf16.msra.mxu1 %v6318_v54  ;;  %v7211_v54 = vld [vmem:[%s10428_s7 + $0x2dc] ss:$28 sps:$4 sm:$0xff]  }
 0x26e   :  { %2572 = vmatpush2.bf16.msra.mxu0 %v6446_v55  ;;  %2532 = vmatprep.subr.bf16.mxu1 %v6311_v56  ;;  %v7224_v55 = vld [vmem:[%s10428_s7 + $0x690] ss:$28 sps:$4 sm:$0xff]   ;;  %v7232_v56 = vld [vmem:[%s10428_s7 + $0x65c] ss:$28 sps:$4 sm:$0xff]  }
 0x26f   :  { %2573 = vmatprep.subr.bf16.mxu0 %v6439_v57  ;;  %v7209_v57 = vld [vmem:[%s10428_s7 + $0x2d8] ss:$28 sps:$4 sm:$0xff]  }
 0x271   :  { %2533 = vmatpush2.bf16.msra.mxu1 %v6310_v58  ;;  %v7217_v58 = vld [vmem:[%s10428_s7 + $0x2a4] ss:$28 sps:$4 sm:$0xff]  }
 0x272   :  { %2574 = vmatpush2.bf16.msra.mxu0 %v6438_v59  ;;  %5453 = vmatprep.subr.bf16.mxu1 %v7160_v60  ;;  %v7230_v59 = vld [vmem:[%s10428_s7 + $0x658] ss:$28 sps:$4 sm:$0xff]   ;;  %v7238_v60 = vld [vmem:[%s10428_s7 + $0x624] ss:$28 sps:$4 sm:$0xff]  }
 0x273   :  { %5494 = vmatprep.subr.bf16.mxu0 %v7172_v61  ;;  %v7215_v61 = vld [vmem:[%s10428_s7 + $0x2a0] ss:$28 sps:$4 sm:$0xff]  }
 0x274   :  { %2535 = vmatmul.mubr.bf16.vlgmr.msra.gmra.mxu1 %v8367_v15  ;;  %v8963_v4 = vpop.f32.mrf.mxu1  ;;  %v8965_v5 = vpop.f32.mrf.mxu0  ;;  %v7176_v15 = vld [vmem:[%s10428_s7 + $0x4d0] ss:$28 sps:$4 sm:$0xff]  }
 0x275   :  { %2576 = vmatmul.mubr.bf16.vlgmr.msra.gmra.mxu0 %v8369_v16  ;;  %5454 = vmatpush1.bf16.msra.mxu1 %v7158_v62  ;;  %v7184_v16 = vld [vmem:[%s10428_s7 + $0x49c] ss:$28 sps:$4 sm:$0xff]   ;;  %v7223_v62 = vld [vmem:[%s10428_s7 + $0x26c] ss:$28 sps:$4 sm:$0xff]  }
 0x276   :  { %v2292_v6 = vpop.f32.mrf.mxu1  ;;  %v2333_v14 = vpop.f32.mrf.mxu0  ;;  %5455 = vmatprep.subr.bf16.mxu1 %v7163_v0  ;;  %5495 = vmatpush1.bf16.msra.mxu0 %v7170_v1  ;;  %v7236_v0 = vld [vmem:[%s10428_s7 + $0x620] ss:$28 sps:$4 sm:$0xff]   ;;  %v7244_v1 = vld [vmem:[%s10428_s7 + $0x5ec] ss:$28 sps:$4 sm:$0xff]  }
 0x277   :  { %v2293_v8 = vadd.f32 %v2292_v6, %v943_v2  ;;  %5496 = vmatprep.subr.bf16.mxu0 %v7178_v3  ;;  %v7221_v2 = vld [vmem:[%s10428_s7 + $0x268] ss:$28 sps:$4 sm:$0xff]   ;;  %v939_v3 = vrot.slane %v8949_v63, %v8139_v30 }
 0x278   :  { %v2294_v9 = vpop.f32.mrf.mxu1  ;;  %v2335_v10 = vpop.f32.mrf.mxu0  ;;  %v7242_v6 = vld [vmem:[%s10428_s7 + $0x5e8] ss:$28 sps:$4 sm:$0xff]  }
 0x279   :  { %v2334_v11 = vadd.f32 %v2333_v14, %v2293_v8  ;;  %5456 = vmatpush1.bf16.msra.mxu1 %v7161_v13  ;;  %v7229_v13 = vld [vmem:[%s10428_s7 + $0x234] ss:$28 sps:$4 sm:$0xff]   ;;  %v7235_v8 = vld [vmem:[%s10428_s7 + $0x1fc] ss:$28 sps:$4 sm:$0xff]  }
 0x27a   :  { %v2295_v17 = vpop.f32.mrf.mxu1  ;;  %v2336_v18 = vpop.f32.mrf.mxu0  ;;  %5457 = vmatprep.subr.bf16.mxu1 %v7166_v7  ;;  %5497 = vmatpush1.bf16.msra.mxu0 %v7176_v15  ;;  %v7247_v14 = vld [vmem:[%s10428_s7 + $0x5b4] ss:$28 sps:$4 sm:$0xff]   ;;  %v2291_v15 = vadd.f32 %v8963_v4, %v939_v3  ;;  %v7250_v9 = vld [vmem:[%s10428_s7 + $0x57c] ss:$28 sps:$4 sm:$0xff]  }
 0x27b   :  { %v2585_v21 = vmax.f32 %v2334_v11, 0.0  ;;  %5498 = vmatprep.subr.bf16.mxu0 %v7184_v16  ;;  %v7227_v7 = vld [vmem:[%s10428_s7 + $0x230] ss:$28 sps:$4 sm:$0xff]   ;;  %v7233_v4 = vld [vmem:[%s10428_s7 + $0x1f8] ss:$28 sps:$4 sm:$0xff]  }
 0x27c   :  { %v7245_v16 = vld [vmem:[%s10428_s7 + $0x5b0] ss:$28 sps:$4 sm:$0xff]   ;;  %v2332_v10 = vadd.f32 %v8965_v5, %v2291_v15  ;;  %v7241_v11 = vld [vmem:[%s10428_s7 + $0x1c4] ss:$28 sps:$4 sm:$0xff]  }
 0x27d   :  { %v8992_v23 = vpack.c.bf16 %v2585_v21, %v2585_v21  ;;  %5458 = vmatpush1.bf16.msra.mxu1 %v7164_v12  ;;  %v7248_v12 = vld [vmem:[%s10428_s7 + $0x578] ss:$28 sps:$4 sm:$0xff]   ;;  %v7253_v17 = vld [vmem:[%s10428_s7 + $0x544] ss:$28 sps:$4 sm:$0xff]   ;;  %v7304_v21 = vld [vmem:[%s10428_s7 + $0xc0c] ss:$28 sps:$4 sm:$0xff]  }
 0x27e   :  { %5459 = vmatprep.subr.bf16.mxu1 %v7169_v19  ;;  %5499 = vmatpush1.bf16.msra.mxu0 %v7182_v20  ;;  %v7239_v5 = vld [vmem:[%s10428_s7 + $0x1c0] ss:$28 sps:$4 sm:$0xff]   ;;  %v2584_v18 = vmax.f32 %v2332_v10, 0.0  ;;  %v7256_v20 = vld [vmem:[%s10428_s7 + $0x88c] ss:$28 sps:$4 sm:$0xff]  }
 0x27f   :  { %5485 = vmatprep.mubr.bf16.mxu1 %v8992_v23  ;;  %5500 = vmatprep.subr.bf16.mxu0 %v7190_v22  ;;  %v7251_v19 = vld [vmem:[%s10428_s7 + $0x540] ss:$28 sps:$4 sm:$0xff]   ;;  %v947_v22 = vrot.slane %v8949_v63, %v8339_v50  ;;  %v7280_v15 = vld [vmem:[%s10428_s7 + $0xa4c] ss:$28 sps:$4 sm:$0xff]  }
 0x280   :  { %v7320_v3 = vld [vmem:[%s10428_s7 + $0xb60] ss:$28 sps:$4 sm:$0xff]  }
 0x281   :  { %5460 = vmatpush1.bf16.msra.mxu1 %v7167_v24  ;;  %v7254_v24 = vld [vmem:[%s10428_s7 + $0x888] ss:$28 sps:$4 sm:$0xff]   ;;  %v7340_v10 = vld [vmem:[%s10428_s7 + $0xabc] ss:$28 sps:$4 sm:$0xff]  }
 0x282   :  { %5461 = vmatprep.subr.bf16.mxu1 %v7175_v25  ;;  %5501 = vmatpush1.bf16.msra.mxu0 %v7188_v26  ;;  %v9160_v25 = vpack.c.bf16 %v2584_v18, %v2584_v18  ;;  %v7259_v26 = vld [vmem:[%s10428_s7 + $0x854] ss:$28 sps:$4 sm:$0xff]  }
 0x283   :  { %5502 = vmatprep.subr.bf16.mxu0 %v7196_v27  ;;  %v951_v27 = vrot.slane %v8949_v63, %v8345_v52  ;;  %v7284_v18 = vld [vmem:[%s10428_s7 + $0x9d8] ss:$28 sps:$4 sm:$0xff]  }
 0x285   :  { %5462 = vmatpush1.bf16.msra.mxu1 %v7173_v29 }
 0x286   :  { %5463 = vmatprep.subr.bf16.mxu1 %v7181_v32  ;;  %5503 = vmatpush1.bf16.msra.mxu0 %v7194_v33 }
 0x287   :  { %5504 = vmatprep.subr.bf16.mxu0 %v7202_v34  ;;  %v7257_v34 = vld [vmem:[%s10428_s7 + $0x850] ss:$28 sps:$4 sm:$0xff]  }
 0x289   :  { %5464 = vmatpush1.bf16.msra.mxu1 %v7179_v35 }
 0x28a   :  { %5465 = vmatprep.subr.bf16.mxu1 %v7187_v36  ;;  %5505 = vmatpush1.bf16.msra.mxu0 %v7200_v37  ;;  %v7262_v37 = vld [vmem:[%s10428_s7 + $0x81c] ss:$28 sps:$4 sm:$0xff]  }
 0x28b   :  { %5506 = vmatprep.subr.bf16.mxu0 %v7208_v38 }
 0x28d   :  { %5466 = vmatpush1.bf16.msra.mxu1 %v7185_v39 }
 0x28e   :  { %5467 = vmatprep.subr.bf16.mxu1 %v7193_v40  ;;  %5507 = vmatpush1.bf16.msra.mxu0 %v7206_v41 }
 0x28f   :  { %5508 = vmatprep.subr.bf16.mxu0 %v7214_v42 }
 0x291   :  { %5468 = vmatpush1.bf16.msra.mxu1 %v7191_v43  ;;  %v7260_v43 = vld [vmem:[%s10428_s7 + $0x818] ss:$28 sps:$4 sm:$0xff]  }
 0x292   :  { %5469 = vmatprep.subr.bf16.mxu1 %v7199_v44  ;;  %5509 = vmatpush1.bf16.msra.mxu0 %v7212_v45 }
 0x293   :  { %5510 = vmatprep.subr.bf16.mxu0 %v7220_v46 }
 0x295   :  { %5470 = vmatpush2.bf16.msra.mxu1 %v7197_v47  ;;  %v7265_v47 = vld [vmem:[%s10428_s7 + $0x7e4] ss:$28 sps:$4 sm:$0xff]  }
 0x296   :  { %5471 = vmatprep.subr.bf16.mxu1 %v7205_v48  ;;  %5511 = vmatpush2.bf16.msra.mxu0 %v7218_v49 }
 0x297   :  { %5512 = vmatprep.subr.bf16.mxu0 %v7226_v51  ;;  %v7263_v51 = vld [vmem:[%s10428_s7 + $0x7e0] ss:$28 sps:$4 sm:$0xff]  }
 0x299   :  { %5472 = vmatpush2.bf16.msra.mxu1 %v7203_v53  ;;  %v7302_v53 = vld [vmem:[%s10428_s7 + $0xc08] ss:$28 sps:$4 sm:$0xff]  }
 0x29a   :  { %5473 = vmatprep.subr.bf16.mxu1 %v7211_v54  ;;  %5513 = vmatpush2.bf16.msra.mxu0 %v7224_v55  ;;  %v7268_v55 = vld [vmem:[%s10428_s7 + $0x7ac] ss:$28 sps:$4 sm:$0xff]  }
 0x29b   :  { %5514 = vmatprep.subr.bf16.mxu0 %v7232_v56  ;;  %v7310_v56 = vld [vmem:[%s10428_s7 + $0xbd4] ss:$28 sps:$4 sm:$0xff]  }
 0x29d   :  { %5474 = vmatpush2.bf16.msra.mxu1 %v7209_v57  ;;  %v7266_v57 = vld [vmem:[%s10428_s7 + $0x7a8] ss:$28 sps:$4 sm:$0xff]  }
 0x29e   :  { %5475 = vmatprep.subr.bf16.mxu1 %v7217_v58  ;;  %5515 = vmatpush2.bf16.msra.mxu0 %v7230_v59  ;;  %v7308_v58 = vld [vmem:[%s10428_s7 + $0xbd0] ss:$28 sps:$4 sm:$0xff]  }
 0x29f   :  { %5516 = vmatprep.subr.bf16.mxu0 %v7238_v60  ;;  %v7271_v59 = vld [vmem:[%s10428_s7 + $0x774] ss:$28 sps:$4 sm:$0xff]   ;;  %v7316_v60 = vld [vmem:[%s10428_s7 + $0xb9c] ss:$28 sps:$4 sm:$0xff]  }
 0x2a1   :  { %5476 = vmatpush2.bf16.msra.mxu1 %v7215_v61  ;;  %v7269_v61 = vld [vmem:[%s10428_s7 + $0x770] ss:$28 sps:$4 sm:$0xff]  }
 0x2a2   :  { %5477 = vmatprep.subr.bf16.mxu1 %v7223_v62  ;;  %5517 = vmatpush2.bf16.msra.mxu0 %v7236_v0  ;;  %v7314_v62 = vld [vmem:[%s10428_s7 + $0xb98] ss:$28 sps:$4 sm:$0xff]  }
 0x2a3   :  { %5518 = vmatprep.subr.bf16.mxu0 %v7244_v1  ;;  %v7274_v0 = vld [vmem:[%s10428_s7 + $0x73c] ss:$28 sps:$4 sm:$0xff]   ;;  %v7322_v1 = vld [vmem:[%s10428_s7 + $0xb64] ss:$28 sps:$4 sm:$0xff]  }
 0x2a5   :  { %5478 = vmatpush2.bf16.msra.mxu1 %v7221_v2  ;;  %v7272_v2 = vld [vmem:[%s10428_s7 + $0x738] ss:$28 sps:$4 sm:$0xff]  }
 0x2a6   :  { %5479 = vmatprep.subr.bf16.mxu1 %v7229_v13  ;;  %5519 = vmatpush2.bf16.msra.mxu0 %v7242_v6  ;;  %v7277_v13 = vld [vmem:[%s10428_s7 + $0x704] ss:$28 sps:$4 sm:$0xff]   ;;  %v7328_v6 = vld [vmem:[%s10428_s7 + $0xb2c] ss:$28 sps:$4 sm:$0xff]  }
 0x2a7   :  { %5520 = vmatprep.subr.bf16.mxu0 %v7247_v14  ;;  %v7275_v14 = vld [vmem:[%s10428_s7 + $0x700] ss:$28 sps:$4 sm:$0xff]  }
 0x2a9   :  { %5480 = vmatpush2.bf16.msra.mxu1 %v7227_v7  ;;  %v7326_v7 = vld [vmem:[%s10428_s7 + $0xb28] ss:$28 sps:$4 sm:$0xff]  }
 0x2aa   :  { %5481 = vmatprep.subr.bf16.mxu1 %v7235_v8  ;;  %5521 = vmatpush2.bf16.msra.mxu0 %v7245_v16  ;;  %v7334_v8 = vld [vmem:[%s10428_s7 + $0xaf4] ss:$28 sps:$4 sm:$0xff]   ;;  %v7278_v16 = vld [vmem:[%s10428_s7 + $0xa48] ss:$28 sps:$4 sm:$0xff]  }
 0x2ab   :  { %5522 = vmatprep.subr.bf16.mxu0 %v7250_v9  ;;  %v7332_v9 = vld [vmem:[%s10428_s7 + $0xaf0] ss:$28 sps:$4 sm:$0xff]  }
 0x2ad   :  { %5482 = vmatpush2.bf16.msra.mxu1 %v7233_v4  ;;  %v7283_v4 = vld [vmem:[%s10428_s7 + $0xa14] ss:$28 sps:$4 sm:$0xff]  }
 0x2ae   :  { %5483 = vmatprep.subr.bf16.mxu1 %v7241_v11  ;;  %5523 = vmatpush2.bf16.msra.mxu0 %v7248_v12  ;;  %v7281_v11 = vld [vmem:[%s10428_s7 + $0xa10] ss:$28 sps:$4 sm:$0xff]   ;;  %v7338_v12 = vld [vmem:[%s10428_s7 + $0xab8] ss:$28 sps:$4 sm:$0xff]  }
 0x2af   :  { %5524 = vmatprep.subr.bf16.mxu0 %v7253_v17  ;;  %v7286_v17 = vld [vmem:[%s10428_s7 + $0x9dc] ss:$28 sps:$4 sm:$0xff]  }
 0x2b1   :  { %5484 = vmatpush2.bf16.msra.mxu1 %v7239_v5  ;;  %v7346_v5 = vld [vmem:[%s10428_s7 + $0xa84] ss:$28 sps:$4 sm:$0xff]  }
 0x2b2   :  { %5525 = vmatpush2.bf16.msra.mxu0 %v7251_v19  ;;  %5535 = vmatprep.subr.bf16.mxu1 %v7256_v20  ;;  %v7344_v19 = vld [vmem:[%s10428_s7 + $0xa80] ss:$28 sps:$4 sm:$0xff]  }
 0x2b3   :  { %5576 = vmatprep.subr.bf16.mxu0 %v7304_v21  ;;  %v7289_v20 = vld [vmem:[%s10428_s7 + $0x9a4] ss:$28 sps:$4 sm:$0xff]   ;;  %v7352_v21 = vld [vmem:[%s10428_s7 + $0xdcc] ss:$28 sps:$4 sm:$0xff]  }
 0x2b4   :  { %v2372_v29 = vpop.f32.mrf.mxu1  ;;  %v2413_v32 = vpop.f32.mrf.mxu0  ;;  %5486 = vmatmul.mubr.bf16.vlgmr.msra.gmra.mxu1 %v9160_v25 }
 0x2b5   :  { %v2373_v33 = vadd.f32 %v2372_v29, %v947_v22  ;;  %5536 = vmatpush1.bf16.msra.mxu1 %v7254_v24  ;;  %v7287_v22 = vld [vmem:[%s10428_s7 + $0x9a0] ss:$28 sps:$4 sm:$0xff]   ;;  %v7350_v24 = vld [vmem:[%s10428_s7 + $0xdc8] ss:$28 sps:$4 sm:$0xff]  }
 0x2b6   :  { %v2374_v35 = vpop.f32.mrf.mxu1  ;;  %v2415_v36 = vpop.f32.mrf.mxu0  ;;  %5537 = vmatprep.subr.bf16.mxu1 %v7259_v26  ;;  %v7292_v26 = vld [vmem:[%s10428_s7 + $0x96c] ss:$28 sps:$4 sm:$0xff]  }
 0x2b7   :  { %v2414_v38 = vadd.f32 %v2413_v32, %v2373_v33  ;;  %v2375_v39 = vadd.f32 %v2374_v35, %v951_v27  ;;  %v7358_v27 = vld [vmem:[%s10428_s7 + $0xd94] ss:$28 sps:$4 sm:$0xff]   ;;  %v7290_v29 = vld [vmem:[%s10428_s7 + $0x968] ss:$28 sps:$4 sm:$0xff]  }
 0x2b8   :  { %v2376_v40 = vpop.f32.mrf.mxu1  ;;  %v2417_v41 = vpop.f32.mrf.mxu0  ;;  %v7356_v32 = vld [vmem:[%s10428_s7 + $0xd90] ss:$28 sps:$4 sm:$0xff]  }
 0x2b9   :  { %v2416_v42 = vadd.f32 %v2415_v36, %v2375_v39  ;;  %5538 = vmatpush1.bf16.msra.mxu1 %v7257_v34  ;;  %v2586_v44 = vmax.f32 %v2414_v38, 0.0  ;;  %v7295_v33 = vld [vmem:[%s10428_s7 + $0x934] ss:$28 sps:$4 sm:$0xff]   ;;  %v7364_v34 = vld [vmem:[%s10428_s7 + $0xd5c] ss:$28 sps:$4 sm:$0xff]  }
 0x2ba   :  { %v2377_v45 = vpop.f32.mrf.mxu1  ;;  %v2418_v46 = vpop.f32.mrf.mxu0  ;;  %5539 = vmatprep.subr.bf16.mxu1 %v7262_v37  ;;  %v7293_v35 = vld [vmem:[%s10428_s7 + $0x930] ss:$28 sps:$4 sm:$0xff]   ;;  %v7362_v36 = vld [vmem:[%s10428_s7 + $0xd58] ss:$28 sps:$4 sm:$0xff]   ;;  %v7370_v38 = vld [vmem:[%s10428_s7 + $0xd24] ss:$28 sps:$4 sm:$0xff]  }
 0x2bb   :  { %v2587_v48 = vmax.f32 %v2416_v42, 0.0  ;;  %v9188_v54 = vpack.c.bf16 %v2586_v44, %v2586_v44  ;;  %v7298_v37 = vld [vmem:[%s10428_s7 + $0x8fc] ss:$28 sps:$4 sm:$0xff]   ;;  %v7301_v41 = vld [vmem:[%s10428_s7 + $0x8c4] ss:$28 sps:$4 sm:$0xff]  }
 0x2bc   :  { %v7296_v39 = vld [vmem:[%s10428_s7 + $0x8f8] ss:$28 sps:$4 sm:$0xff]   ;;  %v7368_v40 = vld [vmem:[%s10428_s7 + $0xd20] ss:$28 sps:$4 sm:$0xff]   ;;  %v7376_v42 = vld [vmem:[%s10428_s7 + $0xcec] ss:$28 sps:$4 sm:$0xff]  }
 0x2bd   :  { %v9180_v49 = vpack.c.bf16 %v2587_v48, %v2587_v48  ;;  %5540 = vmatpush1.bf16.msra.mxu1 %v7260_v43  ;;  %v954_v43 = vsub.s32 4, %v8133_v28  ;;  %v7299_v44 = vld [vmem:[%s10428_s7 + $0x8c0] ss:$28 sps:$4 sm:$0xff]   ;;  %v7374_v45 = vld [vmem:[%s10428_s7 + $0xce8] ss:$28 sps:$4 sm:$0xff]   ;;  %v958_v48 = vsub.s32 5, %v8133_v28 }
 0x2be   :  { %5541 = vmatprep.subr.bf16.mxu1 %v7265_v47  ;;  %v7307_v46 = vld [vmem:[%s10428_s7 + $0x194] ss:$28 sps:$4 sm:$0xff]  }
 0x2bf   :  { %5526 = vmatprep.mubr.bf16.mxu0 %v9180_v49  ;;  %v7382_v47 = vld [vmem:[%s10428_s7 + $0xcb4] ss:$28 sps:$4 sm:$0xff]  }
 0x2c0   :  { %5527 = vmatmul.mubr.bf16.vlgmr.msra.gmra.mxu0 %v9188_v54 }
 0x2c1   :  { %5542 = vmatpush1.bf16.msra.mxu1 %v7263_v51  ;;  %5577 = vmatpush1.bf16.msra.mxu0 %v7302_v53  ;;  %v955_v51 = vrot.slane %v8949_v63, %v954_v43  ;;  %v7380_v53 = vld [vmem:[%s10428_s7 + $0xcb0] ss:$28 sps:$4 sm:$0xff]  }
 0x2c2   :  { %5543 = vmatprep.subr.bf16.mxu1 %v7268_v55  ;;  %5578 = vmatprep.subr.bf16.mxu0 %v7310_v56  ;;  %v7388_v55 = vld [vmem:[%s10428_s7 + $0xc7c] ss:$28 sps:$4 sm:$0xff]   ;;  %v959_v56 = vrot.slane %v8949_v63, %v958_v48 }
 0x2c5   :  { %5544 = vmatpush1.bf16.msra.mxu1 %v7266_v57  ;;  %5579 = vmatpush1.bf16.msra.mxu0 %v7308_v58 }
 0x2c6   :  { %5545 = vmatprep.subr.bf16.mxu1 %v7271_v59  ;;  %5580 = vmatprep.subr.bf16.mxu0 %v7316_v60  ;;  %v7386_v60 = vld [vmem:[%s10428_s7 + $0xc78] ss:$28 sps:$4 sm:$0xff]  }
 0x2c9   :  { %5546 = vmatpush1.bf16.msra.mxu1 %v7269_v61  ;;  %5581 = vmatpush1.bf16.msra.mxu0 %v7314_v62  ;;  %v7394_v62 = vld [vmem:[%s10428_s7 + $0xc44] ss:$28 sps:$4 sm:$0xff]  }
 0x2ca   :  { %5547 = vmatprep.subr.bf16.mxu1 %v7274_v0  ;;  %5582 = vmatprep.subr.bf16.mxu0 %v7322_v1 }
 0x2cd   :  { %5548 = vmatpush1.bf16.msra.mxu1 %v7272_v2  ;;  %5583 = vmatpush1.bf16.msra.mxu0 %v7320_v3 }
 0x2ce   :  { %5549 = vmatprep.subr.bf16.mxu1 %v7277_v13  ;;  %5584 = vmatprep.subr.bf16.mxu0 %v7328_v6 }
 0x2d1   :  { %5550 = vmatpush1.bf16.msra.mxu1 %v7275_v14  ;;  %5585 = vmatpush1.bf16.msra.mxu0 %v7326_v7  ;;  %v7392_v14 = vld [vmem:[%s10428_s7 + $0xc40] ss:$28 sps:$4 sm:$0xff]  }
 0x2d2   :  { %5551 = vmatprep.subr.bf16.mxu1 %v7280_v15  ;;  %5586 = vmatprep.subr.bf16.mxu0 %v7334_v8  ;;  %v7400_v8 = vld [vmem:[%s10428_s7 + $0x514] ss:$28 sps:$4 sm:$0xff]  }
 0x2d5   :  { %5552 = vmatpush2.bf16.msra.mxu1 %v7278_v16  ;;  %5587 = vmatpush1.bf16.msra.mxu0 %v7332_v9 }
 0x2d6   :  { %5553 = vmatprep.subr.bf16.mxu1 %v7283_v4  ;;  %5588 = vmatprep.subr.bf16.mxu0 %v7340_v10  ;;  %v7305_v10 = vld [vmem:[%s10428_s7 + $0x190] ss:$28 sps:$4 sm:$0xff]  }
 0x2d9   :  { %5554 = vmatpush2.bf16.msra.mxu1 %v7281_v11  ;;  %5589 = vmatpush1.bf16.msra.mxu0 %v7338_v12  ;;  %v7313_v12 = vld [vmem:[%s10428_s7 + $0x15c] ss:$28 sps:$4 sm:$0xff]  }
 0x2da   :  { %5555 = vmatprep.subr.bf16.mxu1 %v7286_v17  ;;  %5590 = vmatprep.subr.bf16.mxu0 %v7346_v5  ;;  %v7311_v17 = vld [vmem:[%s10428_s7 + $0x158] ss:$28 sps:$4 sm:$0xff]   ;;  %v7319_v5 = vld [vmem:[%s10428_s7 + $0x124] ss:$28 sps:$4 sm:$0xff]  }
 0x2dd   :  { %5556 = vmatpush2.bf16.msra.mxu1 %v7284_v18  ;;  %5591 = vmatpush1.bf16.msra.mxu0 %v7344_v19  ;;  %v7317_v18 = vld [vmem:[%s10428_s7 + $0x120] ss:$28 sps:$4 sm:$0xff]   ;;  %v7325_v19 = vld [vmem:[%s10428_s7 + $0xec] ss:$28 sps:$4 sm:$0xff]  }
 0x2de   :  { %5557 = vmatprep.subr.bf16.mxu1 %v7289_v20  ;;  %5592 = vmatprep.subr.bf16.mxu0 %v7352_v21  ;;  %v7323_v20 = vld [vmem:[%s10428_s7 + $0xe8] ss:$28 sps:$4 sm:$0xff]   ;;  %v7331_v21 = vld [vmem:[%s10428_s7 + $0xb4] ss:$28 sps:$4 sm:$0xff]  }
 0x2e1   :  { %5558 = vmatpush2.bf16.msra.mxu1 %v7287_v22  ;;  %5593 = vmatpush2.bf16.msra.mxu0 %v7350_v24  ;;  %v7329_v22 = vld [vmem:[%s10428_s7 + $0xb0] ss:$28 sps:$4 sm:$0xff]   ;;  %v7337_v24 = vld [vmem:[%s10428_s7 + $0x7c] ss:$28 sps:$4 sm:$0xff]  }
 0x2e2   :  { %5559 = vmatprep.subr.bf16.mxu1 %v7292_v26  ;;  %5594 = vmatprep.subr.bf16.mxu0 %v7358_v27  ;;  %v7335_v26 = vld [vmem:[%s10428_s7 + $0x78] ss:$28 sps:$4 sm:$0xff]   ;;  %v7343_v27 = vld [vmem:[%s10428_s7 + $0x44] ss:$28 sps:$4 sm:$0xff]  }
 0x2e5   :  { %5560 = vmatpush2.bf16.msra.mxu1 %v7290_v29  ;;  %5595 = vmatpush2.bf16.msra.mxu0 %v7356_v32  ;;  %v7341_v29 = vld [vmem:[%s10428_s7 + $0x40] ss:$28 sps:$4 sm:$0xff]   ;;  %v7349_v32 = vld [vmem:[%s10428_s7 + $0xc] ss:$28 sps:$4 sm:$0xff]  }
 0x2e6   :  { %5561 = vmatprep.subr.bf16.mxu1 %v7295_v33  ;;  %5596 = vmatprep.subr.bf16.mxu0 %v7364_v34  ;;  %v7347_v33 = vld [vmem:[%s10428_s7 + $0x8] ss:$28 sps:$4 sm:$0xff]   ;;  %v7355_v34 = vld [vmem:[%s10428_s7 + $0x354] ss:$28 sps:$4 sm:$0xff]  }
 0x2e9   :  { %5562 = vmatpush2.bf16.msra.mxu1 %v7293_v35  ;;  %5597 = vmatpush2.bf16.msra.mxu0 %v7362_v36  ;;  %v7353_v35 = vld [vmem:[%s10428_s7 + $0x350] ss:$28 sps:$4 sm:$0xff]   ;;  %v7361_v36 = vld [vmem:[%s10428_s7 + $0x31c] ss:$28 sps:$4 sm:$0xff]  }
 0x2ea   :  { %5563 = vmatprep.subr.bf16.mxu1 %v7298_v37  ;;  %5598 = vmatprep.subr.bf16.mxu0 %v7370_v38  ;;  %v7359_v37 = vld [vmem:[%s10428_s7 + $0x318] ss:$28 sps:$4 sm:$0xff]   ;;  %v7367_v38 = vld [vmem:[%s10428_s7 + $0x2e4] ss:$28 sps:$4 sm:$0xff]  }
 0x2ed   :  { %5564 = vmatpush2.bf16.msra.mxu1 %v7296_v39  ;;  %5599 = vmatpush2.bf16.msra.mxu0 %v7368_v40  ;;  %v7365_v39 = vld [vmem:[%s10428_s7 + $0x2e0] ss:$28 sps:$4 sm:$0xff]   ;;  %v7373_v40 = vld [vmem:[%s10428_s7 + $0x2ac] ss:$28 sps:$4 sm:$0xff]  }
 0x2ee   :  { %5565 = vmatprep.subr.bf16.mxu1 %v7301_v41  ;;  %5600 = vmatprep.subr.bf16.mxu0 %v7376_v42  ;;  %v7371_v41 = vld [vmem:[%s10428_s7 + $0x2a8] ss:$28 sps:$4 sm:$0xff]   ;;  %v7379_v42 = vld [vmem:[%s10428_s7 + $0x274] ss:$28 sps:$4 sm:$0xff]  }
 0x2f1   :  { %5566 = vmatpush2.bf16.msra.mxu1 %v7299_v44  ;;  %5601 = vmatpush2.bf16.msra.mxu0 %v7374_v45  ;;  %v7377_v44 = vld [vmem:[%s10428_s7 + $0x270] ss:$28 sps:$4 sm:$0xff]   ;;  %v962_v45 = vsub.s32 6, %v8133_v28 }
 0x2f2   :  { %5617 = vmatprep.subr.bf16.mxu1 %v7307_v46  ;;  %5602 = vmatprep.subr.bf16.mxu0 %v7382_v47  ;;  %v7385_v46 = vld [vmem:[%s10428_s7 + $0x23c] ss:$28 sps:$4 sm:$0xff]   ;;  %v966_v47 = vsub.s32 7, %v8133_v28 }
 0x2f4   :  { %v2454_v57 = vpop.f32.mrf.mxu1 }
 0x2f5   :  { %v2455_v58 = vadd.f32 %v2454_v57, %v955_v51  ;;  %v2495_v59 = vpop.f32.mrf.mxu0  ;;  %5603 = vmatpush2.bf16.msra.mxu0 %v7380_v53  ;;  %v7383_v51 = vld [vmem:[%s10428_s7 + $0x238] ss:$28 sps:$4 sm:$0xff]   ;;  %v963_v53 = vrot.slane %v8949_v63, %v962_v45 }
 0x2f6   :  { %v2456_v61 = vpop.f32.mrf.mxu1  ;;  %5604 = vmatprep.subr.bf16.mxu0 %v7388_v55  ;;  %v7391_v55 = vld [vmem:[%s10428_s7 + $0x204] ss:$28 sps:$4 sm:$0xff]  }
 0x2f7   :  { %v2496_v0 = vadd.f32 %v2495_v59, %v2455_v58  ;;  %v2457_v1 = vadd.f32 %v2456_v61, %v959_v56  ;;  %v2497_v2 = vpop.f32.mrf.mxu0  ;;  %v967_v56 = vrot.slane %v8949_v63, %v966_v47  ;;  %v7437_v47 = vld [vmem:[%s10428_s7 + $0x740] ss:$28 sps:$4 sm:$0xff]  }
 0x2f8   :  { %v2458_v3 = vpop.f32.mrf.mxu1 }
 0x2f9   :  { %v2498_v13 = vadd.f32 %v2497_v2, %v2457_v1  ;;  %v2499_v6 = vpop.f32.mrf.mxu0  ;;  %5605 = vmatpush2.bf16.msra.mxu0 %v7386_v60  ;;  %v2588_v7 = vmax.f32 %v2496_v0, 0.0  ;;  %v7389_v60 = vld [vmem:[%s10428_s7 + $0x200] ss:$28 sps:$4 sm:$0xff]  }
 0x2fa   :  { %v2459_v15 = vpop.f32.mrf.mxu1  ;;  %5606 = vmatprep.subr.bf16.mxu0 %v7394_v62  ;;  %v7397_v62 = vld [vmem:[%s10428_s7 + $0x1cc] ss:$28 sps:$4 sm:$0xff]  }
 0x2fb   :  { %v2589_v16 = vmax.f32 %v2498_v13, 0.0  ;;  %v2500_v9 = vpop.f32.mrf.mxu0  ;;  %v9373_v11 = vpack.c.bf16 %v2588_v7, %v2588_v7  ;;  %v7395_v6 = vld [vmem:[%s10428_s7 + $0x1c8] ss:$28 sps:$4 sm:$0xff]   ;;  %v7403_v15 = vld [vmem:[%s10428_s7 + $0x894] ss:$28 sps:$4 sm:$0xff]  }
 0x2fd   :  { %v9368_v4 = vpack.c.bf16 %v2589_v16, %v2589_v16  ;;  %5607 = vmatpush2.bf16.msra.mxu0 %v7392_v14 }
 0x2fe   :  { %5658 = vmatprep.subr.bf16.mxu0 %v7400_v8 }
 0x2ff   :  { %5567 = vmatprep.mubr.bf16.mxu1 %v9368_v4 }
 0x300   :  { %5568 = vmatmul.mubr.bf16.vlgmr.msra.gmra.mxu1 %v9373_v11 }
 0x301   :  { %5618 = vmatpush1.bf16.msra.mxu1 %v7305_v10  ;;  %5649 = vmatprep.mubr.bf16.mxu1 %v8992_v23  ;;  %v7398_v10 = vld [vmem:[%s10428_s7 + $0x510] ss:$28 sps:$4 sm:$0xff]  }
 0x302   :  { %5619 = vmatprep.subr.bf16.mxu1 %v7313_v12  ;;  %v7401_v12 = vld [vmem:[%s10428_s7 + $0x890] ss:$28 sps:$4 sm:$0xff]  }
 0x305   :  { %5620 = vmatpush1.bf16.msra.mxu1 %v7311_v17 }
 0x306   :  { %5621 = vmatprep.subr.bf16.mxu1 %v7319_v5  ;;  %v7406_v5 = vld [vmem:[%s10428_s7 + $0x4dc] ss:$28 sps:$4 sm:$0xff]  }
 0x309   :  { %5622 = vmatpush1.bf16.msra.mxu1 %v7317_v18  ;;  %v7409_v18 = vld [vmem:[%s10428_s7 + $0x85c] ss:$28 sps:$4 sm:$0xff]  }
 0x30a   :  { %5623 = vmatprep.subr.bf16.mxu1 %v7325_v19  ;;  %v7404_v19 = vld [vmem:[%s10428_s7 + $0x4d8] ss:$28 sps:$4 sm:$0xff]  }
 0x30d   :  { %5624 = vmatpush1.bf16.msra.mxu1 %v7323_v20  ;;  %v7407_v20 = vld [vmem:[%s10428_s7 + $0x858] ss:$28 sps:$4 sm:$0xff]  }
 0x30e   :  { %5625 = vmatprep.subr.bf16.mxu1 %v7331_v21  ;;  %v7412_v21 = vld [vmem:[%s10428_s7 + $0x4a4] ss:$28 sps:$4 sm:$0xff]  }
 0x311   :  { %5626 = vmatpush1.bf16.msra.mxu1 %v7329_v22  ;;  %v7415_v22 = vld [vmem:[%s10428_s7 + $0x824] ss:$28 sps:$4 sm:$0xff]  }
 0x312   :  { %5627 = vmatprep.subr.bf16.mxu1 %v7337_v24  ;;  %v7410_v24 = vld [vmem:[%s10428_s7 + $0x4a0] ss:$28 sps:$4 sm:$0xff]  }
 0x315   :  { %5628 = vmatpush1.bf16.msra.mxu1 %v7335_v26  ;;  %v7413_v26 = vld [vmem:[%s10428_s7 + $0x820] ss:$28 sps:$4 sm:$0xff]  }
 0x316   :  { %5629 = vmatprep.subr.bf16.mxu1 %v7343_v27  ;;  %v7418_v27 = vld [vmem:[%s10428_s7 + $0x46c] ss:$28 sps:$4 sm:$0xff]  }
 0x319   :  { %5630 = vmatpush1.bf16.msra.mxu1 %v7341_v29  ;;  %v7421_v29 = vld [vmem:[%s10428_s7 + $0x7ec] ss:$28 sps:$4 sm:$0xff]  }
 0x31a   :  { %5631 = vmatprep.subr.bf16.mxu1 %v7349_v32  ;;  %v7416_v32 = vld [vmem:[%s10428_s7 + $0x468] ss:$28 sps:$4 sm:$0xff]  }
 0x31d   :  { %5632 = vmatpush1.bf16.msra.mxu1 %v7347_v33  ;;  %v7419_v33 = vld [vmem:[%s10428_s7 + $0x7e8] ss:$28 sps:$4 sm:$0xff]  }
 0x31e   :  { %5633 = vmatprep.subr.bf16.mxu1 %v7355_v34  ;;  %v7424_v34 = vld [vmem:[%s10428_s7 + $0x434] ss:$28 sps:$4 sm:$0xff]  }
 0x321   :  { %5634 = vmatpush2.bf16.msra.mxu1 %v7353_v35  ;;  %v7427_v35 = vld [vmem:[%s10428_s7 + $0x7b4] ss:$28 sps:$4 sm:$0xff]  }
 0x322   :  { %5635 = vmatprep.subr.bf16.mxu1 %v7361_v36  ;;  %v7422_v36 = vld [vmem:[%s10428_s7 + $0x430] ss:$28 sps:$4 sm:$0xff]  }
 0x325   :  { %5636 = vmatpush2.bf16.msra.mxu1 %v7359_v37  ;;  %v7425_v37 = vld [vmem:[%s10428_s7 + $0x7b0] ss:$28 sps:$4 sm:$0xff]  }
 0x326   :  { %5637 = vmatprep.subr.bf16.mxu1 %v7367_v38  ;;  %v7430_v38 = vld [vmem:[%s10428_s7 + $0x3fc] ss:$28 sps:$4 sm:$0xff]  }
 0x329   :  { %5638 = vmatpush2.bf16.msra.mxu1 %v7365_v39  ;;  %v7433_v39 = vld [vmem:[%s10428_s7 + $0x77c] ss:$28 sps:$4 sm:$0xff]  }
 0x32a   :  { %5639 = vmatprep.subr.bf16.mxu1 %v7373_v40  ;;  %v7428_v40 = vld [vmem:[%s10428_s7 + $0x3f8] ss:$28 sps:$4 sm:$0xff]  }
 0x32d   :  { %5640 = vmatpush2.bf16.msra.mxu1 %v7371_v41  ;;  %v7431_v41 = vld [vmem:[%s10428_s7 + $0x778] ss:$28 sps:$4 sm:$0xff]  }
 0x32e   :  { %5641 = vmatprep.subr.bf16.mxu1 %v7379_v42  ;;  %v7436_v42 = vld [vmem:[%s10428_s7 + $0x3c4] ss:$28 sps:$4 sm:$0xff]  }
 0x331   :  { %5642 = vmatpush2.bf16.msra.mxu1 %v7377_v44  ;;  %v7439_v44 = vld [vmem:[%s10428_s7 + $0x744] ss:$28 sps:$4 sm:$0xff]  }
 0x332   :  { %5643 = vmatprep.subr.bf16.mxu1 %v7385_v46  ;;  %v7434_v46 = vld [vmem:[%s10428_s7 + $0x3c0] ss:$28 sps:$4 sm:$0xff]  }
 0x334   :  { %v2536_v57 = vpop.f32.mrf.mxu1 }
 0x335   :  { %v2537_v58 = vadd.f32 %v2536_v57, %v963_v53  ;;  %v2577_v59 = vpop.f32.mrf.mxu0  ;;  %5644 = vmatpush2.bf16.msra.mxu1 %v7383_v51  ;;  %v7442_v51 = vld [vmem:[%s10428_s7 + $0x38c] ss:$28 sps:$4 sm:$0xff]   ;;  %v7448_v57 = vld [vmem:[%s10428_s7 + $0x6d4] ss:$28 sps:$4 sm:$0xff]  }
 0x336   :  { %v2538_v61 = vpop.f32.mrf.mxu1  ;;  %5645 = vmatprep.subr.bf16.mxu1 %v7391_v55  ;;  %v7445_v53 = vld [vmem:[%s10428_s7 + $0x70c] ss:$28 sps:$4 sm:$0xff]  }
 0x337   :  { %v2578_v0 = vadd.f32 %v2577_v59, %v2537_v58  ;;  %v2539_v1 = vadd.f32 %v2538_v61, %v967_v56  ;;  %v2579_v2 = vpop.f32.mrf.mxu0  ;;  %v7440_v55 = vld [vmem:[%s10428_s7 + $0x388] ss:$28 sps:$4 sm:$0xff]   ;;  %v7451_v58 = vld [vmem:[%s10428_s7 + $0xa54] ss:$28 sps:$4 sm:$0xff]   ;;  %v7454_v61 = vld [vmem:[%s10428_s7 + $0x69c] ss:$28 sps:$4 sm:$0xff]  }
 0x338   :  { %v2540_v3 = vpop.f32.mrf.mxu1  ;;  %v7443_v56 = vld [vmem:[%s10428_s7 + $0x708] ss:$28 sps:$4 sm:$0xff]   ;;  %v7446_v59 = vld [vmem:[%s10428_s7 + $0x6d0] ss:$28 sps:$4 sm:$0xff]  }
 0x339   :  { %v2580_v13 = vadd.f32 %v2579_v2, %v2539_v1  ;;  %v2581_v63 = vpop.f32.mrf.mxu0  ;;  %5646 = vmatpush2.bf16.msra.mxu1 %v7389_v60  ;;  %v2590_v14 = vmax.f32 %v2578_v0, 0.0  ;;  %v7449_v60 = vld [vmem:[%s10428_s7 + $0xa50] ss:$28 sps:$4 sm:$0xff]   ;;  %v7452_v0 = vld [vmem:[%s10428_s7 + $0x698] ss:$28 sps:$4 sm:$0xff]  }
 0x33a   :  { %v2541_v7 = vpop.f32.mrf.mxu1  ;;  %5647 = vmatprep.subr.bf16.mxu1 %v7397_v62  ;;  %v7457_v62 = vld [vmem:[%s10428_s7 + $0xa1c] ss:$28 sps:$4 sm:$0xff]   ;;  %v7460_v2 = vld [vmem:[%s10428_s7 + $0x664] ss:$28 sps:$4 sm:$0xff]  }
 0x33b   :  { %v2591_v8 = vmax.f32 %v2580_v13, 0.0  ;;  %v2582_v16 = vpop.f32.mrf.mxu0  ;;  %v9485_v17 = vpack.c.bf16 %v2590_v14, %v2590_v14  ;;  %v7455_v1 = vld [vmem:[%s10428_s7 + $0xa18] ss:$28 sps:$4 sm:$0xff]   ;;  %v7463_v3 = vld [vmem:[%s10428_s7 + $0x9e4] ss:$28 sps:$4 sm:$0xff]  }
 0x33c   :  { %v7458_v13 = vld [vmem:[%s10428_s7 + $0x660] ss:$28 sps:$4 sm:$0xff]   ;;  %v7469_v14 = vld [vmem:[%s10428_s7 + $0x9ac] ss:$28 sps:$4 sm:$0xff]   ;;  %v7475_v16 = vld [vmem:[%s10428_s7 + $0x974] ss:$28 sps:$4 sm:$0xff]  }
 0x33d   :  { %v9477_v9 = vpack.c.bf16 %v2591_v8, %v2591_v8  ;;  %5648 = vmatpush2.bf16.msra.mxu1 %v7395_v6  ;;  %v7461_v63 = vld [vmem:[%s10428_s7 + $0x9e0] ss:$28 sps:$4 sm:$0xff]   ;;  %v7466_v6 = vld [vmem:[%s10428_s7 + $0x62c] ss:$28 sps:$4 sm:$0xff]   ;;  %v7472_v8 = vld [vmem:[%s10428_s7 + $0x5f4] ss:$28 sps:$4 sm:$0xff]  }
 0x33e   :  { %5699 = vmatprep.subr.bf16.mxu1 %v7403_v15  ;;  %v7464_v7 = vld [vmem:[%s10428_s7 + $0x628] ss:$28 sps:$4 sm:$0xff]  }
 0x33f   :  { %5608 = vmatprep.mubr.bf16.mxu0 %v9477_v9  ;;  %v7467_v15 = vld [vmem:[%s10428_s7 + $0x9a8] ss:$28 sps:$4 sm:$0xff]  }
 0x340   :  { %5650 = vmatmul.mubr.bf16.vlgmr.msra.gmra.mxu1 %v9160_v25  ;;  %5609 = vmatmul.mubr.bf16.vlgmr.msra.gmra.mxu0 %v9485_v17 }
 0x341   :  { %5659 = vmatpush1.bf16.msra.mxu0 %v7398_v10  ;;  %5700 = vmatpush1.bf16.msra.mxu1 %v7401_v12  ;;  %v7470_v10 = vld [vmem:[%s10428_s7 + $0x5f0] ss:$28 sps:$4 sm:$0xff]  }
 0x342   :  { %5731 = vmatprep.mubr.bf16.mxu1 %v9368_v4  ;;  %5690 = vmatprep.mubr.bf16.mxu0 %v9180_v49  ;;  %v7473_v12 = vld [vmem:[%s10428_s7 + $0x970] ss:$28 sps:$4 sm:$0xff]  }
 0x343   :  { %5660 = vmatprep.subr.bf16.mxu0 %v7406_v5  ;;  %5701 = vmatprep.subr.bf16.mxu1 %v7409_v18  ;;  %v7478_v5 = vld [vmem:[%s10428_s7 + $0x5bc] ss:$28 sps:$4 sm:$0xff]  }
 0x344   :  { %v7481_v18 = vld [vmem:[%s10428_s7 + $0x93c] ss:$28 sps:$4 sm:$0xff]  }
 0x345   :  { %5661 = vmatpush1.bf16.msra.mxu0 %v7404_v19  ;;  %5702 = vmatpush1.bf16.msra.mxu1 %v7407_v20  ;;  %v7476_v19 = vld [vmem:[%s10428_s7 + $0x5b8] ss:$28 sps:$4 sm:$0xff]  }
 0x346   :  { %5662 = vmatprep.subr.bf16.mxu0 %v7412_v21  ;;  %5703 = vmatprep.subr.bf16.mxu1 %v7415_v22  ;;  %v7479_v20 = vld [vmem:[%s10428_s7 + $0x938] ss:$28 sps:$4 sm:$0xff]   ;;  %v7484_v21 = vld [vmem:[%s10428_s7 + $0x584] ss:$28 sps:$4 sm:$0xff]  }
 0x347   :  { %v7487_v22 = vld [vmem:[%s10428_s7 + $0x904] ss:$28 sps:$4 sm:$0xff]  }
 0x349   :  { %5663 = vmatpush1.bf16.msra.mxu0 %v7410_v24  ;;  %5704 = vmatpush1.bf16.msra.mxu1 %v7413_v26  ;;  %v7482_v26 = vld [vmem:[%s10428_s7 + $0x580] ss:$28 sps:$4 sm:$0xff]  }
 0x34a   :  { %5664 = vmatprep.subr.bf16.mxu0 %v7418_v27  ;;  %5705 = vmatprep.subr.bf16.mxu1 %v7421_v29  ;;  %v7485_v27 = vld [vmem:[%s10428_s7 + $0x900] ss:$28 sps:$4 sm:$0xff]  }
 0x34d   :  { %5665 = vmatpush1.bf16.msra.mxu0 %v7416_v32  ;;  %5706 = vmatpush1.bf16.msra.mxu1 %v7419_v33  ;;  %v7490_v32 = vld [vmem:[%s10428_s7 + $0x54c] ss:$28 sps:$4 sm:$0xff]  }
 0x34e   :  { %5666 = vmatprep.subr.bf16.mxu0 %v7424_v34  ;;  %5707 = vmatprep.subr.bf16.mxu1 %v7427_v35  ;;  %v7493_v33 = vld [vmem:[%s10428_s7 + $0x8cc] ss:$28 sps:$4 sm:$0xff]   ;;  %v9669_v34 = vld [vmem:[%s10429_s8] sm:$0x7f] }
 0x351   :  { %5667 = vmatpush1.bf16.msra.mxu0 %v7422_v36  ;;  %5708 = vmatpush1.bf16.msra.mxu1 %v7425_v37  ;;  %v7488_v36 = vld [vmem:[%s10428_s7 + $0x548] ss:$28 sps:$4 sm:$0xff]  }
 0x352   :  { %5668 = vmatprep.subr.bf16.mxu0 %v7430_v38  ;;  %5709 = vmatprep.subr.bf16.mxu1 %v7433_v39  ;;  %v7491_v37 = vld [vmem:[%s10428_s7 + $0x8c8] ss:$28 sps:$4 sm:$0xff]   ;;  %v7496_v39 = vld [vmem:[%s10428_s7 + $0xc14] ss:$28 sps:$4 sm:$0xff]  }
 0x355   :  { %5669 = vmatpush1.bf16.msra.mxu0 %v7428_v40  ;;  %5710 = vmatpush1.bf16.msra.mxu1 %v7431_v41  ;;  %v7499_v40 = vld [vmem:[%s10428_s7 + $0x19c] ss:$28 sps:$4 sm:$0xff]   ;;  %v3117_v41 = vrot.slane %v9669_v34, %v8139_v30 }
 0x356   :  { %5670 = vmatprep.subr.bf16.mxu0 %v7436_v42  ;;  %5711 = vmatprep.subr.bf16.mxu1 %v7439_v44  ;;  %v3121_v42 = vrot.slane %v9669_v34, %v8142_v31  ;;  %v7494_v44 = vld [vmem:[%s10428_s7 + $0xc10] ss:$28 sps:$4 sm:$0xff]   ;;  %v7502_v30 = vld [vmem:[%s10428_s7 + $0xbdc] ss:$28 sps:$4 sm:$0xff]   ;;  %v7505_v31 = vld [vmem:[%s10428_s7 + $0x164] ss:$28 sps:$4 sm:$0xff]  }
 0x359   :  { %5671 = vmatpush1.bf16.msra.mxu0 %v7434_v46  ;;  %5712 = vmatpush1.bf16.msra.mxu1 %v7437_v47  ;;  %v7497_v46 = vld [vmem:[%s10428_s7 + $0x198] ss:$28 sps:$4 sm:$0xff]  }
 0x35a   :  { %5672 = vmatprep.subr.bf16.mxu0 %v7442_v51  ;;  %5713 = vmatprep.subr.bf16.mxu1 %v7445_v53 }
 0x35d   :  { %5673 = vmatpush1.bf16.msra.mxu0 %v7440_v55  ;;  %5714 = vmatpush1.bf16.msra.mxu1 %v7443_v56  ;;  %v7500_v56 = vld [vmem:[%s10428_s7 + $0xbd8] ss:$28 sps:$4 sm:$0xff]  }
 0x35e   :  { %5674 = vmatprep.subr.bf16.mxu0 %v7448_v57  ;;  %5715 = vmatprep.subr.bf16.mxu1 %v7451_v58  ;;  %v7503_v58 = vld [vmem:[%s10428_s7 + $0x160] ss:$28 sps:$4 sm:$0xff]  }
 0x361   :  { %5675 = vmatpush2.bf16.msra.mxu0 %v7446_v59  ;;  %5716 = vmatpush2.bf16.msra.mxu1 %v7449_v60  ;;  %v7508_v59 = vld [vmem:[%s10428_s7 + $0xba4] ss:$28 sps:$4 sm:$0xff]  }
 0x362   :  { %5676 = vmatprep.subr.bf16.mxu0 %v7454_v61  ;;  %5717 = vmatprep.subr.bf16.mxu1 %v7457_v62  ;;  %v7511_v61 = vld [vmem:[%s10428_s7 + $0x12c] ss:$28 sps:$4 sm:$0xff]  }
 0x365   :  { %5677 = vmatpush2.bf16.msra.mxu0 %v7452_v0  ;;  %5718 = vmatpush2.bf16.msra.mxu1 %v7455_v1  ;;  %v7506_v0 = vld [vmem:[%s10428_s7 + $0xba0] ss:$28 sps:$4 sm:$0xff]  }
 0x366   :  { %5678 = vmatprep.subr.bf16.mxu0 %v7460_v2  ;;  %5719 = vmatprep.subr.bf16.mxu1 %v7463_v3  ;;  %v7509_v2 = vld [vmem:[%s10428_s7 + $0x128] ss:$28 sps:$4 sm:$0xff]  }
 0x367   :  { %v7514_v3 = vld [vmem:[%s10428_s7 + $0xb6c] ss:$28 sps:$4 sm:$0xff]  }
 0x369   :  { %5679 = vmatpush2.bf16.msra.mxu0 %v7458_v13  ;;  %5720 = vmatpush2.bf16.msra.mxu1 %v7461_v63  ;;  %v7517_v13 = vld [vmem:[%s10428_s7 + $0xf4] ss:$28 sps:$4 sm:$0xff]   ;;  %v7512_v63 = vld [vmem:[%s10428_s7 + $0xb68] ss:$28 sps:$4 sm:$0xff]  }
 0x36a   :  { %5680 = vmatprep.subr.bf16.mxu0 %v7466_v6  ;;  %5721 = vmatprep.subr.bf16.mxu1 %v7469_v14  ;;  %v7515_v6 = vld [vmem:[%s10428_s7 + $0xf0] ss:$28 sps:$4 sm:$0xff]  }
 0x36b   :  { %v7520_v14 = vld [vmem:[%s10428_s7 + $0xb34] ss:$28 sps:$4 sm:$0xff]  }
 0x36d   :  { %5681 = vmatpush2.bf16.msra.mxu0 %v7464_v7  ;;  %5722 = vmatpush2.bf16.msra.mxu1 %v7467_v15  ;;  %v7523_v7 = vld [vmem:[%s10428_s7 + $0xbc] ss:$28 sps:$4 sm:$0xff]   ;;  %v7518_v15 = vld [vmem:[%s10428_s7 + $0xb30] ss:$28 sps:$4 sm:$0xff]  }
 0x36e   :  { %5682 = vmatprep.subr.bf16.mxu0 %v7472_v8  ;;  %5723 = vmatprep.subr.bf16.mxu1 %v7475_v16  ;;  %v7521_v8 = vld [vmem:[%s10428_s7 + $0xb8] ss:$28 sps:$4 sm:$0xff]  }
 0x36f   :  { %v7526_v16 = vld [vmem:[%s10428_s7 + $0xafc] ss:$28 sps:$4 sm:$0xff]  }
 0x371   :  { %5683 = vmatpush2.bf16.msra.mxu0 %v7470_v10  ;;  %5724 = vmatpush2.bf16.msra.mxu1 %v7473_v12  ;;  %v7529_v10 = vld [vmem:[%s10428_s7 + $0x84] ss:$28 sps:$4 sm:$0xff]   ;;  %v7524_v12 = vld [vmem:[%s10428_s7 + $0xaf8] ss:$28 sps:$4 sm:$0xff]  }
 0x372   :  { %5684 = vmatprep.subr.bf16.mxu0 %v7478_v5  ;;  %5725 = vmatprep.subr.bf16.mxu1 %v7481_v18  ;;  %v7527_v5 = vld [vmem:[%s10428_s7 + $0x80] ss:$28 sps:$4 sm:$0xff]  }
 0x373   :  { %v7532_v18 = vld [vmem:[%s10428_s7 + $0xac4] ss:$28 sps:$4 sm:$0xff]  }
 0x374   :  { %v5487_v24 = vpop.f32.mrf.mxu1 }
 0x375   :  { %5685 = vmatpush2.bf16.msra.mxu0 %v7476_v19  ;;  %5726 = vmatpush2.bf16.msra.mxu1 %v7479_v20  ;;  %v5488_v47 = vadd.f32 %v5487_v24, %v3117_v41  ;;  %v7535_v19 = vld [vmem:[%s10428_s7 + $0x4c] ss:$28 sps:$4 sm:$0xff]   ;;  %v7530_v20 = vld [vmem:[%s10428_s7 + $0xac0] ss:$28 sps:$4 sm:$0xff]   ;;  %v7541_v24 = vld [vmem:[%s10428_s7 + $0x14] ss:$28 sps:$4 sm:$0xff]  }
 0x376   :  { %v5489_v29 = vpop.f32.mrf.mxu1  ;;  %5686 = vmatprep.subr.bf16.mxu0 %v7484_v21  ;;  %5727 = vmatprep.subr.bf16.mxu1 %v7487_v22  ;;  %v7533_v21 = vld [vmem:[%s10428_s7 + $0x48] ss:$28 sps:$4 sm:$0xff]  }
 0x377   :  { %v5490_v53 = vadd.f32 %v5489_v29, %v3121_v42  ;;  %v7538_v22 = vld [vmem:[%s10428_s7 + $0xa8c] ss:$28 sps:$4 sm:$0xff]   ;;  %v7544_v29 = vld [vmem:[%s10428_s7 + $0xdd4] ss:$28 sps:$4 sm:$0xff]   ;;  %v7554_v42 = vld [vmem:[%s10428_s7 + $0xd60] ss:$28 sps:$4 sm:$0xff]  }
 0x378   :  { %v5491_v35 = vpop.f32.mrf.mxu1  ;;  %v7559_v41 = vld [vmem:[%s10428_s7 + $0x2ec] ss:$28 sps:$4 sm:$0xff]  }
 0x379   :  { %5687 = vmatpush2.bf16.msra.mxu0 %v7482_v26  ;;  %5728 = vmatpush2.bf16.msra.mxu1 %v7485_v27  ;;  %v7536_v26 = vld [vmem:[%s10428_s7 + $0xa88] ss:$28 sps:$4 sm:$0xff]   ;;  %v7539_v27 = vld [vmem:[%s10428_s7 + $0x10] ss:$28 sps:$4 sm:$0xff]   ;;  %v7545_v35 = vld [vmem:[%s10428_s7 + $0x358] ss:$28 sps:$4 sm:$0xff]  }
 0x37a   :  { %v5492_v38 = vpop.f32.mrf.mxu1  ;;  %5688 = vmatprep.subr.bf16.mxu0 %v7490_v32  ;;  %5729 = vmatprep.subr.bf16.mxu1 %v7493_v33  ;;  %v7547_v32 = vld [vmem:[%s10428_s7 + $0x35c] ss:$28 sps:$4 sm:$0xff]   ;;  %v7542_v33 = vld [vmem:[%s10428_s7 + $0xdd0] ss:$28 sps:$4 sm:$0xff]  }
 0x37b   :  { %v7548_v38 = vld [vmem:[%s10428_s7 + $0xd98] ss:$28 sps:$4 sm:$0xff]  }
 0x37d   :  { %5689 = vmatpush2.bf16.msra.mxu0 %v7488_v36  ;;  %5730 = vmatpush2.bf16.msra.mxu1 %v7491_v37  ;;  %v7550_v36 = vld [vmem:[%s10428_s7 + $0xd9c] ss:$28 sps:$4 sm:$0xff]   ;;  %v7553_v37 = vld [vmem:[%s10428_s7 + $0x324] ss:$28 sps:$4 sm:$0xff]  }
 0x37e   :  { %5740 = vmatprep.subr.bf16.mxu0 %v7496_v39  ;;  %5781 = vmatprep.subr.bf16.mxu1 %v7499_v40  ;;  %v7551_v39 = vld [vmem:[%s10428_s7 + $0x320] ss:$28 sps:$4 sm:$0xff]  }
 0x37f   :  { %v7556_v40 = vld [vmem:[%s10428_s7 + $0xd64] ss:$28 sps:$4 sm:$0xff]  }
 0x380   :  { %5691 = vmatmul.mubr.bf16.vlgmr.msra.gmra.mxu0 %v9188_v54  ;;  %5732 = vmatmul.mubr.bf16.vlgmr.msra.gmra.mxu1 %v9373_v11  ;;  %v5528_v51 = vpop.f32.mrf.mxu0 }
 0x381   :  { %v9701_v55 = vadd.f32 %v5528_v51, %v5488_v47  ;;  %5741 = vmatpush1.bf16.msra.mxu0 %v7494_v44  ;;  %5772 = vmatprep.mubr.bf16.mxu0 %v9477_v9  ;;  %v7557_v44 = vld [vmem:[%s10428_s7 + $0x2e8] ss:$28 sps:$4 sm:$0xff]   ;;  %v7565_v47 = vld [vmem:[%s10428_s7 + $0x2b4] ss:$28 sps:$4 sm:$0xff]  }
 0x382   :  { %5782 = vmatpush1.bf16.msra.mxu1 %v7497_v46  ;;  %5813 = vmatprep.mubr.bf16.mxu1 %v8992_v23  ;;  %v5530_v57 = vpop.f32.mrf.mxu0  ;;  %v7562_v46 = vld [vmem:[%s10428_s7 + $0xd2c] ss:$28 sps:$4 sm:$0xff]   ;;  %v7568_v51 = vld [vmem:[%s10428_s7 + $0xcf4] ss:$28 sps:$4 sm:$0xff]  }
 0x383   :  { %v9714_v60 = vadd.f32 %v5530_v57, %v5490_v53  ;;  %5742 = vmatprep.subr.bf16.mxu0 %v7502_v30  ;;  %5783 = vmatprep.subr.bf16.mxu1 %v7505_v31  ;;  %v7560_v30 = vld [vmem:[%s10428_s7 + $0xd28] ss:$28 sps:$4 sm:$0xff]   ;;  %v7563_v31 = vld [vmem:[%s10428_s7 + $0x2b0] ss:$28 sps:$4 sm:$0xff]   ;;  %v7571_v53 = vld [vmem:[%s10428_s7 + $0x27c] ss:$28 sps:$4 sm:$0xff]  }
 0x384   :  { %v5532_v62 = vpop.f32.mrf.mxu0  ;;  %v7569_v57 = vld [vmem:[%s10428_s7 + $0x278] ss:$28 sps:$4 sm:$0xff]  }
 0x385   :  { %5743 = vmatpush1.bf16.msra.mxu0 %v7500_v56  ;;  %v7566_v56 = vld [vmem:[%s10428_s7 + $0xcf0] ss:$28 sps:$4 sm:$0xff]   ;;  %v7575_v62 = vld [vmem:[%s10428_s7 + $0x240] ss:$28 sps:$4 sm:$0xff]  }
 0x386   :  { %5784 = vmatpush1.bf16.msra.mxu1 %v7503_v58  ;;  %v5533_v1 = vpop.f32.mrf.mxu0  ;;  %5744 = vmatprep.subr.bf16.mxu0 %v7508_v59  ;;  %v7574_v58 = vld [vmem:[%s10428_s7 + $0xcbc] ss:$28 sps:$4 sm:$0xff]   ;;  %v7577_v59 = vld [vmem:[%s10428_s7 + $0x244] ss:$28 sps:$4 sm:$0xff]  }
 0x387   :  { %5785 = vmatprep.subr.bf16.mxu1 %v7511_v61  ;;  %v7572_v61 = vld [vmem:[%s10428_s7 + $0xcb8] ss:$28 sps:$4 sm:$0xff]   ;;  %v7583_v1 = vld [vmem:[%s10428_s7 + $0x20c] ss:$28 sps:$4 sm:$0xff]  }
 0x389   :  { %5745 = vmatpush1.bf16.msra.mxu0 %v7506_v0  ;;  %v7580_v0 = vld [vmem:[%s10428_s7 + $0xc84] ss:$28 sps:$4 sm:$0xff]  }
 0x38a   :  { %5786 = vmatpush1.bf16.msra.mxu1 %v7509_v2  ;;  %5746 = vmatprep.subr.bf16.mxu0 %v7514_v3  ;;  %v7578_v2 = vld [vmem:[%s10428_s7 + $0xc80] ss:$28 sps:$4 sm:$0xff]   ;;  %v7581_v3 = vld [vmem:[%s10428_s7 + $0x208] ss:$28 sps:$4 sm:$0xff]  }
 0x38b   :  { %5787 = vmatprep.subr.bf16.mxu1 %v7517_v13  ;;  %v7586_v13 = vld [vmem:[%s10428_s7 + $0xc4c] ss:$28 sps:$4 sm:$0xff]  }
 0x38d   :  { %5747 = vmatpush1.bf16.msra.mxu0 %v7512_v63  ;;  %v7589_v63 = vld [vmem:[%s10428_s7 + $0x1d4] ss:$28 sps:$4 sm:$0xff]  }
 0x38e   :  { %5788 = vmatpush1.bf16.msra.mxu1 %v7515_v6  ;;  %5748 = vmatprep.subr.bf16.mxu0 %v7520_v14  ;;  %v7584_v6 = vld [vmem:[%s10428_s7 + $0xc48] ss:$28 sps:$4 sm:$0xff]   ;;  %v7587_v14 = vld [vmem:[%s10428_s7 + $0x1d0] ss:$28 sps:$4 sm:$0xff]  }
 0x38f   :  { %5789 = vmatprep.subr.bf16.mxu1 %v7523_v7  ;;  %v7592_v7 = vld [vmem:[%s10428_s7 + $0x51c] ss:$28 sps:$4 sm:$0xff]  }
 0x391   :  { %5749 = vmatpush1.bf16.msra.mxu0 %v7518_v15  ;;  %v7595_v15 = vld [vmem:[%s10428_s7 + $0x89c] ss:$28 sps:$4 sm:$0xff]  }
 0x392   :  { %5790 = vmatpush1.bf16.msra.mxu1 %v7521_v8  ;;  %5750 = vmatprep.subr.bf16.mxu0 %v7526_v16  ;;  %v7590_v8 = vld [vmem:[%s10428_s7 + $0x518] ss:$28 sps:$4 sm:$0xff]  }
 0x393   :  { %5791 = vmatprep.subr.bf16.mxu1 %v7529_v10  ;;  %v7593_v16 = vld [vmem:[%s10428_s7 + $0x898] ss:$28 sps:$4 sm:$0xff]   ;;  %v7598_v10 = vld [vmem:[%s10428_s7 + $0x4e4] ss:$28 sps:$4 sm:$0xff]  }
 0x395   :  { %5751 = vmatpush1.bf16.msra.mxu0 %v7524_v12 }
 0x396   :  { %5792 = vmatpush1.bf16.msra.mxu1 %v7527_v5  ;;  %5752 = vmatprep.subr.bf16.mxu0 %v7532_v18  ;;  %v7601_v5 = vld [vmem:[%s10428_s7 + $0x864] ss:$28 sps:$4 sm:$0xff]  }
 0x397   :  { %5793 = vmatprep.subr.bf16.mxu1 %v7535_v19  ;;  %v7596_v19 = vld [vmem:[%s10428_s7 + $0x4e0] ss:$28 sps:$4 sm:$0xff]  }
 0x399   :  { %5753 = vmatpush1.bf16.msra.mxu0 %v7530_v20 }
 0x39a   :  { %5794 = vmatpush1.bf16.msra.mxu1 %v7533_v21  ;;  %5754 = vmatprep.subr.bf16.mxu0 %v7538_v22  ;;  %v7599_v21 = vld [vmem:[%s10428_s7 + $0x860] ss:$28 sps:$4 sm:$0xff]   ;;  %v7604_v22 = vld [vmem:[%s10428_s7 + $0x4ac] ss:$28 sps:$4 sm:$0xff]  }
 0x39b   :  { %5795 = vmatprep.subr.bf16.mxu1 %v7541_v24 }
 0x39d   :  { %5755 = vmatpush1.bf16.msra.mxu0 %v7536_v26  ;;  %v7602_v26 = vld [vmem:[%s10428_s7 + $0x4a8] ss:$28 sps:$4 sm:$0xff]  }
 0x39e   :  { %5796 = vmatpush1.bf16.msra.mxu1 %v7539_v27  ;;  %5756 = vmatprep.subr.bf16.mxu0 %v7544_v29  ;;  %v7605_v29 = vld [vmem:[%s10428_s7 + $0x828] ss:$28 sps:$4 sm:$0xff]  }
 0x39f   :  { %5797 = vmatprep.subr.bf16.mxu1 %v7547_v32  ;;  %v7610_v32 = vld [vmem:[%s10428_s7 + $0x474] ss:$28 sps:$4 sm:$0xff]  }
 0x3a1   :  { %5757 = vmatpush2.bf16.msra.mxu0 %v7542_v33  ;;  %v7613_v33 = vld [vmem:[%s10428_s7 + $0x7f4] ss:$28 sps:$4 sm:$0xff]  }
 0x3a2   :  { %5798 = vmatpush2.bf16.msra.mxu1 %v7545_v35  ;;  %5758 = vmatprep.subr.bf16.mxu0 %v7550_v36  ;;  %v7608_v35 = vld [vmem:[%s10428_s7 + $0x470] ss:$28 sps:$4 sm:$0xff]  }
 0x3a3   :  { %5799 = vmatprep.subr.bf16.mxu1 %v7553_v37  ;;  %v7611_v36 = vld [vmem:[%s10428_s7 + $0x7f0] ss:$28 sps:$4 sm:$0xff]   ;;  %v7616_v37 = vld [vmem:[%s10428_s7 + $0x43c] ss:$28 sps:$4 sm:$0xff]  }
 0x3a5   :  { %5759 = vmatpush2.bf16.msra.mxu0 %v7548_v38  ;;  %v7619_v38 = vld [vmem:[%s10428_s7 + $0x7bc] ss:$28 sps:$4 sm:$0xff]  }
 0x3a6   :  { %5800 = vmatpush2.bf16.msra.mxu1 %v7551_v39  ;;  %5760 = vmatprep.subr.bf16.mxu0 %v7556_v40  ;;  %v7614_v39 = vld [vmem:[%s10428_s7 + $0x438] ss:$28 sps:$4 sm:$0xff]  }
 0x3a7   :  { %5801 = vmatprep.subr.bf16.mxu1 %v7559_v41  ;;  %v7617_v40 = vld [vmem:[%s10428_s7 + $0x7b8] ss:$28 sps:$4 sm:$0xff]   ;;  %v7622_v41 = vld [vmem:[%s10428_s7 + $0x404] ss:$28 sps:$4 sm:$0xff]  }
 0x3a9   :  { %5761 = vmatpush2.bf16.msra.mxu0 %v7554_v42  ;;  %v7625_v42 = vld [vmem:[%s10428_s7 + $0x784] ss:$28 sps:$4 sm:$0xff]  }
 0x3aa   :  { %5802 = vmatpush2.bf16.msra.mxu1 %v7557_v44  ;;  %5762 = vmatprep.subr.bf16.mxu0 %v7562_v46  ;;  %v7620_v44 = vld [vmem:[%s10428_s7 + $0x400] ss:$28 sps:$4 sm:$0xff]  }
 0x3ab   :  { %5803 = vmatprep.subr.bf16.mxu1 %v7565_v47  ;;  %v7623_v46 = vld [vmem:[%s10428_s7 + $0x780] ss:$28 sps:$4 sm:$0xff]   ;;  %v7628_v47 = vld [vmem:[%s10428_s7 + $0x3cc] ss:$28 sps:$4 sm:$0xff]  }
 0x3ad   :  { %5763 = vmatpush2.bf16.msra.mxu0 %v7560_v30  ;;  %v7631_v30 = vld [vmem:[%s10428_s7 + $0x74c] ss:$28 sps:$4 sm:$0xff]  }
 0x3ae   :  { %5804 = vmatpush2.bf16.msra.mxu1 %v7563_v31  ;;  %5764 = vmatprep.subr.bf16.mxu0 %v7568_v51  ;;  %v7626_v31 = vld [vmem:[%s10428_s7 + $0x3c8] ss:$28 sps:$4 sm:$0xff]  }
 0x3af   :  { %5805 = vmatprep.subr.bf16.mxu1 %v7571_v53  ;;  %v7629_v51 = vld [vmem:[%s10428_s7 + $0x748] ss:$28 sps:$4 sm:$0xff]   ;;  %v7634_v53 = vld [vmem:[%s10428_s7 + $0x394] ss:$28 sps:$4 sm:$0xff]  }
 0x3b1   :  { %5765 = vmatpush2.bf16.msra.mxu0 %v7566_v56  ;;  %v7637_v56 = vld [vmem:[%s10428_s7 + $0x714] ss:$28 sps:$4 sm:$0xff]  }
 0x3b2   :  { %5806 = vmatpush2.bf16.msra.mxu1 %v7569_v57  ;;  %5766 = vmatprep.subr.bf16.mxu0 %v7574_v58  ;;  %v7632_v57 = vld [vmem:[%s10428_s7 + $0x390] ss:$28 sps:$4 sm:$0xff]  }
 0x3b3   :  { %5807 = vmatprep.subr.bf16.mxu1 %v7577_v59  ;;  %v7635_v58 = vld [vmem:[%s10428_s7 + $0x710] ss:$28 sps:$4 sm:$0xff]   ;;  %v7640_v59 = vld [vmem:[%s10428_s7 + $0x6dc] ss:$28 sps:$4 sm:$0xff]  }
 0x3b5   :  { %5767 = vmatpush2.bf16.msra.mxu0 %v7572_v61  ;;  %v7643_v61 = vld [vmem:[%s10428_s7 + $0xa5c] ss:$28 sps:$4 sm:$0xff]  }
 0x3b6   :  { %5808 = vmatpush2.bf16.msra.mxu1 %v7575_v62  ;;  %5768 = vmatprep.subr.bf16.mxu0 %v7580_v0  ;;  %v7638_v62 = vld [vmem:[%s10428_s7 + $0x6d8] ss:$28 sps:$4 sm:$0xff]  }
 0x3b7   :  { %5809 = vmatprep.subr.bf16.mxu1 %v7583_v1  ;;  %v7641_v0 = vld [vmem:[%s10428_s7 + $0xa58] ss:$28 sps:$4 sm:$0xff]   ;;  %v7646_v1 = vld [vmem:[%s10428_s7 + $0x6a4] ss:$28 sps:$4 sm:$0xff]  }
 0x3b9   :  { %5769 = vmatpush2.bf16.msra.mxu0 %v7578_v2  ;;  %v7649_v2 = vld [vmem:[%s10428_s7 + $0xa24] ss:$28 sps:$4 sm:$0xff]  }
 0x3ba   :  { %5810 = vmatpush2.bf16.msra.mxu1 %v7581_v3  ;;  %5770 = vmatprep.subr.bf16.mxu0 %v7586_v13  ;;  %v7644_v3 = vld [vmem:[%s10428_s7 + $0x6a0] ss:$28 sps:$4 sm:$0xff]  }
 0x3bb   :  { %5811 = vmatprep.subr.bf16.mxu1 %v7589_v63  ;;  %v7647_v13 = vld [vmem:[%s10428_s7 + $0xa20] ss:$28 sps:$4 sm:$0xff]   ;;  %v7652_v63 = vld [vmem:[%s10428_s7 + $0x66c] ss:$28 sps:$4 sm:$0xff]  }
 0x3bd   :  { %5771 = vmatpush2.bf16.msra.mxu0 %v7584_v6  ;;  %v7655_v6 = vld [vmem:[%s10428_s7 + $0x9ec] ss:$28 sps:$4 sm:$0xff]  }
 0x3be   :  { %5812 = vmatpush2.bf16.msra.mxu1 %v7587_v14  ;;  %5822 = vmatprep.subr.bf16.mxu0 %v7592_v7  ;;  %v7650_v14 = vld [vmem:[%s10428_s7 + $0x668] ss:$28 sps:$4 sm:$0xff]  }
 0x3bf   :  { %5863 = vmatprep.subr.bf16.mxu1 %v7595_v15  ;;  %v7653_v7 = vld [vmem:[%s10428_s7 + $0x9e8] ss:$28 sps:$4 sm:$0xff]   ;;  %v7658_v15 = vld [vmem:[%s10428_s7 + $0x634] ss:$28 sps:$4 sm:$0xff]  }
 0x3c0   :  { %5773 = vmatmul.mubr.bf16.vlgmr.msra.gmra.mxu0 %v9485_v17  ;;  %v5569_v12 = vpop.f32.mrf.mxu1 }
 0x3c1   :  { %5814 = vmatmul.mubr.bf16.vlgmr.msra.gmra.mxu1 %v9160_v25  ;;  %v9902_v18 = vadd.f32 %v5569_v12, %v9701_v55  ;;  %5823 = vmatpush1.bf16.msra.mxu0 %v7590_v8  ;;  %v7607_v55 = vld [vmem:[%s10428_s7 + $0x82c] ss:$28 sps:$4 sm:$0xff]   ;;  %v7661_v8 = vld [vmem:[%s10428_s7 + $0x9b4] ss:$28 sps:$4 sm:$0xff]   ;;  %v7664_v12 = vld [vmem:[%s10428_s7 + $0x5fc] ss:$28 sps:$4 sm:$0xff]  }
 0x3c2   :  { %5854 = vmatprep.mubr.bf16.mxu0 %v9180_v49  ;;  %5864 = vmatpush1.bf16.msra.mxu1 %v7593_v16  ;;  %v9908_v20 = vpop.f32.mrf.mxu1  ;;  %v7656_v16 = vld [vmem:[%s10428_s7 + $0x630] ss:$28 sps:$4 sm:$0xff]  }
 0x3c3   :  { %5895 = vmatprep.mubr.bf16.mxu1 %v9368_v4  ;;  %5824 = vmatprep.subr.bf16.mxu0 %v7598_v10  ;;  %v7659_v10 = vld [vmem:[%s10428_s7 + $0x9b0] ss:$28 sps:$4 sm:$0xff]  }
 0x3c4   :  { %5865 = vmatprep.subr.bf16.mxu1 %v7601_v5  ;;  %v5573_v24 = vpop.f32.mrf.mxu1  ;;  %v7667_v5 = vld [vmem:[%s10428_s7 + $0x97c] ss:$28 sps:$4 sm:$0xff]  }
 0x3c5   :  { %5825 = vmatpush1.bf16.msra.mxu0 %v7596_v19  ;;  %v7662_v19 = vld [vmem:[%s10428_s7 + $0x5f8] ss:$28 sps:$4 sm:$0xff]   ;;  %v7668_v24 = vld [vmem:[%s10428_s7 + $0x5c0] ss:$28 sps:$4 sm:$0xff]  }
 0x3c6   :  { %5866 = vmatpush1.bf16.msra.mxu1 %v7599_v21  ;;  %v5574_v27 = vpop.f32.mrf.mxu1  ;;  %5826 = vmatprep.subr.bf16.mxu0 %v7604_v22  ;;  %v7665_v21 = vld [vmem:[%s10428_s7 + $0x978] ss:$28 sps:$4 sm:$0xff]   ;;  %v7670_v22 = vld [vmem:[%s10428_s7 + $0x5c4] ss:$28 sps:$4 sm:$0xff]  }
 0x3c7   :  { %5867 = vmatprep.subr.bf16.mxu1 %v7607_v55  ;;  %v7673_v55 = vld [vmem:[%s10428_s7 + $0x944] ss:$28 sps:$4 sm:$0xff]   ;;  %v7676_v27 = vld [vmem:[%s10428_s7 + $0x58c] ss:$28 sps:$4 sm:$0xff]  }
 0x3c9   :  { %5827 = vmatpush1.bf16.msra.mxu0 %v7602_v26  ;;  %v7671_v26 = vld [vmem:[%s10428_s7 + $0x940] ss:$28 sps:$4 sm:$0xff]  }
 0x3ca   :  { %5868 = vmatpush1.bf16.msra.mxu1 %v7605_v29  ;;  %5828 = vmatprep.subr.bf16.mxu0 %v7610_v32  ;;  %v7679_v29 = vld [vmem:[%s10428_s7 + $0x90c] ss:$28 sps:$4 sm:$0xff]  }
 0x3cb   :  { %5869 = vmatprep.subr.bf16.mxu1 %v7613_v33  ;;  %v7674_v32 = vld [vmem:[%s10428_s7 + $0x588] ss:$28 sps:$4 sm:$0xff]  }
 0x3cc   :  { %v7677_v33 = vld [vmem:[%s10428_s7 + $0x908] ss:$28 sps:$4 sm:$0xff]  }
 0x3cd   :  { %5829 = vmatpush1.bf16.msra.mxu0 %v7608_v35  ;;  %v7682_v35 = vld [vmem:[%s10428_s7 + $0x554] ss:$28 sps:$4 sm:$0xff]  }
 0x3ce   :  { %5870 = vmatpush1.bf16.msra.mxu1 %v7611_v36  ;;  %5830 = vmatprep.subr.bf16.mxu0 %v7616_v37  ;;  %v7685_v36 = vld [vmem:[%s10428_s7 + $0x8d4] ss:$28 sps:$4 sm:$0xff]  }
 0x3cf   :  { %5871 = vmatprep.subr.bf16.mxu1 %v7619_v38  ;;  %v7680_v37 = vld [vmem:[%s10428_s7 + $0x550] ss:$28 sps:$4 sm:$0xff]  }
 0x3d0   :  { %v7683_v38 = vld [vmem:[%s10428_s7 + $0x8d0] ss:$28 sps:$4 sm:$0xff]  }
 0x3d1   :  { %5831 = vmatpush1.bf16.msra.mxu0 %v7614_v39  ;;  %v7688_v39 = vld [vmem:[%s10428_s7 + $0xc1c] ss:$28 sps:$4 sm:$0xff]  }
 0x3d2   :  { %5872 = vmatpush1.bf16.msra.mxu1 %v7617_v40  ;;  %5832 = vmatprep.subr.bf16.mxu0 %v7622_v41  ;;  %v7689_v40 = vld [vmem:[%s10428_s7 + $0x360] ss:$28 sps:$4 sm:$0xff]   ;;  %v7686_v41 = vld [vmem:[%s10428_s7 + $0xc18] ss:$28 sps:$4 sm:$0xff]  }
 0x3d3   :  { %5873 = vmatprep.subr.bf16.mxu1 %v7625_v42  ;;  %v7690_v42 = vld [vmem:[%s10428_s7 + $0x1a0] ss:$28 sps:$4 sm:$0xff]  }
 0x3d5   :  { %5833 = vmatpush1.bf16.msra.mxu0 %v7620_v44  ;;  %v7693_v44 = vld [vmem:[%s10428_s7 + $0xbe4] ss:$28 sps:$4 sm:$0xff]  }
 0x3d6   :  { %5874 = vmatpush1.bf16.msra.mxu1 %v7623_v46  ;;  %5834 = vmatprep.subr.bf16.mxu0 %v7628_v47 }
 0x3d7   :  { %5875 = vmatprep.subr.bf16.mxu1 %v7631_v30  ;;  %v7694_v30 = vld [vmem:[%s10428_s7 + $0x328] ss:$28 sps:$4 sm:$0xff]  }
 0x3d9   :  { %5835 = vmatpush1.bf16.msra.mxu0 %v7626_v31  ;;  %v5572_v31 = vadd.f32 %v9908_v20, %v9714_v60  ;;  %v7698_v60 = vld [vmem:[%s10428_s7 + $0xbac] ss:$28 sps:$4 sm:$0xff]  }
 0x3da   :  { %5876 = vmatpush1.bf16.msra.mxu1 %v7629_v51  ;;  %5836 = vmatprep.subr.bf16.mxu0 %v7634_v53  ;;  %v7691_v53 = vld [vmem:[%s10428_s7 + $0xbe0] ss:$28 sps:$4 sm:$0xff]   ;;  %v7699_v20 = vld [vmem:[%s10428_s7 + $0x2f0] ss:$28 sps:$4 sm:$0xff]  }
 0x3db   :  { %5877 = vmatprep.subr.bf16.mxu1 %v7637_v56 }
 0x3dd   :  { %5837 = vmatpush1.bf16.msra.mxu0 %v7632_v57 }
 0x3de   :  { %5878 = vmatpush1.bf16.msra.mxu1 %v7635_v58  ;;  %5838 = vmatprep.subr.bf16.mxu0 %v7640_v59  ;;  %v7695_v58 = vld [vmem:[%s10428_s7 + $0x168] ss:$28 sps:$4 sm:$0xff]  }
 0x3df   :  { %5879 = vmatprep.subr.bf16.mxu1 %v7643_v61 }
 0x3e1   :  { %5839 = vmatpush2.bf16.msra.mxu0 %v7638_v62  ;;  %v7696_v62 = vld [vmem:[%s10428_s7 + $0xba8] ss:$28 sps:$4 sm:$0xff]  }
 0x3e2   :  { %5880 = vmatpush2.bf16.msra.mxu1 %v7641_v0  ;;  %5840 = vmatprep.subr.bf16.mxu0 %v7646_v1 }
 0x3e3   :  { %5881 = vmatprep.subr.bf16.mxu1 %v7649_v2  ;;  %v7703_v2 = vld [vmem:[%s10428_s7 + $0xb74] ss:$28 sps:$4 sm:$0xff]  }
 0x3e5   :  { %5841 = vmatpush2.bf16.msra.mxu0 %v7644_v3  ;;  %v7704_v3 = vld [vmem:[%s10428_s7 + $0x2b8] ss:$28 sps:$4 sm:$0xff]  }
 0x3e6   :  { %5882 = vmatpush2.bf16.msra.mxu1 %v7647_v13  ;;  %5842 = vmatprep.subr.bf16.mxu0 %v7652_v63  ;;  %v7701_v13 = vld [vmem:[%s10428_s7 + $0xb70] ss:$28 sps:$4 sm:$0xff]   ;;  %v7705_v63 = vld [vmem:[%s10428_s7 + $0xf8] ss:$28 sps:$4 sm:$0xff]  }
 0x3e7   :  { %5883 = vmatprep.subr.bf16.mxu1 %v7655_v6  ;;  %v7708_v6 = vld [vmem:[%s10428_s7 + $0xb3c] ss:$28 sps:$4 sm:$0xff]  }
 0x3e9   :  { %5843 = vmatpush2.bf16.msra.mxu0 %v7650_v14  ;;  %v7709_v14 = vld [vmem:[%s10428_s7 + $0x280] ss:$28 sps:$4 sm:$0xff]  }
 0x3ea   :  { %5884 = vmatpush2.bf16.msra.mxu1 %v7653_v7  ;;  %5844 = vmatprep.subr.bf16.mxu0 %v7658_v15  ;;  %v7706_v7 = vld [vmem:[%s10428_s7 + $0xb38] ss:$28 sps:$4 sm:$0xff]   ;;  %v7710_v15 = vld [vmem:[%s10428_s7 + $0xc0] ss:$28 sps:$4 sm:$0xff]  }
 0x3eb   :  { %5885 = vmatprep.subr.bf16.mxu1 %v7661_v8  ;;  %v7713_v8 = vld [vmem:[%s10428_s7 + $0xb04] ss:$28 sps:$4 sm:$0xff]  }
 0x3ed   :  { %5845 = vmatpush2.bf16.msra.mxu0 %v7656_v16  ;;  %v7714_v16 = vld [vmem:[%s10428_s7 + $0x248] ss:$28 sps:$4 sm:$0xff]  }
 0x3ee   :  { %5886 = vmatpush2.bf16.msra.mxu1 %v7659_v10  ;;  %5846 = vmatprep.subr.bf16.mxu0 %v7664_v12  ;;  %v7711_v12 = vld [vmem:[%s10428_s7 + $0xb00] ss:$28 sps:$4 sm:$0xff]  }
 0x3ef   :  { %5887 = vmatprep.subr.bf16.mxu1 %v7667_v5 }
 0x3f1   :  { %5847 = vmatpush2.bf16.msra.mxu0 %v7662_v19  ;;  %v7715_v19 = vld [vmem:[%s10428_s7 + $0x88] ss:$28 sps:$4 sm:$0xff]  }
 0x3f2   :  { %5888 = vmatpush2.bf16.msra.mxu1 %v7665_v21  ;;  %5848 = vmatprep.subr.bf16.mxu0 %v7670_v22  ;;  %v7718_v21 = vld [vmem:[%s10428_s7 + $0xacc] ss:$28 sps:$4 sm:$0xff]  }
 0x3f3   :  { %5889 = vmatprep.subr.bf16.mxu1 %v7673_v55  ;;  %v7719_v22 = vld [vmem:[%s10428_s7 + $0x210] ss:$28 sps:$4 sm:$0xff]  }
 0x3f5   :  { %5849 = vmatpush2.bf16.msra.mxu0 %v7668_v24  ;;  %v7716_v24 = vld [vmem:[%s10428_s7 + $0xac8] ss:$28 sps:$4 sm:$0xff]  }
 0x3f6   :  { %5890 = vmatpush2.bf16.msra.mxu1 %v7671_v26  ;;  %5850 = vmatprep.subr.bf16.mxu0 %v7676_v27  ;;  %v7720_v26 = vld [vmem:[%s10428_s7 + $0x50] ss:$28 sps:$4 sm:$0xff]  }
 0x3f7   :  { %5891 = vmatprep.subr.bf16.mxu1 %v7679_v29  ;;  %v7723_v27 = vld [vmem:[%s10428_s7 + $0xa94] ss:$28 sps:$4 sm:$0xff]  }
 0x3f8   :  { %v7724_v29 = vld [vmem:[%s10428_s7 + $0x1d8] ss:$28 sps:$4 sm:$0xff]  }
 0x3f9   :  { %5851 = vmatpush2.bf16.msra.mxu0 %v7674_v32  ;;  %v7721_v32 = vld [vmem:[%s10428_s7 + $0xa90] ss:$28 sps:$4 sm:$0xff]  }
 0x3fa   :  { %5892 = vmatpush2.bf16.msra.mxu1 %v7677_v33  ;;  %5852 = vmatprep.subr.bf16.mxu0 %v7682_v35  ;;  %v7725_v33 = vld [vmem:[%s10428_s7 + $0x18] ss:$28 sps:$4 sm:$0xff]  }
 0x3fb   :  { %5893 = vmatprep.subr.bf16.mxu1 %v7685_v36  ;;  %v7728_v35 = vld [vmem:[%s10428_s7 + $0xddc] ss:$28 sps:$4 sm:$0xff]  }
 0x3fc   :  { %v7729_v36 = vld [vmem:[%s10428_s7 + $0xa60] ss:$28 sps:$4 sm:$0xff]  }
 0x3fd   :  { %5853 = vmatpush2.bf16.msra.mxu0 %v7680_v37  ;;  %v7726_v37 = vld [vmem:[%s10428_s7 + $0xdd8] ss:$28 sps:$4 sm:$0xff]  }
 0x3fe   :  { %5894 = vmatpush2.bf16.msra.mxu1 %v7683_v38  ;;  %5904 = vmatprep.subr.bf16.mxu0 %v7688_v39  ;;  %v7730_v38 = vld [vmem:[%s10428_s7 + $0x8a0] ss:$28 sps:$4 sm:$0xff]  }
 0x3ff   :  { %6952 = vmatprep.subr.bf16.mxu1 %v7689_v40  ;;  %v7733_v39 = vld [vmem:[%s10428_s7 + $0xda4] ss:$28 sps:$4 sm:$0xff]  }
 0x400   :  { %v10097_v46 = vpop.f32.mrf.mxu1  ;;  %5855 = vmatmul.mubr.bf16.vlgmr.msra.gmra.mxu0 %v9188_v54  ;;  %v5610_v47 = vpop.f32.mrf.mxu0  ;;  %v7734_v40 = vld [vmem:[%s10428_s7 + $0xa28] ss:$28 sps:$4 sm:$0xff]  }
 0x401   :  { %5896 = vmatmul.mubr.bf16.vlgmr.msra.gmra.mxu1 %v9373_v11  ;;  %v5611_v51 = vadd.f32 %v5610_v47, %v9902_v18  ;;  %5905 = vmatpush1.bf16.msra.mxu0 %v7686_v41  ;;  %v7731_v41 = vld [vmem:[%s10428_s7 + $0xda0] ss:$28 sps:$4 sm:$0xff]   ;;  %v7736_v47 = vld [vmem:[%s10428_s7 + $0xd68] ss:$28 sps:$4 sm:$0xff]  }
 0x402   :  { %5936 = vmatprep.mubr.bf16.mxu0 %v9477_v9  ;;  %6953 = vmatpush3.bf16.msra.mxu1 %v7690_v42  ;;  %v10111_v56 = vpop.f32.mrf.mxu1  ;;  %v5612_v57 = vpop.f32.mrf.mxu0  ;;  %v7735_v42 = vld [vmem:[%s10428_s7 + $0x868] ss:$28 sps:$4 sm:$0xff]  }
 0x403   :  { %5977 = vmatprep.mubr.bf16.mxu1 %v8992_v23  ;;  %v5613_v18 = vadd.f32 %v5612_v57, %v5572_v31  ;;  %5906 = vmatprep.subr.bf16.mxu0 %v7693_v44  ;;  %7798 = vtanh.f32 %v5611_v51  ;;  %v7700_v23 = vld [vmem:[%s10428_s7 + $0x130] ss:$28 sps:$4 sm:$0xff]   ;;  %v7744_v31 = vld [vmem:[%s10428_s7 + $0x9b8] ss:$28 sps:$4 sm:$0xff]  }
 0x404   :  { %v5655_v59 = vpop.f32.mrf.mxu1  ;;  %6954 = vmatprep.subr.bf16.mxu1 %v7694_v30  ;;  %v5614_v61 = vpop.f32.mrf.mxu0  ;;  %v7738_v44 = vld [vmem:[%s10428_s7 + $0xd6c] ss:$28 sps:$4 sm:$0xff]   ;;  %v7743_v30 = vld [vmem:[%s10428_s7 + $0xd34] ss:$28 sps:$4 sm:$0xff]   ;;  %v7748_v57 = vld [vmem:[%s10428_s7 + $0xcfc] ss:$28 sps:$4 sm:$0xff]  }
 0x405   :  { %7800 = vtanh.f32 %v5613_v18  ;;  %5907 = vmatpush1.bf16.msra.mxu0 %v7691_v53  ;;  %v7741_v51 = vld [vmem:[%s10428_s7 + $0xd30] ss:$28 sps:$4 sm:$0xff]   ;;  %v7745_v53 = vld [vmem:[%s10428_s7 + $0x7f8] ss:$28 sps:$4 sm:$0xff]   ;;  %v7750_v18 = vld [vmem:[%s10428_s7 + $0x7c0] ss:$28 sps:$4 sm:$0xff]  }
 0x406   :  { %6955 = vmatpush3.bf16.msra.mxu1 %v7695_v58  ;;  %v5656_v0 = vpop.f32.mrf.mxu1  ;;  %v5615_v1 = vpop.f32.mrf.mxu0  ;;  %5908 = vmatprep.subr.bf16.mxu0 %v7698_v60  ;;  %v7749_v58 = vld [vmem:[%s10428_s7 + $0x980] ss:$28 sps:$4 sm:$0xff]   ;;  %v7746_v60 = vld [vmem:[%s10428_s7 + $0xcf8] ss:$28 sps:$4 sm:$0xff]   ;;  %v7754_v59 = vld [vmem:[%s10428_s7 + $0x948] ss:$28 sps:$4 sm:$0xff]  }
 0x407   :  { %6956 = vmatprep.subr.bf16.mxu1 %v7699_v20  ;;  %v7753_v20 = vld [vmem:[%s10428_s7 + $0xcc4] ss:$28 sps:$4 sm:$0xff]   ;;  %v7758_v0 = vld [vmem:[%s10428_s7 + $0xc8c] ss:$28 sps:$4 sm:$0xff]  }
 0x408   :  { %v7751_v61 = vld [vmem:[%s10428_s7 + $0xcc0] ss:$28 sps:$4 sm:$0xff]   ;;  %v7759_v1 = vld [vmem:[%s10428_s7 + $0x910] ss:$28 sps:$4 sm:$0xff]  }
 0x409   :  { %5909 = vmatpush1.bf16.msra.mxu0 %v7696_v62  ;;  %v7755_v62 = vld [vmem:[%s10428_s7 + $0x788] ss:$28 sps:$4 sm:$0xff]  }
 0x40a   :  { %6957 = vmatpush3.bf16.msra.mxu1 %v7700_v23  ;;  %5910 = vmatprep.subr.bf16.mxu0 %v7703_v2  ;;  %v7756_v23 = vld [vmem:[%s10428_s7 + $0xc88] ss:$28 sps:$4 sm:$0xff]   ;;  %v7760_v2 = vld [vmem:[%s10428_s7 + $0x750] ss:$28 sps:$4 sm:$0xff]  }
 0x40b   :  { %6958 = vmatprep.subr.bf16.mxu1 %v7704_v3  ;;  %v7763_v3 = vld [vmem:[%s10428_s7 + $0xc54] ss:$28 sps:$4 sm:$0xff]  }
 0x40d   :  { %5911 = vmatpush1.bf16.msra.mxu0 %v7701_v13  ;;  %v7764_v13 = vld [vmem:[%s10428_s7 + $0x8d8] ss:$28 sps:$4 sm:$0xff]  }
 0x40e   :  { %6959 = vmatpush3.bf16.msra.mxu1 %v7705_v63  ;;  %5912 = vmatprep.subr.bf16.mxu0 %v7708_v6  ;;  %v7761_v63 = vld [vmem:[%s10428_s7 + $0xc50] ss:$28 sps:$4 sm:$0xff]   ;;  %v7765_v6 = vld [vmem:[%s10428_s7 + $0x718] ss:$28 sps:$4 sm:$0xff]  }
 0x40f   :  { %6960 = vmatprep.subr.bf16.mxu1 %v7709_v14  ;;  %v7766_v14 = vld [vmem:[%s10428_s7 + $0x6e0] ss:$28 sps:$4 sm:$0xff]  }
 0x410   :  { %v7799_v10 = vpop.eup %7798 }
 0x411   :  { %5913 = vmatpush1.bf16.msra.mxu0 %v7706_v7  ;;  %v3125_v7 = vrot.slane %v9669_v34, %v8339_v50  ;;  %v7769_v50 = vld [vmem:[%s10428_s7 + $0x4e8] ss:$28 sps:$4 sm:$0xff]  }
 0x412   :  { %v7801_v5 = vpop.eup %7800  ;;  %6961 = vmatpush3.bf16.msra.mxu1 %v7710_v15  ;;  %5914 = vmatprep.subr.bf16.mxu0 %v7713_v8  ;;  %v7767_v15 = vld [vmem:[%s10428_s7 + $0x520] ss:$28 sps:$4 sm:$0xff]   ;;  %v7768_v8 = vld [vmem:[%s10428_s7 + $0x6a8] ss:$28 sps:$4 sm:$0xff]  }
 0x413   :  { %6962 = vmatprep.subr.bf16.mxu1 %v7714_v16  ;;  %v6948_v55 = vpack.c.bf16 %v7801_v5, %v7799_v10  ;;  %v5652_v16 = vadd.f32 %v10097_v46, %v3125_v7  ;;  %v7770_v46 = vld [vmem:[%s10428_s7 + $0x670] ss:$28 sps:$4 sm:$0xff]  }
 0x415   :  { %5915 = vmatpush1.bf16.msra.mxu0 %v7711_v12  ;;  %6141 = vst [vmem:[#allocation2] sm:$0xff] %v6948_v55  ;;  %v7771_v55 = vld [vmem:[%s10428_s7 + $0x4b0] ss:$28 sps:$4 sm:$0xff]  }
 0x416   :  { %6963 = vmatpush3.bf16.msra.mxu1 %v7715_v19  ;;  %5916 = vmatprep.subr.bf16.mxu0 %v7718_v21 }
 0x417   :  { %6964 = vmatprep.subr.bf16.mxu1 %v7719_v22 }
 0x419   :  { %5917 = vmatpush1.bf16.msra.mxu0 %v7716_v24 }
 0x41a   :  { %6965 = vmatpush3.bf16.msra.mxu1 %v7720_v26  ;;  %5918 = vmatprep.subr.bf16.mxu0 %v7723_v27  ;;  %v7772_v26 = vld [vmem:[%s10428_s7 + $0x638] ss:$28 sps:$4 sm:$0xff]  }
 0x41b   :  { %6966 = vmatprep.subr.bf16.mxu1 %v7724_v29  ;;  %v7773_v27 = vld [vmem:[%s10428_s7 + $0x478] ss:$28 sps:$4 sm:$0xff]   ;;  %v7774_v29 = vld [vmem:[%s10428_s7 + $0x600] ss:$28 sps:$4 sm:$0xff]  }
 0x41d   :  { %5919 = vmatpush1.bf16.msra.mxu0 %v7721_v32  ;;  %v7775_v32 = vld [vmem:[%s10428_s7 + $0x440] ss:$28 sps:$4 sm:$0xff]  }
 0x41e   :  { %6967 = vmatpush3.bf16.msra.mxu1 %v7725_v33  ;;  %5920 = vmatprep.subr.bf16.mxu0 %v7728_v35  ;;  %v7776_v33 = vld [vmem:[%s10428_s7 + $0x5c8] ss:$28 sps:$4 sm:$0xff]  }
 0x41f   :  { %6996 = vmatprep.subr.bf16.mxu1 %v7729_v36  ;;  %v7777_v35 = vld [vmem:[%s10428_s7 + $0x408] ss:$28 sps:$4 sm:$0xff]   ;;  %v7778_v36 = vld [vmem:[%s10428_s7 + $0x590] ss:$28 sps:$4 sm:$0xff]  }
 0x421   :  { %5978 = vmatmul.mubr.bf16.vlgmr.msra.gmra.mxu1 %v9160_v25  ;;  %5921 = vmatpush2.bf16.msra.mxu0 %v7726_v37  ;;  %v7739_v25 = vld [vmem:[%s10428_s7 + $0x9f0] ss:$28 sps:$4 sm:$0xff]  }
 0x422   :  { %6997 = vmatpush3.bf16.msra.mxu1 %v7730_v38  ;;  %6057 = vmatprep.mubr.bf16.mxu1 %v9368_v4  ;;  %v7740_v4 = vld [vmem:[%s10428_s7 + $0x830] ss:$28 sps:$4 sm:$0xff]   ;;  %v7780_v38 = vld [vmem:[%s10428_s7 + $0x558] ss:$28 sps:$4 sm:$0xff]  }
 0x423   :  { %5922 = vmatprep.subr.bf16.mxu0 %v7733_v39  ;;  %6998 = vmatprep.subr.bf16.mxu1 %v7734_v40  ;;  %v7779_v37 = vld [vmem:[%s10428_s7 + $0x3d0] ss:$28 sps:$4 sm:$0xff]   ;;  %v7781_v39 = vld [vmem:[%s10428_s7 + $0x398] ss:$28 sps:$4 sm:$0xff]   ;;  %v7782_v40 = vld [vmem:[%s10428_s7 + $0xde0] ss:$28 sps:$4 sm:$0xff]  }
 0x425   :  { %5923 = vmatpush2.bf16.msra.mxu0 %v7731_v41  ;;  %v7783_v41 = vld [vmem:[%s10428_s7 + $0xc20] ss:$28 sps:$4 sm:$0xff]  }
 0x426   :  { %6999 = vmatpush3.bf16.msra.mxu1 %v7735_v42  ;;  %5924 = vmatprep.subr.bf16.mxu0 %v7738_v44  ;;  %v7784_v42 = vld [vmem:[%s10428_s7 + $0xda8] ss:$28 sps:$4 sm:$0xff]  }
 0x427   :  { %7000 = vmatprep.subr.bf16.mxu1 %v7739_v25  ;;  %v7785_v44 = vld [vmem:[%s10428_s7 + $0xbe8] ss:$28 sps:$4 sm:$0xff]   ;;  %v7786_v25 = vld [vmem:[%s10428_s7 + $0xd70] ss:$28 sps:$4 sm:$0xff]  }
 0x429   :  { %5925 = vmatpush2.bf16.msra.mxu0 %v7736_v47  ;;  %v7787_v47 = vld [vmem:[%s10428_s7 + $0xbb0] ss:$28 sps:$4 sm:$0xff]  }
 0x42a   :  { %7001 = vmatpush3.bf16.msra.mxu1 %v7740_v4  ;;  %5926 = vmatprep.subr.bf16.mxu0 %v7743_v30  ;;  %v7790_v4 = vld [vmem:[%s10428_s7 + $0xd00] ss:$28 sps:$4 sm:$0xff]  }
 0x42b   :  { %7002 = vmatprep.subr.bf16.mxu1 %v7744_v31  ;;  %v7791_v30 = vld [vmem:[%s10428_s7 + $0xb40] ss:$28 sps:$4 sm:$0xff]   ;;  %v7792_v31 = vld [vmem:[%s10428_s7 + $0xcc8] ss:$28 sps:$4 sm:$0xff]  }
 0x42d   :  { %5927 = vmatpush2.bf16.msra.mxu0 %v7741_v51  ;;  %v7793_v51 = vld [vmem:[%s10428_s7 + $0xb08] ss:$28 sps:$4 sm:$0xff]  }
 0x42e   :  { %7003 = vmatpush3.bf16.msra.mxu1 %v7745_v53  ;;  %5928 = vmatprep.subr.bf16.mxu0 %v7748_v57  ;;  %v7794_v53 = vld [vmem:[%s10428_s7 + $0xc90] ss:$28 sps:$4 sm:$0xff]  }
 0x42f   :  { %7004 = vmatprep.subr.bf16.mxu1 %v7749_v58  ;;  %v7795_v57 = vld [vmem:[%s10428_s7 + $0xad0] ss:$28 sps:$4 sm:$0xff]   ;;  %v7796_v58 = vld [vmem:[%s10428_s7 + $0xc58] ss:$28 sps:$4 sm:$0xff]  }
 0x431   :  { %5929 = vmatpush2.bf16.msra.mxu0 %v7746_v60  ;;  %v10397_v60 = vld [vmem:[%s10429_s8] sm:$0x7f] }
 0x432   :  { %7005 = vmatpush3.bf16.msra.mxu1 %v7750_v18  ;;  %5930 = vmatprep.subr.bf16.mxu0 %v7753_v20  ;;  %v3129_v18 = vrot.slane %v10397_v60, %v8345_v52  ;;  %v7797_v20 = vld [vmem:[%s10428_s7 + $0xa98] ss:$28 sps:$4 sm:$0xff]  }
 0x433   :  { %7006 = vmatprep.subr.bf16.mxu1 %v7754_v59 }
 0x434   :  { %v5654_v59 = vadd.f32 %v10111_v56, %v3129_v18 }
 0x435   :  { %5931 = vmatpush2.bf16.msra.mxu0 %v7751_v61 }
 0x436   :  { %7007 = vmatpush3.bf16.msra.mxu1 %v7755_v62  ;;  %5932 = vmatprep.subr.bf16.mxu0 %v7758_v0 }
 0x437   :  { %7008 = vmatprep.subr.bf16.mxu1 %v7759_v1 }
 0x439   :  { %5933 = vmatpush2.bf16.msra.mxu0 %v7756_v23 }
 0x43a   :  { %7009 = vmatpush3.bf16.msra.mxu1 %v7760_v2  ;;  %5934 = vmatprep.subr.bf16.mxu0 %v7763_v3 }
 0x43b   :  { %7010 = vmatprep.subr.bf16.mxu1 %v7764_v13 }
 0x43d   :  { %5935 = vmatpush2.bf16.msra.mxu0 %v7761_v63 }
 0x43e   :  { %7011 = vmatpush3.bf16.msra.mxu1 %v7765_v6  ;;  %6974 = vmatprep.subr.bf16.mxu0 %v7766_v14 }
 0x440   :  { %v5692_v10 = vpop.f32.mrf.mxu0  ;;  %v5733_v12 = vpop.f32.mrf.mxu1  ;;  %5937 = vmatmul.mubr.bf16.vlgmr.msra.gmra.mxu0 %v9485_v17 }
 0x441   :  { %v5693_v5 = vadd.f32 %v5692_v10, %v5652_v16  ;;  %6058 = vmatmul.mubr.bf16.vlgmr.msra.gmra.mxu1 %v9373_v11  ;;  %6975 = vmatpush3.bf16.msra.mxu0 %v7767_v15 }
 0x442   :  { %6017 = vmatprep.mubr.bf16.mxu0 %v9180_v49  ;;  %v10305_v34 = vpop.f32.mrf.mxu0  ;;  %v10307_v19 = vpop.f32.mrf.mxu1  ;;  %6976 = vmatprep.subr.bf16.mxu0 %v7768_v8 }
 0x443   :  { %v10312_v21 = vadd.f32 %v5733_v12, %v5693_v5  ;;  %v5695_v61 = vadd.f32 %v10305_v34, %v5654_v59 }
 0x444   :  { %v5696_v22 = vpop.f32.mrf.mxu0  ;;  %v5737_v11 = vpop.f32.mrf.mxu1 }
 0x445   :  { %6977 = vmatpush3.bf16.msra.mxu0 %v7769_v50  ;;  %v5736_v0 = vadd.f32 %v10307_v19, %v5695_v61 }
 0x446   :  { %v5697_v24 = vpop.f32.mrf.mxu0  ;;  %v5738_v49 = vpop.f32.mrf.mxu1  ;;  %6978 = vmatprep.subr.bf16.mxu0 %v7770_v46 }
 0x447   :  { %v3137_v24 = vrot.slane %v10397_v60, %v958_v48 }
 0x449   :  { %6979 = vmatpush3.bf16.msra.mxu0 %v7771_v55  ;;  %v3133_v55 = vrot.slane %v10397_v60, %v954_v43 }
 0x44a   :  { %6980 = vmatprep.subr.bf16.mxu0 %v7772_v26 }
 0x44d   :  { %6981 = vmatpush3.bf16.msra.mxu0 %v7773_v27 }
 0x44e   :  { %6982 = vmatprep.subr.bf16.mxu0 %v7774_v29 }
 0x451   :  { %6983 = vmatpush3.bf16.msra.mxu0 %v7775_v32 }
 0x452   :  { %6984 = vmatprep.subr.bf16.mxu0 %v7776_v33 }
 0x455   :  { %6985 = vmatpush3.bf16.msra.mxu0 %v7777_v35 }
 0x456   :  { %6986 = vmatprep.subr.bf16.mxu0 %v7778_v36 }
 0x459   :  { %6987 = vmatpush3.bf16.msra.mxu0 %v7779_v37 }
 0x45a   :  { %6988 = vmatprep.subr.bf16.mxu0 %v7780_v38 }
 0x45d   :  { %6989 = vmatpush3.bf16.msra.mxu0 %v7781_v39 }
 0x45e   :  { %7018 = vmatprep.subr.bf16.mxu0 %v7782_v40 }
 0x460   :  { %6018 = vmatmul.mubr.bf16.vlgmr.msra.gmra.mxu0 %v9188_v54  ;;  %v7788_v54 = vld [vmem:[%s10428_s7 + $0xd38] ss:$28 sps:$4 sm:$0xff]  }
 0x461   :  { %7019 = vmatpush3.bf16.msra.mxu0 %v7783_v41  ;;  %6097 = vmatprep.mubr.bf16.mxu0 %v9477_v9  ;;  %v7789_v9 = vld [vmem:[%s10428_s7 + $0xb78] ss:$28 sps:$4 sm:$0xff]   ;;  %s7836_s7 = smov [#allocation2]  }
 0x462   :  { %7020 = vmatprep.subr.bf16.mxu0 %v7784_v42  ;;  %s6152_s8 = sshll.u32 %s7836_s7, 4  ;;  %s6153_s8 = int_to_ptr.vmem [resolvable:$true] %s6152_s8 }
 0x463   :  { %s7813_s14 = scalar_lea.vmem %s6153_s8, 448  ;;  %p7818_p1 = scmp.lt.s32.totalorder %s6153_s8, %s6153_s8 }
 0x464   :  { %p7814_p0 = scmp.ne.s32.totalorder %s6153_s8, %s7813_s14  ;;  %p7819_p2 = scmp.lt.s32.totalorder %s7813_s14, %s7813_s14 }
 0x465   :  { %7021 = vmatpush3.bf16.msra.mxu0 %v7785_v44 }
 0x466   :  { %7022 = vmatprep.subr.bf16.mxu0 %v7786_v25  ;;  %p7820_p3 = por %p7819_p2, %p7818_p1 }
 0x468   :  { %p7821_p4 = pnand %p7820_p3, %p7814_p0 }
 0x469   :  { %7023 = vmatpush3.bf16.msra.mxu0 %v7787_v47 }
 0x46a   :  { %7024 = vmatprep.subr.bf16.mxu0 %v7788_v54 }
 0x46d   :  { %7025 = vmatpush3.bf16.msra.mxu0 %v7789_v9 }
 0x46e   :  { %7026 = vmatprep.subr.bf16.mxu0 %v7790_v4 }
 0x471   :  { %7027 = vmatpush3.bf16.msra.mxu0 %v7791_v30 }
 0x472   :  { %7028 = vmatprep.subr.bf16.mxu0 %v7792_v31  ;;  %v3141_v31 = vrot.slane %v10397_v60, %v962_v45 }
 0x475   :  { %7029 = vmatpush3.bf16.msra.mxu0 %v7793_v51 }
 0x476   :  { %7030 = vmatprep.subr.bf16.mxu0 %v7794_v53 }
 0x479   :  { %7031 = vmatpush3.bf16.msra.mxu0 %v7795_v57 }
 0x47a   :  { %7032 = vmatprep.subr.bf16.mxu0 %v7796_v58 }
 0x47d   :  { %7033 = vmatpush3.bf16.msra.mxu0 %v7797_v20 }
 0x480   :  { %v5774_v62 = vpop.f32.mrf.mxu0  ;;  %6098 = vmatmul.mubr.bf16.vlgmr.msra.gmra.mxu0 %v9485_v17 }
 0x481   :  { %v5775_v1 = vadd.f32 %v5774_v62, %v10312_v21  ;;  %v5815_v23 = vpop.f32.mrf.mxu1 }
 0x482   :  { %v5776_v52 = vpop.f32.mrf.mxu0  ;;  %v5816_v49 = vadd.f32 %v5815_v23, %v3133_v55 }
 0x483   :  { %v5777_v2 = vadd.f32 %v5776_v52, %v5736_v0  ;;  %v5817_v3 = vpop.f32.mrf.mxu1  ;;  %7802 = vtanh.f32 %v5775_v1 }
 0x484   :  { %v5778_v13 = vpop.f32.mrf.mxu0  ;;  %v5818_v26 = vadd.f32 %v5817_v3, %v3137_v24 }
 0x485   :  { %7804 = vtanh.f32 %v5777_v2  ;;  %v5819_v63 = vpop.f32.mrf.mxu1 }
 0x486   :  { %v5779_v6 = vpop.f32.mrf.mxu0 }
 0x487   :  { %v5820_v56 = vpop.f32.mrf.mxu1 }
 0x490   :  { %v7803_v14 = vpop.eup %7802 }
 0x492   :  { %v7805_v7 = vpop.eup %7804 }
 0x493   :  { %v6949_v15 = vpack.c.bf16 %v7805_v7, %v7803_v14 }
 0x495   :  { %6142 = vst [vmem:[#allocation2 + $0x8] sm:$0xff] %v6949_v15 }
 0x4c0   :  { %v5856_v8 = vpop.f32.mrf.mxu0 }
 0x4c1   :  { %v5897_v17 = vpop.f32.mrf.mxu1  ;;  %v5857_v27 = vadd.f32 %v5856_v8, %v5816_v49 }
 0x4c2   :  { %v5858_v16 = vpop.f32.mrf.mxu0 }
 0x4c3   :  { %v5899_v10 = vpop.f32.mrf.mxu1  ;;  %v5859_v29 = vadd.f32 %v5858_v16, %v5818_v26  ;;  %v5898_v32 = vadd.f32 %v5897_v17, %v5857_v27 }
 0x4c4   :  { %v5860_v12 = vpop.f32.mrf.mxu0 }
 0x4c5   :  { %v5901_v5 = vpop.f32.mrf.mxu1  ;;  %v5900_v35 = vadd.f32 %v5899_v10, %v5859_v29 }
 0x4c6   :  { %v5861_v50 = vpop.f32.mrf.mxu0 }
 0x4c7   :  { %v5902_v34 = vpop.f32.mrf.mxu1 }
 0x4e1   :  { %v6968_v19 = vpop.f32.mrf.mxu1 }
 0x4e3   :  { %v6969_v46 = vpop.f32.mrf.mxu1 }
 0x4e4   :  { %v6970_v21 = vadd.f32 %v6969_v46, %v6968_v19 }
 0x4e5   :  { %v6971_v22 = vpop.f32.mrf.mxu1 }
 0x4e6   :  { %v5980_v53 = vadd.f32 %v6970_v21, %v3141_v31 }
 0x4e7   :  { %v6972_v11 = vpop.f32.mrf.mxu1 }
 0x500   :  { %v5938_v33 = vpop.f32.mrf.mxu0 }
 0x501   :  { %v5939_v36 = vadd.f32 %v5938_v33, %v5898_v32  ;;  %v7012_v37 = vpop.f32.mrf.mxu1 }
 0x502   :  { %v5940_v38 = vpop.f32.mrf.mxu0 }
 0x503   :  { %v5941_v39 = vadd.f32 %v5940_v38, %v5900_v35  ;;  %v7013_v40 = vpop.f32.mrf.mxu1  ;;  %7806 = vtanh.f32 %v5939_v36 }
 0x504   :  { %v5942_v41 = vpop.f32.mrf.mxu0  ;;  %v7014_v18 = vadd.f32 %v7013_v40, %v7012_v37 }
 0x505   :  { %7808 = vtanh.f32 %v5941_v39  ;;  %v7015_v43 = vpop.f32.mrf.mxu1 }
 0x506   :  { %v5943_v42 = vpop.f32.mrf.mxu0 }
 0x507   :  { %v7016_v44 = vpop.f32.mrf.mxu1 }
 0x510   :  { %v7807_v25 = vpop.eup %7806 }
 0x512   :  { %v7809_v48 = vpop.eup %7808 }
 0x513   :  { %v6950_v47 = vpack.c.bf16 %v7809_v48, %v7807_v25 }
 0x515   :  { %6143 = vst [vmem:[#allocation2 + $0x10] sm:$0xff] %v6950_v47 }
 0x520   :  { %v6990_v54 = vpop.f32.mrf.mxu0 }
 0x522   :  { %v6991_v9 = vpop.f32.mrf.mxu0 }
 0x523   :  { %v6992_v51 = vadd.f32 %v6991_v9, %v6990_v54 }
 0x524   :  { %v6993_v4 = vpop.f32.mrf.mxu0 }
 0x525   :  { %v6020_v57 = vadd.f32 %v6992_v51, %v5980_v53 }
 0x526   :  { %v6994_v30 = vpop.f32.mrf.mxu0 }
 0x527   :  { %v6060_v59 = vadd.f32 %v7014_v18, %v6020_v57 }
 0x540   :  { %v7034_v58 = vpop.f32.mrf.mxu0 }
 0x542   :  { %v7035_v20 = vpop.f32.mrf.mxu0 }
 0x543   :  { %v7036_v61 = vadd.f32 %v7035_v20, %v7034_v58 }
 0x544   :  { %v7037_v62 = vpop.f32.mrf.mxu0 }
 0x545   :  { %v6100_v0 = vadd.f32 %v7036_v61, %v6060_v59 }
 0x546   :  { %v7038_v1 = vpop.f32.mrf.mxu0 }
 0x547   :  { %7810 = vtanh.f32 %v6100_v0 }
 0x554   :  { %v7811_v23 = vpop.eup %7810 }
 0x555   :  { %v6951_v52 = vpack.c.bf16 %v7811_v23, %v7811_v23 }
 0x557   :  { %6145 = vst.msk [vmem:[#allocation2 + $0x18] sm:$0xf] %vm6144_vm2, %v6951_v52 }
 0x558   :  { %7824 = shalt.err (!%p7821_p4)
}
 0x559   :  { %6155 = dma.vmem_to_hbm [thread:$0]  %s6153_s8, 448, %s10430_s9, [#allocation3]  }
 0x55a   :  { %7833 = dma.done.wait [#allocation3], 448  }
 0x55b   :  { %7834 = vsyncadd [#allocation3], 4294966848 }
 0x55c   :  { %6159 = vsyncpa [#allocation3], 1 }

</bundles_post_ra>
